<compile_context>
chip_gen: v5e
topology: v5e:2x2
jax: 0.10.0
libtpu: 0.0.40
codegen_flags: <defaults>
</compile_context>

<pallas_src>
import numpy as np
import jax
import jax.numpy as jnp
from jax.experimental import pallas as pl
from jax.experimental.pallas import tpu as pltpu

B_BLK = 8        # batch rows per grid step (sublane-aligned)
LAT_PAD = 128    # latent dim zero-padded to a full lane register


# ----------------------------------------------------------------------------
# Fused Pallas kernel: the entire CAE forward for one batch block in VMEM.
# ----------------------------------------------------------------------------
def _cae_fused_kernel(x_ref,
                      w1_ref, b1_ref, w2_ref, b2_ref, w3_ref, b3_ref,
                      w4_ref, b4_ref, w5_ref, b5_ref, w6_ref, b6_ref,
                      dec_ref, enc_ref):
    def layer(h_bf16, w_ref, b_ref, relu):
        acc = jnp.dot(h_bf16, w_ref[...], preferred_element_type=jnp.float32)
        acc = acc + b_ref[...]                       # f32 epilogue (v5e-safe)
        if relu:
            acc = jnp.maximum(acc, 0.0)
        return acc

    h = x_ref[...]                                                  # (B_BLK, C*H*W) bf16
    h = layer(h, w1_ref, b1_ref, True)                              # enc conv1 + ReLU
    h = layer(h.astype(jnp.bfloat16), w2_ref, b2_ref, True)         # enc conv2 + ReLU
    enc = layer(h.astype(jnp.bfloat16), w3_ref, b3_ref, False)      # enc fc -> latent(pad)
    enc_ref[...] = enc.astype(enc_ref.dtype)
    h = layer(enc.astype(jnp.bfloat16), w4_ref, b4_ref, True)       # dec fc + ReLU
    h = layer(h.astype(jnp.bfloat16), w5_ref, b5_ref, True)         # dec deconv1 + ReLU
    h = layer(h.astype(jnp.bfloat16), w6_ref, b6_ref, False)        # dec deconv2
    dec_ref[...] = h.astype(dec_ref.dtype)


# ----------------------------------------------------------------------------
# One-time weight folding: conv / conv-transpose -> exact dense matrices
# acting on NCHW-flattened vectors (PyTorch semantics).
# ----------------------------------------------------------------------------
def _dense_conv2d(w, b, H, W, stride, pad):
    """w:(C_out,C_in,k,k) -> (M:(in_flat,out_flat), bias:(1,out_flat), Ho, Wo)."""
    C_out, C_in, k, _ = w.shape
    Ho = (H + 2 * pad - k) // stride + 1
    Wo = (W + 2 * pad - k) // stride + 1
    G = np.zeros((k, k, Ho * Wo, H * W), np.float32)
    for kh in range(k):
        for kw in range(k):
            for ho in range(Ho):
                hi = stride * ho + kh - pad
                if hi < 0 or hi >= H:
                    continue
                for wo in range(Wo):
                    wi = stride * wo + kw - pad
                    if wi < 0 or wi >= W:
                        continue
                    G[kh, kw, ho * Wo + wo, hi * W + wi] = 1.0
    dense = jnp.einsum("oikl,klmn->omin", w, jnp.asarray(G))
    dense = dense.reshape(C_out * Ho * Wo, C_in * H * W)
    bias = jnp.repeat(b, Ho * Wo).reshape(1, -1)
    return dense.T, bias, Ho, Wo


def _dense_conv_transpose2d(w, b, H, W, stride, pad, output_pad):
    """w:(C_in,C_out,k,k) -> (M:(in_flat,out_flat), bias:(1,out_flat), Ho, Wo)."""
    C_in, C_out, k, _ = w.shape
    Ho = (H - 1) * stride - 2 * pad + k + output_pad
    Wo = (W - 1) * stride - 2 * pad + k + output_pad
    G = np.zeros((k, k, Ho * Wo, H * W), np.float32)
    for kh in range(k):
        for kw in range(k):
            for hi in range(H):
                ho = stride * hi + kh - pad
                if ho < 0 or ho >= Ho:
                    continue
                for wi in range(W):
                    wo = stride * wi + kw - pad
                    if wo < 0 or wo >= Wo:
                        continue
                    G[kh, kw, ho * Wo + wo, hi * W + wi] = 1.0
    dense = jnp.einsum("iokl,klmn->omin", w, jnp.asarray(G))
    dense = dense.reshape(C_out * Ho * Wo, C_in * H * W)
    bias = jnp.repeat(b, Ho * Wo).reshape(1, -1)
    return dense.T, bias, Ho, Wo


# ----------------------------------------------------------------------------
# CAE parameters, weight prep, forward
# ----------------------------------------------------------------------------
def init_cae_params(key, in_ch=4, c1=8, c2=16, spatial=16, latent_dim=20):
    sp2 = spatial // 4                       # after two stride-2 convs
    flat = c2 * sp2 * sp2
    ks = jax.random.split(key, 12)
    s = 0.1
    p = {
        # encoder
        "e_conv1_w": s * jax.random.normal(ks[0], (c1, in_ch, 3, 3), jnp.float32),
        "e_conv1_b": s * jax.random.normal(ks[1], (c1,), jnp.float32),
        "e_conv2_w": s * jax.random.normal(ks[2], (c2, c1, 3, 3), jnp.float32),
        "e_conv2_b": s * jax.random.normal(ks[3], (c2,), jnp.float32),
        "e_fc_w": s * jax.random.normal(ks[4], (latent_dim, flat), jnp.float32),
        "e_fc_b": s * jax.random.normal(ks[5], (latent_dim,), jnp.float32),
        # decoder
        "d_fc_w": s * jax.random.normal(ks[6], (flat, latent_dim), jnp.float32),
        "d_fc_b": s * jax.random.normal(ks[7], (flat,), jnp.float32),
        "d_deconv1_w": s * jax.random.normal(ks[8], (c2, c1, 3, 3), jnp.float32),
        "d_deconv1_b": s * jax.random.normal(ks[9], (c1,), jnp.float32),
        "d_deconv2_w": s * jax.random.normal(ks[10], (c1, in_ch, 3, 3), jnp.float32),
        "d_deconv2_b": s * jax.random.normal(ks[11], (in_ch,), jnp.float32),
    }
    meta = dict(in_ch=in_ch, c1=c1, c2=c2, spatial=spatial,
                latent_dim=latent_dim, sp2=sp2)
    return p, meta


def prepare_fused_params(params, meta):
    """Fold every layer into (W:(Din,Dout) bf16, b:(1,Dout) f32). Run once."""
    c2, S, latent = meta["c2"], meta["spatial"], meta["latent_dim"]

    w1, b1, H1, W1 = _dense_conv2d(params["e_conv1_w"], params["e_conv1_b"], S, S, 2, 1)
    w2, b2, H2, W2 = _dense_conv2d(params["e_conv2_w"], params["e_conv2_b"], H1, W1, 2, 1)
    flat = c2 * H2 * W2

    # encoder fc, latent zero-padded to LAT_PAD (extra lanes contribute nothing)
    w3 = jnp.zeros((flat, LAT_PAD), jnp.float32).at[:, :latent].set(params["e_fc_w"].T)
    b3 = jnp.zeros((1, LAT_PAD), jnp.float32).at[0, :latent].set(params["e_fc_b"])

    # decoder fc (padded latent columns are zero -> exact)
    w4 = jnp.zeros((LAT_PAD, flat), jnp.float32).at[:latent, :].set(params["d_fc_w"].T)
    b4 = params["d_fc_b"].reshape(1, flat)

    w5, b5, H5, W5 = _dense_conv_transpose2d(
        params["d_deconv1_w"], params["d_deconv1_b"], H2, W2, 2, 1, 1)
    w6, b6, _, _ = _dense_conv_transpose2d(
        params["d_deconv2_w"], params["d_deconv2_b"], H5, W5, 2, 1, 1)

    weights = [(w.astype(jnp.bfloat16), b.astype(jnp.float32))
               for w, b in ((w1, b1), (w2, b2), (w3, b3),
                            (w4, b4), (w5, b5), (w6, b6))]
    return {"weights": weights, "meta": meta}


def cae_forward(fused, x):
    """x: (N, C, H, W) NCHW float32.  Returns (decoded NCHW, encoded (N, latent))."""
    meta = fused["meta"]
    B = x.shape[0]
    C, S = meta["in_ch"], meta["spatial"]
    latent = meta["latent_dim"]
    in_flat = C * S * S

    # --- boundary-only glue: NCHW flatten, bf16 cast, batch pad to B_BLK ---
    x_flat = x.reshape(B, in_flat).astype(jnp.bfloat16)
    G = (B + B_BLK - 1) // B_BLK
    B_pad = G * B_BLK
    if B_pad != B:
        x_flat = jnp.pad(x_flat, ((0, B_pad - B), (0, 0)))

    ws = fused["weights"]
    dims = [(w.shape[0], w.shape[1]) for w, _ in ws]
    flops = 2 * B_pad * sum(din * dout for din, dout in dims)
    bytes_accessed = (x_flat.size * 2
                      + sum(w.size * 2 + b.size * 4 for w, b in ws)
                      + B_pad * (in_flat + LAT_PAD) * 4)

    in_specs = [pl.BlockSpec((B_BLK, in_flat), lambda i: (i, 0))]
    operands = [x_flat]
    for w, b in ws:
        in_specs.append(pl.BlockSpec(w.shape, lambda i: (0, 0)))
        in_specs.append(pl.BlockSpec(b.shape, lambda i: (0, 0)))
        operands.append(w)
        operands.append(b)

    dec_flat, enc_pad = pl.pallas_call(
        _cae_fused_kernel,
        out_shape=(jax.ShapeDtypeStruct((B_pad, in_flat), jnp.float32),
                   jax.ShapeDtypeStruct((B_pad, LAT_PAD), jnp.float32)),
        grid_spec=pltpu.PrefetchScalarGridSpec(
            num_scalar_prefetch=0,
            grid=(G,),
            in_specs=in_specs,
            out_specs=[pl.BlockSpec((B_BLK, in_flat), lambda i: (i, 0)),
                       pl.BlockSpec((B_BLK, LAT_PAD), lambda i: (i, 0))]),
        compiler_params=pltpu.CompilerParams(
            dimension_semantics=("parallel",)),     # batch blocks shard over v7x's 2 TCs
        cost_estimate=pl.CostEstimate(flops=flops, transcendentals=0,
                                      bytes_accessed=bytes_accessed),
    )(*operands)

    decoded = dec_flat[:B].reshape(B, C, S, S)
    encoded = enc_pad[:B, :latent]
    # TODO(synk): exact encoder2d/decoder2d layer stack not shown in the source
    # snippet; this is a standard conv-AE instantiation matching the CAE API.
    return decoded, encoded


if __name__ == "__main__":
    key = jax.random.PRNGKey(0)
    k_param, k_x = jax.random.split(key)

    params, meta = init_cae_params(k_param, in_ch=4, spatial=16, latent_dim=20)
    fused = prepare_fused_params(params, meta)

    x = jax.random.normal(k_x, (2, 4, 16, 16), jnp.float32)   # NCHW

    decoded, encoded = cae_forward(fused, x)
    jax.block_until_ready(decoded)
    jax.block_until_ready(encoded)

    assert decoded.shape == (2, 4, 16, 16), decoded.shape
    assert encoded.shape == (2, 20), encoded.shape
    assert bool(jnp.all(jnp.isfinite(decoded))) and bool(jnp.all(jnp.isfinite(encoded)))
    print("KERNEL_OK")
</pallas_src>

<mosaic_0001>
module attributes {stable_mosaic.version = 11 : i64} {
  func.func @_cae_fused_kernel(%arg0: i32, %arg1: memref<8x1024xbf16, #tpu.memory_space<vmem>>, %arg2: memref<1024x512xbf16, #tpu.memory_space<vmem>>, %arg3: memref<1x512xf32, #tpu.memory_space<vmem>>, %arg4: memref<512x256xbf16, #tpu.memory_space<vmem>>, %arg5: memref<1x256xf32, #tpu.memory_space<vmem>>, %arg6: memref<256x128xbf16, #tpu.memory_space<vmem>>, %arg7: memref<1x128xf32, #tpu.memory_space<vmem>>, %arg8: memref<128x256xbf16, #tpu.memory_space<vmem>>, %arg9: memref<1x256xf32, #tpu.memory_space<vmem>>, %arg10: memref<256x512xbf16, #tpu.memory_space<vmem>>, %arg11: memref<1x512xf32, #tpu.memory_space<vmem>>, %arg12: memref<512x1024xbf16, #tpu.memory_space<vmem>>, %arg13: memref<1x1024xf32, #tpu.memory_space<vmem>>, %arg14: memref<8x1024xf32, #tpu.memory_space<vmem>>, %arg15: memref<8x128xf32, #tpu.memory_space<vmem>>) attributes {dimension_semantics = [#tpu.dimension_semantics<parallel>], iteration_bounds = array<i64: 1>, scalar_prefetch = 0 : i64, scratch_operands = 0 : i64, tpu.core_type = #tpu.core_type<tc>, window_params = [{transform_indices = @transform_0, window_bounds = array<i64: 8, 1024>}, {pipeline_mode = #tpu.pipeline_mode<synchronous>, transform_indices = @transform_1, window_bounds = array<i64: 1024, 512>}, {pipeline_mode = #tpu.pipeline_mode<synchronous>, transform_indices = @transform_2, window_bounds = array<i64: 1, 512>}, {pipeline_mode = #tpu.pipeline_mode<synchronous>, transform_indices = @transform_3, window_bounds = array<i64: 512, 256>}, {pipeline_mode = #tpu.pipeline_mode<synchronous>, transform_indices = @transform_4, window_bounds = array<i64: 1, 256>}, {pipeline_mode = #tpu.pipeline_mode<synchronous>, transform_indices = @transform_5, window_bounds = array<i64: 256, 128>}, {pipeline_mode = #tpu.pipeline_mode<synchronous>, transform_indices = @transform_6, window_bounds = array<i64: 1, 128>}, {pipeline_mode = #tpu.pipeline_mode<synchronous>, transform_indices = @transform_7, window_bounds = array<i64: 128, 256>}, {pipeline_mode = #tpu.pipeline_mode<synchronous>, transform_indices = @transform_8, window_bounds = array<i64: 1, 256>}, {pipeline_mode = #tpu.pipeline_mode<synchronous>, transform_indices = @transform_9, window_bounds = array<i64: 256, 512>}, {pipeline_mode = #tpu.pipeline_mode<synchronous>, transform_indices = @transform_10, window_bounds = array<i64: 1, 512>}, {pipeline_mode = #tpu.pipeline_mode<synchronous>, transform_indices = @transform_11, window_bounds = array<i64: 512, 1024>}, {pipeline_mode = #tpu.pipeline_mode<synchronous>, transform_indices = @transform_12, window_bounds = array<i64: 1, 1024>}, {transform_indices = @transform_13, window_bounds = array<i64: 8, 1024>}, {transform_indices = @transform_14, window_bounds = array<i64: 8, 128>}]} {
    %c0 = arith.constant 0 : index
    %c0_0 = arith.constant 0 : index
    %0 = vector.load %arg1[%c0, %c0_0] : memref<8x1024xbf16, #tpu.memory_space<vmem>>, vector<8x1024xbf16>
    %c0_1 = arith.constant 0 : index
    %c0_2 = arith.constant 0 : index
    %1 = vector.load %arg2[%c0_1, %c0_2] : memref<1024x512xbf16, #tpu.memory_space<vmem>>, vector<1024x512xbf16>
    %cst = arith.constant dense<0.000000e+00> : vector<8x512xf32>
    %2 = tpu.matmul %0, %1, %cst {dimension_numbers = #tpu.dot_dimension_numbers<[1], [0], [0], [1], [0, 0, 1, 1], [], []>} : vector<8x1024xbf16>, vector<1024x512xbf16>, vector<8x512xf32> -> vector<8x512xf32>
    %c0_3 = arith.constant 0 : index
    %c0_4 = arith.constant 0 : index
    %3 = vector.load %arg3[%c0_3, %c0_4] : memref<1x512xf32, #tpu.memory_space<vmem>>, vector<1x512xf32>
    %4 = vector.broadcast %3 : vector<1x512xf32> to vector<8x512xf32>
    %5 = arith.addf %2, %4 : vector<8x512xf32>
    %cst_5 = arith.constant 0.000000e+00 : f32
    %6 = vector.broadcast %cst_5 : f32 to vector<8x512xf32>
    %7 = arith.maximumf %5, %6 : vector<8x512xf32>
    %8 = arith.truncf %7 : vector<8x512xf32> to vector<8x512xbf16>
    %c0_6 = arith.constant 0 : index
    %c0_7 = arith.constant 0 : index
    %9 = vector.load %arg4[%c0_6, %c0_7] : memref<512x256xbf16, #tpu.memory_space<vmem>>, vector<512x256xbf16>
    %cst_8 = arith.constant dense<0.000000e+00> : vector<8x256xf32>
    %10 = tpu.matmul %8, %9, %cst_8 {dimension_numbers = #tpu.dot_dimension_numbers<[1], [0], [0], [1], [0, 0, 1, 1], [], []>} : vector<8x512xbf16>, vector<512x256xbf16>, vector<8x256xf32> -> vector<8x256xf32>
    %c0_9 = arith.constant 0 : index
    %c0_10 = arith.constant 0 : index
    %11 = vector.load %arg5[%c0_9, %c0_10] : memref<1x256xf32, #tpu.memory_space<vmem>>, vector<1x256xf32>
    %12 = vector.broadcast %11 : vector<1x256xf32> to vector<8x256xf32>
    %13 = arith.addf %10, %12 : vector<8x256xf32>
    %cst_11 = arith.constant 0.000000e+00 : f32
    %14 = vector.broadcast %cst_11 : f32 to vector<8x256xf32>
    %15 = arith.maximumf %13, %14 : vector<8x256xf32>
    %16 = arith.truncf %15 : vector<8x256xf32> to vector<8x256xbf16>
    %c0_12 = arith.constant 0 : index
    %c0_13 = arith.constant 0 : index
    %17 = vector.load %arg6[%c0_12, %c0_13] : memref<256x128xbf16, #tpu.memory_space<vmem>>, vector<256x128xbf16>
    %cst_14 = arith.constant dense<0.000000e+00> : vector<8x128xf32>
    %18 = tpu.matmul %16, %17, %cst_14 {dimension_numbers = #tpu.dot_dimension_numbers<[1], [0], [0], [1], [0, 0, 1, 1], [], []>} : vector<8x256xbf16>, vector<256x128xbf16>, vector<8x128xf32> -> vector<8x128xf32>
    %c0_15 = arith.constant 0 : index
    %c0_16 = arith.constant 0 : index
    %19 = vector.load %arg7[%c0_15, %c0_16] : memref<1x128xf32, #tpu.memory_space<vmem>>, vector<1x128xf32>
    %20 = vector.broadcast %19 : vector<1x128xf32> to vector<8x128xf32>
    %21 = arith.addf %18, %20 : vector<8x128xf32>
    %c0_17 = arith.constant 0 : index
    %c0_18 = arith.constant 0 : index
    %22 = vector.load %arg15[%c0_17, %c0_18] : memref<8x128xf32, #tpu.memory_space<vmem>>, vector<8x128xf32>
    tpu.vector_store %arg15[%c0_17, %c0_18], %21 {strides = array<i32>} : memref<8x128xf32, #tpu.memory_space<vmem>>, vector<8x128xf32>,
    %23 = arith.truncf %21 : vector<8x128xf32> to vector<8x128xbf16>
    %c0_19 = arith.constant 0 : index
    %c0_20 = arith.constant 0 : index
    %24 = vector.load %arg8[%c0_19, %c0_20] : memref<128x256xbf16, #tpu.memory_space<vmem>>, vector<128x256xbf16>
    %cst_21 = arith.constant dense<0.000000e+00> : vector<8x256xf32>
    %25 = tpu.matmul %23, %24, %cst_21 {dimension_numbers = #tpu.dot_dimension_numbers<[1], [0], [0], [1], [0, 0, 1, 1], [], []>} : vector<8x128xbf16>, vector<128x256xbf16>, vector<8x256xf32> -> vector<8x256xf32>
    %c0_22 = arith.constant 0 : index
    %c0_23 = arith.constant 0 : index
    %26 = vector.load %arg9[%c0_22, %c0_23] : memref<1x256xf32, #tpu.memory_space<vmem>>, vector<1x256xf32>
    %27 = vector.broadcast %26 : vector<1x256xf32> to vector<8x256xf32>
    %28 = arith.addf %25, %27 : vector<8x256xf32>
    %cst_24 = arith.constant 0.000000e+00 : f32
    %29 = vector.broadcast %cst_24 : f32 to vector<8x256xf32>
    %30 = arith.maximumf %28, %29 : vector<8x256xf32>
    %31 = arith.truncf %30 : vector<8x256xf32> to vector<8x256xbf16>
    %c0_25 = arith.constant 0 : index
    %c0_26 = arith.constant 0 : index
    %32 = vector.load %arg10[%c0_25, %c0_26] : memref<256x512xbf16, #tpu.memory_space<vmem>>, vector<256x512xbf16>
    %cst_27 = arith.constant dense<0.000000e+00> : vector<8x512xf32>
    %33 = tpu.matmul %31, %32, %cst_27 {dimension_numbers = #tpu.dot_dimension_numbers<[1], [0], [0], [1], [0, 0, 1, 1], [], []>} : vector<8x256xbf16>, vector<256x512xbf16>, vector<8x512xf32> -> vector<8x512xf32>
    %c0_28 = arith.constant 0 : index
    %c0_29 = arith.constant 0 : index
    %34 = vector.load %arg11[%c0_28, %c0_29] : memref<1x512xf32, #tpu.memory_space<vmem>>, vector<1x512xf32>
    %35 = vector.broadcast %34 : vector<1x512xf32> to vector<8x512xf32>
    %36 = arith.addf %33, %35 : vector<8x512xf32>
    %cst_30 = arith.constant 0.000000e+00 : f32
    %37 = vector.broadcast %cst_30 : f32 to vector<8x512xf32>
    %38 = arith.maximumf %36, %37 : vector<8x512xf32>
    %39 = arith.truncf %38 : vector<8x512xf32> to vector<8x512xbf16>
    %c0_31 = arith.constant 0 : index
    %c0_32 = arith.constant 0 : index
    %40 = vector.load %arg12[%c0_31, %c0_32] : memref<512x1024xbf16, #tpu.memory_space<vmem>>, vector<512x1024xbf16>
    %cst_33 = arith.constant dense<0.000000e+00> : vector<8x1024xf32>
    %41 = tpu.matmul %39, %40, %cst_33 {dimension_numbers = #tpu.dot_dimension_numbers<[1], [0], [0], [1], [0, 0, 1, 1], [], []>} : vector<8x512xbf16>, vector<512x1024xbf16>, vector<8x1024xf32> -> vector<8x1024xf32>
    %c0_34 = arith.constant 0 : index
    %c0_35 = arith.constant 0 : index
    %42 = vector.load %arg13[%c0_34, %c0_35] : memref<1x1024xf32, #tpu.memory_space<vmem>>, vector<1x1024xf32>
    %43 = vector.broadcast %42 : vector<1x1024xf32> to vector<8x1024xf32>
    %44 = arith.addf %41, %43 : vector<8x1024xf32>
    %c0_36 = arith.constant 0 : index
    %c0_37 = arith.constant 0 : index
    %45 = vector.load %arg14[%c0_36, %c0_37] : memref<8x1024xf32, #tpu.memory_space<vmem>>, vector<8x1024xf32>
    tpu.vector_store %arg14[%c0_36, %c0_37], %44 {strides = array<i32>} : memref<8x1024xf32, #tpu.memory_space<vmem>>, vector<8x1024xf32>,
    return
  }
  func.func @transform_0(%arg0: i32) -> (i32, i32) {
    %c0_i32 = arith.constant 0 : i32
    %c0_i32_0 = arith.constant 0 : i32
    return %arg0, %c0_i32 : i32, i32
  }
  func.func @transform_1(%arg0: i32) -> (i32, i32) {
    %c0_i32 = arith.constant 0 : i32
    %c0_i32_0 = arith.constant 0 : i32
    %c0_i32_1 = arith.constant 0 : i32
    return %c0_i32, %c0_i32_0 : i32, i32
  }
  func.func @transform_2(%arg0: i32) -> (i32, i32) {
    %c0_i32 = arith.constant 0 : i32
    %c0_i32_0 = arith.constant 0 : i32
    %c0_i32_1 = arith.constant 0 : i32
    return %c0_i32, %c0_i32_0 : i32, i32
  }
  func.func @transform_3(%arg0: i32) -> (i32, i32) {
    %c0_i32 = arith.constant 0 : i32
    %c0_i32_0 = arith.constant 0 : i32
    %c0_i32_1 = arith.constant 0 : i32
    return %c0_i32, %c0_i32_0 : i32, i32
  }
  func.func @transform_4(%arg0: i32) -> (i32, i32) {
    %c0_i32 = arith.constant 0 : i32
    %c0_i32_0 = arith.constant 0 : i32
    %c0_i32_1 = arith.constant 0 : i32
    return %c0_i32, %c0_i32_0 : i32, i32
  }
  func.func @transform_5(%arg0: i32) -> (i32, i32) {
    %c0_i32 = arith.constant 0 : i32
    %c0_i32_0 = arith.constant 0 : i32
    %c0_i32_1 = arith.constant 0 : i32
    return %c0_i32, %c0_i32_0 : i32, i32
  }
  func.func @transform_6(%arg0: i32) -> (i32, i32) {
    %c0_i32 = arith.constant 0 : i32
    %c0_i32_0 = arith.constant 0 : i32
    %c0_i32_1 = arith.constant 0 : i32
    return %c0_i32, %c0_i32_0 : i32, i32
  }
  func.func @transform_7(%arg0: i32) -> (i32, i32) {
    %c0_i32 = arith.constant 0 : i32
    %c0_i32_0 = arith.constant 0 : i32
    %c0_i32_1 = arith.constant 0 : i32
    return %c0_i32, %c0_i32_0 : i32, i32
  }
  func.func @transform_8(%arg0: i32) -> (i32, i32) {
    %c0_i32 = arith.constant 0 : i32
    %c0_i32_0 = arith.constant 0 : i32
    %c0_i32_1 = arith.constant 0 : i32
    return %c0_i32, %c0_i32_0 : i32, i32
  }
  func.func @transform_9(%arg0: i32) -> (i32, i32) {
    %c0_i32 = arith.constant 0 : i32
    %c0_i32_0 = arith.constant 0 : i32
    %c0_i32_1 = arith.constant 0 : i32
    return %c0_i32, %c0_i32_0 : i32, i32
  }
  func.func @transform_10(%arg0: i32) -> (i32, i32) {
    %c0_i32 = arith.constant 0 : i32
    %c0_i32_0 = arith.constant 0 : i32
    %c0_i32_1 = arith.constant 0 : i32
    return %c0_i32, %c0_i32_0 : i32, i32
  }
  func.func @transform_11(%arg0: i32) -> (i32, i32) {
    %c0_i32 = arith.constant 0 : i32
    %c0_i32_0 = arith.constant 0 : i32
    %c0_i32_1 = arith.constant 0 : i32
    return %c0_i32, %c0_i32_0 : i32, i32
  }
  func.func @transform_12(%arg0: i32) -> (i32, i32) {
    %c0_i32 = arith.constant 0 : i32
    %c0_i32_0 = arith.constant 0 : i32
    %c0_i32_1 = arith.constant 0 : i32
    return %c0_i32, %c0_i32_0 : i32, i32
  }
  func.func @transform_13(%arg0: i32) -> (i32, i32) {
    %c0_i32 = arith.constant 0 : i32
    %c0_i32_0 = arith.constant 0 : i32
    return %arg0, %c0_i32 : i32, i32
  }
  func.func @transform_14(%arg0: i32) -> (i32, i32) {
    %c0_i32 = arith.constant 0 : i32
    %c0_i32_0 = arith.constant 0 : i32
    return %arg0, %c0_i32 : i32, i32
  }
}

</mosaic_0001>

<bundles_post_ra>
// kernel: tpu_custom_call.1
= control target key start
LH: loop header
LB: loop body
LE: loop exit
PB: predicated region body
PF: predicated region fallthrough
CT: control target
= control target key end

     0   :  { %20 = vsyncpa [#allocation3], 0  ;;  %s9516_s0 = inlined_call_operand.hbm [shape: bf16[8,1024], index: 0, kind: input, shape index: {}]   ;;  %s9517_s1 = inlined_call_operand.hbm [shape: bf16[1024,512], index: 1, kind: input, shape index: {}]   ;;  %s9518_s2 = inlined_call_operand.hbm [shape: f32[1,512], index: 2, kind: input, shape index: {}]   ;;  %s9519_s3 = inlined_call_operand.hbm [shape: bf16[512,256], index: 3, kind: input, shape index: {}]   ;;  %s9520_s4 = inlined_call_operand.vmem [shape: f32[1,256], index: 4, kind: input, shape index: {}]   ;;  %s9521_s5 = inlined_call_operand.hbm [shape: bf16[256,128], index: 5, kind: input, shape index: {}]   ;;  %s9522_s6 = inlined_call_operand.vmem [shape: f32[1,128], index: 6, kind: input, shape index: {}]   ;;  %s9523_s7 = inlined_call_operand.hbm [shape: bf16[128,256], index: 7, kind: input, shape index: {}]   ;;  %s9524_s8 = inlined_call_operand.hbm [shape: f32[1,256], index: 8, kind: input, shape index: {}]   ;;  %s9525_s9 = inlined_call_operand.hbm [shape: bf16[256,512], index: 9, kind: input, shape index: {}]   ;;  %s9526_s10 = inlined_call_operand.hbm [shape: f32[1,512], index: 10, kind: input, shape index: {}]   ;;  %s9527_s11 = inlined_call_operand.hbm [shape: bf16[512,1024], index: 11, kind: input, shape index: {}]   ;;  %s9528_s12 = inlined_call_operand.vmem [shape: f32[1,1024], index: 12, kind: input, shape index: {}]   ;;  %s9529_s13 = inlined_call_operand.hbm [shape: f32[8,1024], index: 13, kind: output, shape index: {0}]   ;;  %s9530_s14 = inlined_call_operand.hbm [shape: f32[8,128], index: 14, kind: output, shape index: {1}]  }
   0x1   :  { %21 = vsyncpa [#allocation6], 0 }
   0x2   :  { %22 = vsyncpa [#allocation9], 0 }
   0x3   :  { %23 = vsyncpa [#allocation12], 0 }
   0x4   :  { %24 = vsyncpa [#allocation15], 0 }
   0x5   :  { %25 = vsyncpa [#allocation18], 0 }
   0x6   :  { %26 = vsyncpa [#allocation4], 0  ;;  %s43_s15 = sshll.u32 %s9517_s1, 4  ;;  %s44_s15 = int_to_ptr.hbm [resolvable:$true] %s43_s15 }
   0x7   :  { %27 = vsyncpa [#allocation21], 0  ;;  %s9196_s16 = smov [#allocation5]   ;;  %s67_s20 = sshll.u32 %s9519_s3, 4  ;;  %s68_s20 = int_to_ptr.hbm [resolvable:$true] %s67_s20 }
   0x8   :  { %s45_s17 = sshll.u32 %s9196_s16, 4  ;;  %s9197_s21 = smov 256   ;;  %s46_s17 = int_to_ptr.vmem [resolvable:$true] %s45_s17 }
   0x9   :  { %s9198_s22 = smov 16   ;;  %s9199_s23 = smov [#allocation8]  }
   0xa   :  { %51 = dma.hbm_to_vmem [thread:$0]  %s44_s15, 32768, %s46_s17, [#allocation6], %s9197_s21, %s9197_s21, %s9198_s22  }
   0xb   :  { %s69_s24 = sshll.u32 %s9199_s23, 4  ;;  %s9200_s25 = smov 128   ;;  %s70_s24 = int_to_ptr.vmem [resolvable:$true] %s69_s24 }
   0xc   :  { %s9201_s26 = smov 8   ;;  %s97_s28 = sshll.u32 %s9523_s7, 4  ;;  %s98_s28 = int_to_ptr.hbm [resolvable:$true] %s97_s28 }
   0xd   :  { %75 = dma.hbm_to_vmem [thread:$0]  %s68_s20, 8192, %s70_s24, [#allocation9], %s9200_s25, %s9200_s25, %s9201_s26  }
   0xe   :  { %s9202_s29 = smov [#allocation11]   ;;  %s121_s18 = sshll.u32 %s9525_s9, 4  ;;  %s122_s18 = int_to_ptr.hbm [resolvable:$true] %s121_s18 }
   0xf   :  { %s99_s30 = sshll.u32 %s9202_s29, 4  ;;  %s9203_s15 = smov [#allocation14]   ;;  %s100_s30 = int_to_ptr.vmem [resolvable:$true] %s99_s30 }
  0x10   :  { %105 = dma.hbm_to_vmem [thread:$0]  %s98_s28, 2048, %s100_s30, [#allocation12], %s9200_s25, %s9200_s25, %s9201_s26  }
  0x11   :  { %s123_s17 = sshll.u32 %s9203_s15, 4  ;;  %s33_s20 = sshll.u32 %s9516_s0, 4  ;;  %s124_s17 = int_to_ptr.vmem [resolvable:$true] %s123_s17  ;;  %s34_s20 = int_to_ptr.hbm [resolvable:$true] %s33_s20 }
  0x12   :  { %129 = dma.hbm_to_vmem [thread:$0]  %s122_s18, 8192, %s124_s17, [#allocation15], %s9197_s21, %s9197_s21, %s9198_s22  }
  0x13   :  { %s57_s1 = sshll.u32 %s9518_s2, 4  ;;  %s9204_s27 = smov [#allocation2]   ;;  %s58_s1 = int_to_ptr.hbm [resolvable:$true] %s57_s1 }
  0x14   :  { %s35_s29 = sshll.u32 %s9204_s27, 4  ;;  %s9205_s9 = smov [#allocation7]   ;;  %s36_s29 = int_to_ptr.vmem [resolvable:$true] %s35_s29 }
  0x15   :  { %38 = dma.hbm_to_vmem [thread:$0]  %s34_s20, 512, %s36_s29, [#allocation3]  }
  0x16   :  { %s59_s25 = sshll.u32 %s9205_s9, 4  ;;  %s82_s30 = sshll.u32 %s9521_s5, 4  ;;  %s60_s25 = int_to_ptr.vmem [resolvable:$true] %s59_s25  ;;  %s83_s30 = int_to_ptr.hbm [resolvable:$true] %s82_s30 }
  0x17   :  { %62 = dma.hbm_to_vmem [thread:$0]  %s58_s1, 64, %s60_s25, [#allocation6]  }
  0x18   :  { %s9206_s0 = smov [#allocation10]   ;;  %s111_s2 = sshll.u32 %s9524_s8, 4  ;;  %s112_s2 = int_to_ptr.hbm [resolvable:$true] %s111_s2 }
  0x19   :  { %s84_s21 = sshll.u32 %s9206_s0, 4  ;;  %s9207_s3 = smov 64   ;;  %s85_s21 = int_to_ptr.vmem [resolvable:$true] %s84_s21 }
  0x1a   :  { %s9208_s18 = smov 4   ;;  %s9209_s15 = smov [#allocation13]  }
  0x1b   :  { %90 = dma.hbm_to_vmem [thread:$0]  %s83_s30, 2048, %s85_s21, [#allocation9], %s9207_s3, %s9207_s3, %s9208_s18  }
  0x1c   :  { %s113_s17 = sshll.u32 %s9209_s15, 4  ;;  %s135_s5 = sshll.u32 %s9526_s10, 4  ;;  %s114_s17 = int_to_ptr.vmem [resolvable:$true] %s113_s17  ;;  %s136_s5 = int_to_ptr.hbm [resolvable:$true] %s135_s5 }
  0x1d   :  { %116 = dma.hbm_to_vmem [thread:$0]  %s112_s2, 32, %s114_s17, [#allocation12]  }
  0x1e   :  { %s145_s24 = sshll.u32 %s9527_s11, 4  ;;  %s9210_s1 = smov [#allocation16]   ;;  %s146_s24 = int_to_ptr.hbm [resolvable:$true] %s145_s24 }
  0x1f   :  { %s137_s27 = sshll.u32 %s9210_s1, 4  ;;  %s9211_s8 = smov [#allocation17]   ;;  %s138_s27 = int_to_ptr.vmem [resolvable:$true] %s137_s27 }
  0x20   :  { %140 = dma.hbm_to_vmem [thread:$0]  %s136_s5, 64, %s138_s27, [#allocation15]  }
  0x21   :  { %s147_s29 = sshll.u32 %s9211_s8, 4  ;;  %s9212_s9 = smov 512   ;;  %s148_s29 = int_to_ptr.vmem [resolvable:$true] %s147_s29 }
  0x22   :  { %s9213_s25 = smov 32  }
  0x23   :  { %153 = dma.hbm_to_vmem [thread:$0]  %s146_s24, 32768, %s148_s29, [#allocation18], %s9212_s9, %s9212_s9, %s9213_s25  }
  0x24   :  { %9180 = dma.done.wait [#allocation3], 512  }
  0x25   :  { %9181 = vsyncadd [#allocation3], 4294966784 }
  0x26   :  { %9182 = dma.done.wait [#allocation6], 32832  }
  0x27   :  { %9183 = vsyncadd [#allocation6], 4294934464 }
  0x28   :  { %9184 = dma.done.wait [#allocation9], 10240  }
  0x29   :  { %9185 = vsyncadd [#allocation9], 4294957056 }
  0x2a   :  { %9186 = dma.done.wait [#allocation12], 2080  }
  0x2b   :  { %9187 = vsyncadd [#allocation12], 4294965216 }
  0x2c   :  { %9188 = dma.done.wait [#allocation15], 8256  }
  0x2d   :  { %9189 = vsyncadd [#allocation15], 4294959040 }
  0x2e   :  { %9190 = dma.done.wait [#allocation18], 32768  }
  0x2f   :  { %9191 = vsyncadd [#allocation18], 4294934528  ;;  %v5624_v0 = vld [vmem:[#allocation5 + $0xe0] sm:$0xf]  ;;  %v8228_v1 = vld [vmem:[#allocation5 + $0xec] sm:$0xf0] }
  0x30   :  { %v5752_v2 = vld [vmem:[#allocation5 + $0x1e0] sm:$0xf]  ;;  %v5625_v3 = vor.u32 %v8228_v1, %v5624_v0  ;;  %v8260_v4 = vld [vmem:[#allocation5 + $0x1ec] sm:$0xf0]  ;;  %s5490_s22 = sshll.u32 %s9530_s14, 4  ;;  %s9215_s14 = smov [#allocation19]   ;;  %s5491_s22 = int_to_ptr.hbm [resolvable:$true] %s5490_s22 }
  0x31   :  { %v5880_v5 = vld [vmem:[#allocation5 + $0x2e0] sm:$0xf]  ;;  %v8292_v6 = vld [vmem:[#allocation5 + $0x2ec] sm:$0xf0]  ;;  %v5753_v7 = vor.u32 %v8260_v4, %v5752_v2  ;;  %s5477_s16 = sshll.u32 %s9215_s14, 4  ;;  %s5479_s18 = sshll.u32 %s9529_s13, 4  ;;  %s5478_s16 = int_to_ptr.vmem [resolvable:$true] %s5477_s16  ;;  %s5480_s18 = int_to_ptr.hbm [resolvable:$true] %s5479_s18 }
  0x32   :  { %v5881_v8 = vor.u32 %v8292_v6, %v5880_v5  ;;  %v6008_v9 = vld [vmem:[#allocation5 + $0x3e0] sm:$0xf]  ;;  %v8324_v10 = vld [vmem:[#allocation5 + $0x3ec] sm:$0xf0]  ;;  %1774 = vmatpush.bf16.msra.mxu0 %v5625_v3 }
  0x33   :  { %v5608_v11 = vld [vmem:[#allocation5 + $0xc0] sm:$0xf]  ;;  %v6009_v12 = vor.u32 %v8324_v10, %v6008_v9  ;;  %v8224_v13 = vld [vmem:[#allocation5 + $0xcc] sm:$0xf0]  ;;  %1787 = vmatpush.bf16.msra.mxu1 %v5753_v7 }
  0x34   :  { %v5736_v14 = vld [vmem:[#allocation5 + $0x1c0] sm:$0xf]  ;;  %v8256_v15 = vld [vmem:[#allocation5 + $0x1cc] sm:$0xf0]  ;;  %1800 = vmatpush.bf16.msra.mxu2 %v5881_v8  ;;  %v5609_v16 = vor.u32 %v8224_v13, %v5608_v11 }
  0x35   :  { %v5737_v17 = vor.u32 %v8256_v15, %v5736_v14  ;;  %v5864_v18 = vld [vmem:[#allocation5 + $0x2c0] sm:$0xf]  ;;  %v8288_v19 = vld [vmem:[#allocation5 + $0x2cc] sm:$0xf0]  ;;  %1813 = vmatpush.bf16.msra.mxu3 %v6009_v12 }
  0x36   :  { %v5992_v20 = vld [vmem:[#allocation5 + $0x3c0] sm:$0xf]  ;;  %v5865_v21 = vor.u32 %v8288_v19, %v5864_v18  ;;  %v8320_v22 = vld [vmem:[#allocation5 + $0x3cc] sm:$0xf0]  ;;  %1775 = vmatpush.bf16.msra.mxu0 %v5609_v16 }
  0x37   :  { %v5592_v23 = vld [vmem:[#allocation5 + $0xa0] sm:$0xf]  ;;  %v8220_v24 = vld [vmem:[#allocation5 + $0xac] sm:$0xf0]  ;;  %v5993_v25 = vor.u32 %v8320_v22, %v5992_v20  ;;  %1788 = vmatpush.bf16.msra.mxu1 %v5737_v17 }
  0x38   :  { %v5720_v26 = vld [vmem:[#allocation5 + $0x1a0] sm:$0xf]  ;;  %v8252_v27 = vld [vmem:[#allocation5 + $0x1ac] sm:$0xf0]  ;;  %v5593_v29 = vor.u32 %v8220_v24, %v5592_v23  ;;  %1801 = vmatpush.bf16.msra.mxu2 %v5865_v21 }
  0x39   :  { %v5848_v28 = vld [vmem:[#allocation5 + $0x2a0] sm:$0xf]  ;;  %v8284_v30 = vld [vmem:[#allocation5 + $0x2ac] sm:$0xf0]  ;;  %v5721_v33 = vor.u32 %v8252_v27, %v5720_v26  ;;  %1814 = vmatpush.bf16.msra.mxu3 %v5993_v25 }
  0x3a   :  { %v5976_v31 = vld [vmem:[#allocation5 + $0x3a0] sm:$0xf]  ;;  %v8316_v32 = vld [vmem:[#allocation5 + $0x3ac] sm:$0xf0]  ;;  %v5849_v34 = vor.u32 %v8284_v30, %v5848_v28  ;;  %1776 = vmatpush.bf16.msra.mxu0 %v5593_v29 }
  0x3b   :  { %v5576_v35 = vld [vmem:[#allocation5 + $0x80] sm:$0xf]  ;;  %v8216_v36 = vld [vmem:[#allocation5 + $0x8c] sm:$0xf0]  ;;  %v5977_v38 = vor.u32 %v8316_v32, %v5976_v31  ;;  %1789 = vmatpush.bf16.msra.mxu1 %v5721_v33 }
  0x3c   :  { %v5704_v37 = vld [vmem:[#allocation5 + $0x180] sm:$0xf]  ;;  %v8248_v39 = vld [vmem:[#allocation5 + $0x18c] sm:$0xf0]  ;;  %v5577_v44 = vor.u32 %v8216_v36, %v5576_v35  ;;  %1802 = vmatpush.bf16.msra.mxu2 %v5849_v34 }
  0x3d   :  { %v5832_v40 = vld [vmem:[#allocation5 + $0x280] sm:$0xf]  ;;  %v8280_v41 = vld [vmem:[#allocation5 + $0x28c] sm:$0xf0]  ;;  %v5705_v45 = vor.u32 %v8248_v39, %v5704_v37  ;;  %1815 = vmatpush.bf16.msra.mxu3 %v5977_v38 }
  0x3e   :  { %v5960_v42 = vld [vmem:[#allocation5 + $0x380] sm:$0xf]  ;;  %v8312_v43 = vld [vmem:[#allocation5 + $0x38c] sm:$0xf0]  ;;  %v5833_v46 = vor.u32 %v8280_v41, %v5832_v40  ;;  %1777 = vmatpush.bf16.msra.mxu0 %v5577_v44 }
  0x3f   :  { %v5560_v47 = vld [vmem:[#allocation5 + $0x60] sm:$0xf]  ;;  %v8212_v48 = vld [vmem:[#allocation5 + $0x6c] sm:$0xf0]  ;;  %v5961_v50 = vor.u32 %v8312_v43, %v5960_v42  ;;  %1790 = vmatpush.bf16.msra.mxu1 %v5705_v45 }
  0x40   :  { %v5688_v49 = vld [vmem:[#allocation5 + $0x160] sm:$0xf]  ;;  %v8244_v51 = vld [vmem:[#allocation5 + $0x16c] sm:$0xf0]  ;;  %v5561_v56 = vor.u32 %v8212_v48, %v5560_v47  ;;  %1803 = vmatpush.bf16.msra.mxu2 %v5833_v46 }
  0x41   :  { %v5816_v52 = vld [vmem:[#allocation5 + $0x260] sm:$0xf]  ;;  %v8276_v53 = vld [vmem:[#allocation5 + $0x26c] sm:$0xf0]  ;;  %v5689_v57 = vor.u32 %v8244_v51, %v5688_v49  ;;  %1816 = vmatpush.bf16.msra.mxu3 %v5961_v50 }
  0x42   :  { %v5944_v54 = vld [vmem:[#allocation5 + $0x360] sm:$0xf]  ;;  %v8308_v55 = vld [vmem:[#allocation5 + $0x36c] sm:$0xf0]  ;;  %v5817_v58 = vor.u32 %v8276_v53, %v5816_v52  ;;  %1778 = vmatpush.bf16.msra.mxu0 %v5561_v56 }
  0x43   :  { %v5544_v59 = vld [vmem:[#allocation5 + $0x40] sm:$0xf]  ;;  %v8208_v60 = vld [vmem:[#allocation5 + $0x4c] sm:$0xf0]  ;;  %v5945_v62 = vor.u32 %v8308_v55, %v5944_v54  ;;  %1791 = vmatpush.bf16.msra.mxu1 %v5689_v57 }
  0x44   :  { %v5672_v61 = vld [vmem:[#allocation5 + $0x140] sm:$0xf]  ;;  %v8240_v63 = vld [vmem:[#allocation5 + $0x14c] sm:$0xf0]  ;;  %v5545_v4 = vor.u32 %v8208_v60, %v5544_v59  ;;  %1804 = vmatpush.bf16.msra.mxu2 %v5817_v58 }
  0x45   :  { %v5800_v0 = vld [vmem:[#allocation5 + $0x240] sm:$0xf]  ;;  %v8272_v1 = vld [vmem:[#allocation5 + $0x24c] sm:$0xf0]  ;;  %v5673_v5 = vor.u32 %v8240_v63, %v5672_v61  ;;  %1817 = vmatpush.bf16.msra.mxu3 %v5945_v62 }
  0x46   :  { %v5928_v2 = vld [vmem:[#allocation5 + $0x340] sm:$0xf]  ;;  %v8304_v3 = vld [vmem:[#allocation5 + $0x34c] sm:$0xf0]  ;;  %v5801_v6 = vor.u32 %v8272_v1, %v5800_v0  ;;  %1779 = vmatpush.bf16.msra.mxu0 %v5545_v4 }
  0x47   :  { %v5528_v7 = vld [vmem:[#allocation5 + $0x20] sm:$0xf]  ;;  %v8204_v8 = vld [vmem:[#allocation5 + $0x2c] sm:$0xf0]  ;;  %v5929_v10 = vor.u32 %v8304_v3, %v5928_v2  ;;  %1792 = vmatpush.bf16.msra.mxu1 %v5673_v5  ;;  %v197_v2 = vld [vmem:[#allocation2 + $0x8] sm:$0xff] }
  0x48   :  { %v5656_v9 = vld [vmem:[#allocation5 + $0x120] sm:$0xf]  ;;  %v8236_v11 = vld [vmem:[#allocation5 + $0x12c] sm:$0xf0]  ;;  %v5529_v16 = vor.u32 %v8204_v8, %v5528_v7  ;;  %1805 = vmatpush.bf16.msra.mxu2 %v5801_v6  ;;  %v472_v8 = vunpack.c.l.b16 %v197_v2 }
  0x49   :  { %v5784_v12 = vld [vmem:[#allocation5 + $0x220] sm:$0xf]  ;;  %v8268_v13 = vld [vmem:[#allocation5 + $0x22c] sm:$0xf0]  ;;  %v5657_v19 = vor.u32 %v8236_v11, %v5656_v9  ;;  %1818 = vmatpush.bf16.msra.mxu3 %v5929_v10  ;;  %v473_v10 = vunpack.c.h.b16 %v197_v2 }
  0x4a   :  { %v5912_v14 = vld [vmem:[#allocation5 + $0x320] sm:$0xf]  ;;  %v8300_v15 = vld [vmem:[#allocation5 + $0x32c] sm:$0xf0]  ;;  %v5785_v20 = vor.u32 %v8268_v13, %v5784_v12  ;;  %1780 = vmatpush.bf16.msra.mxu0 %v5529_v16 }
  0x4b   :  { %v5512_v17 = vld [vmem:[#allocation5] sm:$0xf]  ;;  %v8200_v18 = vld [vmem:[#allocation5 + $0xc] sm:$0xf0]  ;;  %v5913_v24 = vor.u32 %v8300_v15, %v5912_v14  ;;  %1793 = vmatpush.bf16.msra.mxu1 %v5657_v19 }
  0x4c   :  { %v5640_v21 = vld [vmem:[#allocation5 + $0x100] sm:$0xf]  ;;  %v8232_v22 = vld [vmem:[#allocation5 + $0x10c] sm:$0xf0]  ;;  %v5513_v31 = vor.u32 %v8200_v18, %v5512_v17  ;;  %1806 = vmatpush.bf16.msra.mxu2 %v5785_v20  ;;  %v9321_v18 = vpack.c.b16 %v472_v8, %v472_v8  ;;  %v9325_v20 = vpack.c.b16 %v473_v10, %v473_v10  ;;  %v8226_v8 = vld [vmem:[#allocation5 + $0xe4] sm:$0xf] }
  0x4d   :  { %v5768_v23 = vld [vmem:[#allocation5 + $0x200] sm:$0xf]  ;;  %v8264_v25 = vld [vmem:[#allocation5 + $0x20c] sm:$0xf0]  ;;  %v5641_v35 = vor.u32 %v8232_v22, %v5640_v21  ;;  %1819 = vmatpush.bf16.msra.mxu3 %v5913_v24  ;;  %v8258_v10 = vld [vmem:[#allocation5 + $0x1e4] sm:$0xf] }
  0x4e   :  { %v5896_v26 = vld [vmem:[#allocation5 + $0x300] sm:$0xf]  ;;  %v8296_v27 = vld [vmem:[#allocation5 + $0x30c] sm:$0xf0]  ;;  %v5769_v36 = vor.u32 %v8264_v25, %v5768_v23  ;;  %1781 = vmatpush.bf16.msra.mxu0 %v5513_v31 }
  0x4f   :  { %v6136_v28 = vld [vmem:[#allocation5 + $0x4e0] sm:$0xf]  ;;  %v8356_v29 = vld [vmem:[#allocation5 + $0x4ec] sm:$0xf0]  ;;  %v5897_v39 = vor.u32 %v8296_v27, %v5896_v26  ;;  %1794 = vmatpush.bf16.msra.mxu1 %v5641_v35 }
  0x50   :  { %v6264_v30 = vld [vmem:[#allocation5 + $0x5e0] sm:$0xf]  ;;  %v8388_v32 = vld [vmem:[#allocation5 + $0x5ec] sm:$0xf0]  ;;  %v6137_v40 = vor.u32 %v8356_v29, %v6136_v28  ;;  %1807 = vmatpush.bf16.msra.mxu2 %v5769_v36 }
  0x51   :  { %v6392_v33 = vld [vmem:[#allocation5 + $0x6e0] sm:$0xf]  ;;  %v8420_v34 = vld [vmem:[#allocation5 + $0x6ec] sm:$0xf0]  ;;  %v6265_v41 = vor.u32 %v8388_v32, %v6264_v30  ;;  %1820 = vmatpush.bf16.msra.mxu3 %v5897_v39 }
  0x52   :  { %v6520_v37 = vld [vmem:[#allocation5 + $0x7e0] sm:$0xf]  ;;  %v8452_v38 = vld [vmem:[#allocation5 + $0x7ec] sm:$0xf0]  ;;  %v6393_v42 = vor.u32 %v8420_v34, %v6392_v33  ;;  %1826 = vmatpush.bf16.msrb.mxu0 %v6137_v40 }
  0x53   :  { %v6120_v43 = vld [vmem:[#allocation5 + $0x4c0] sm:$0xf]  ;;  %v8352_v44 = vld [vmem:[#allocation5 + $0x4cc] sm:$0xf0]  ;;  %v6521_v46 = vor.u32 %v8452_v38, %v6520_v37  ;;  %1839 = vmatpush.bf16.msrb.mxu1 %v6265_v41  ;;  %1808 = vmatmul.bf16.vlgmr.msra.gmra.mxu2 %v9321_v18 }
  0x54   :  { %v6248_v45 = vld [vmem:[#allocation5 + $0x5c0] sm:$0xf]  ;;  %v8384_v47 = vld [vmem:[#allocation5 + $0x5cc] sm:$0xf0]  ;;  %v6121_v52 = vor.u32 %v8352_v44, %v6120_v43  ;;  %1852 = vmatpush.bf16.msrb.mxu2 %v6393_v42  ;;  %1821 = vmatmul.bf16.vlgmr.msra.gmra.mxu3 %v9325_v20 }
  0x55   :  { %v6376_v48 = vld [vmem:[#allocation5 + $0x6c0] sm:$0xf]  ;;  %v8416_v49 = vld [vmem:[#allocation5 + $0x6cc] sm:$0xf0]  ;;  %v6249_v54 = vor.u32 %v8384_v47, %v6248_v45  ;;  %1865 = vmatpush.bf16.msrb.mxu3 %v6521_v46 }
  0x56   :  { %v6504_v50 = vld [vmem:[#allocation5 + $0x7c0] sm:$0xf]  ;;  %v8448_v51 = vld [vmem:[#allocation5 + $0x7cc] sm:$0xf0]  ;;  %v6377_v55 = vor.u32 %v8416_v49, %v6376_v48  ;;  %1827 = vmatpush.bf16.msrb.mxu0 %v6121_v52 }
  0x57   :  { %v6104_v53 = vld [vmem:[#allocation5 + $0x4a0] sm:$0xf]  ;;  %v8348_v56 = vld [vmem:[#allocation5 + $0x4ac] sm:$0xf0]  ;;  %v6505_v59 = vor.u32 %v8448_v51, %v6504_v50  ;;  %1840 = vmatpush.bf16.msrb.mxu1 %v6249_v54 }
  0x58   :  { %v6232_v57 = vld [vmem:[#allocation5 + $0x5a0] sm:$0xf]  ;;  %v8380_v58 = vld [vmem:[#allocation5 + $0x5ac] sm:$0xf0]  ;;  %v6105_v0 = vor.u32 %v8348_v56, %v6104_v53  ;;  %1853 = vmatpush.bf16.msrb.mxu2 %v6377_v55 }
  0x59   :  { %v6360_v60 = vld [vmem:[#allocation5 + $0x6a0] sm:$0xf]  ;;  %v8412_v61 = vld [vmem:[#allocation5 + $0x6ac] sm:$0xf0]  ;;  %v6233_v1 = vor.u32 %v8380_v58, %v6232_v57  ;;  %1866 = vmatpush.bf16.msrb.mxu3 %v6505_v59 }
  0x5a   :  { %v6488_v62 = vld [vmem:[#allocation5 + $0x7a0] sm:$0xf]  ;;  %v8444_v63 = vld [vmem:[#allocation5 + $0x7ac] sm:$0xf0]  ;;  %v6361_v4 = vor.u32 %v8412_v61, %v6360_v60  ;;  %1828 = vmatpush.bf16.msrb.mxu0 %v6105_v0 }
  0x5b   :  { %v196_v3 = vld [vmem:[#allocation2] sm:$0xff]  ;;  %v8344_v6 = vld [vmem:[#allocation5 + $0x48c] sm:$0xf0]  ;;  %v6489_v11 = vor.u32 %v8444_v63, %v6488_v62  ;;  %1841 = vmatpush.bf16.msrb.mxu1 %v6233_v1 }
  0x5c   :  { %v6088_v5 = vld [vmem:[#allocation5 + $0x480] sm:$0xf]  ;;  %v470_v9 = vunpack.c.l.b16 %v196_v3  ;;  %v8376_v12 = vld [vmem:[#allocation5 + $0x58c] sm:$0xf0]  ;;  %v471_v15 = vunpack.c.h.b16 %v196_v3  ;;  %1854 = vmatpush.bf16.msrb.mxu2 %v6361_v4  ;;  %v199_v3 = vld [vmem:[#allocation2 + $0x18] sm:$0xff] }
  0x5d   :  { %v6216_v7 = vld [vmem:[#allocation5 + $0x580] sm:$0xf]  ;;  %v8408_v14 = vld [vmem:[#allocation5 + $0x68c] sm:$0xf0]  ;;  %v6089_v21 = vor.u32 %v8344_v6, %v6088_v5  ;;  %1867 = vmatpush.bf16.msrb.mxu3 %v6489_v11 }
  0x5e   :  { %v6344_v13 = vld [vmem:[#allocation5 + $0x680] sm:$0xf]  ;;  %v8440_v17 = vld [vmem:[#allocation5 + $0x78c] sm:$0xf0]  ;;  %v9323_v19 = vpack.c.b16 %v470_v9, %v470_v9  ;;  %v9327_v22 = vpack.c.b16 %v471_v15, %v471_v15  ;;  %v6217_v23 = vor.u32 %v8376_v12, %v6216_v7  ;;  %v5626_v9 = vld [vmem:[#allocation5 + $0xf0] sm:$0xf0]  ;;  %v476_v15 = vunpack.c.l.b16 %v199_v3 }
  0x5f   :  { %v6472_v16 = vld [vmem:[#allocation5 + $0x780] sm:$0xf]  ;;  %v6345_v24 = vor.u32 %v8408_v14, %v6344_v13  ;;  %v8340_v26 = vld [vmem:[#allocation5 + $0x46c] sm:$0xf0]  ;;  %1829 = vmatpush.bf16.msrb.mxu0 %v6089_v21  ;;  %v5754_v12 = vld [vmem:[#allocation5 + $0x1f0] sm:$0xf0] }
  0x60   :  { %v6072_v25 = vld [vmem:[#allocation5 + $0x460] sm:$0xf]  ;;  %v6473_v28 = vor.u32 %v8440_v17, %v6472_v16  ;;  %v8372_v29 = vld [vmem:[#allocation5 + $0x56c] sm:$0xf0]  ;;  %1782 = vmatmul.bf16.vlgmr.msra.gmra.mxu0 %v9323_v19  ;;  %1795 = vmatmul.bf16.vlgmr.msra.gmra.mxu1 %v9327_v22  ;;  %v8290_v13 = vld [vmem:[#allocation5 + $0x2e4] sm:$0xf] }
  0x61   :  { %v6200_v27 = vld [vmem:[#allocation5 + $0x560] sm:$0xf]  ;;  %v8404_v31 = vld [vmem:[#allocation5 + $0x66c] sm:$0xf0]  ;;  %v6073_v34 = vor.u32 %v8340_v26, %v6072_v25  ;;  %1842 = vmatpush.bf16.msrb.mxu1 %v6217_v23  ;;  %1855 = vmatpush.bf16.msrb.mxu2 %v6345_v24  ;;  %v5882_v14 = vld [vmem:[#allocation5 + $0x2f0] sm:$0xf0]  ;;  %v477_v25 = vunpack.c.h.b16 %v199_v3 }
  0x62   :  { %v6328_v30 = vld [vmem:[#allocation5 + $0x660] sm:$0xf]  ;;  %v8436_v33 = vld [vmem:[#allocation5 + $0x76c] sm:$0xf0]  ;;  %v6201_v35 = vor.u32 %v8372_v29, %v6200_v27  ;;  %1868 = vmatpush.bf16.msrb.mxu3 %v6473_v28  ;;  %v8322_v21 = vld [vmem:[#allocation5 + $0x3e4] sm:$0xf]  ;;  %v5629_v27 = vor.u32 %v8226_v8, %v5626_v9  ;;  %v5757_v29 = vor.u32 %v8258_v10, %v5754_v12 }
  0x63   :  { %v6456_v32 = vld [vmem:[#allocation5 + $0x760] sm:$0xf]  ;;  %v6329_v36 = vor.u32 %v8404_v31, %v6328_v30  ;;  %v8336_v38 = vld [vmem:[#allocation5 + $0x44c] sm:$0xf0]  ;;  %1830 = vmatpush.bf16.msrb.mxu0 %v6073_v34  ;;  %v6010_v23 = vld [vmem:[#allocation5 + $0x3f0] sm:$0xf0]  ;;  %v5885_v30 = vor.u32 %v8290_v13, %v5882_v14 }
  0x64   :  { %v6056_v37 = vld [vmem:[#allocation5 + $0x440] sm:$0xf]  ;;  %v6457_v40 = vor.u32 %v8436_v33, %v6456_v32  ;;  %v8368_v41 = vld [vmem:[#allocation5 + $0x54c] sm:$0xf0]  ;;  %v8222_v31 = vld [vmem:[#allocation5 + $0xc4] sm:$0xf]  ;;  %v6013_v34 = vor.u32 %v8322_v21, %v6010_v23 }
  0x65   :  { %v6184_v39 = vld [vmem:[#allocation5 + $0x540] sm:$0xf]  ;;  %v8400_v43 = vld [vmem:[#allocation5 + $0x64c] sm:$0xf0]  ;;  %v6057_v46 = vor.u32 %v8336_v38, %v6056_v37  ;;  %1843 = vmatpush.bf16.msrb.mxu1 %v6201_v35  ;;  %1856 = vmatpush.bf16.msrb.mxu2 %v6329_v36  ;;  %v5610_v32 = vld [vmem:[#allocation5 + $0xd0] sm:$0xf0]  ;;  %v9333_v38 = vpack.c.b16 %v476_v15, %v476_v15 }
  0x66   :  { %v6312_v42 = vld [vmem:[#allocation5 + $0x640] sm:$0xf]  ;;  %v8432_v45 = vld [vmem:[#allocation5 + $0x74c] sm:$0xf0]  ;;  %v6185_v47 = vor.u32 %v8368_v41, %v6184_v39  ;;  %1869 = vmatpush.bf16.msrb.mxu3 %v6457_v40  ;;  %v8254_v33 = vld [vmem:[#allocation5 + $0x1c4] sm:$0xf] }
  0x67   :  { %v6440_v44 = vld [vmem:[#allocation5 + $0x740] sm:$0xf]  ;;  %v6313_v48 = vor.u32 %v8400_v43, %v6312_v42  ;;  %v8332_v50 = vld [vmem:[#allocation5 + $0x42c] sm:$0xf0]  ;;  %1831 = vmatpush.bf16.msrb.mxu0 %v6057_v46  ;;  %v5738_v35 = vld [vmem:[#allocation5 + $0x1d0] sm:$0xf0]  ;;  %v9337_v42 = vpack.c.b16 %v477_v25, %v477_v25  ;;  %v5613_v43 = vor.u32 %v8222_v31, %v5610_v32 }
  0x68   :  { %v6040_v49 = vld [vmem:[#allocation5 + $0x420] sm:$0xf]  ;;  %v6441_v52 = vor.u32 %v8432_v45, %v6440_v44  ;;  %v8364_v53 = vld [vmem:[#allocation5 + $0x52c] sm:$0xf0]  ;;  %v8286_v36 = vld [vmem:[#allocation5 + $0x2c4] sm:$0xf]  ;;  %v5741_v45 = vor.u32 %v8254_v33, %v5738_v35 }
  0x69   :  { %v6168_v51 = vld [vmem:[#allocation5 + $0x520] sm:$0xf]  ;;  %v8396_v55 = vld [vmem:[#allocation5 + $0x62c] sm:$0xf0]  ;;  %v6041_v59 = vor.u32 %v8332_v50, %v6040_v49  ;;  %1844 = vmatpush.bf16.msrb.mxu1 %v6185_v47  ;;  %1857 = vmatpush.bf16.msrb.mxu2 %v6313_v48  ;;  %v5866_v37 = vld [vmem:[#allocation5 + $0x2d0] sm:$0xf0] }
  0x6a   :  { %v6296_v54 = vld [vmem:[#allocation5 + $0x620] sm:$0xf]  ;;  %v8428_v57 = vld [vmem:[#allocation5 + $0x72c] sm:$0xf0]  ;;  %v6169_v63 = vor.u32 %v8364_v53, %v6168_v51  ;;  %1870 = vmatpush.bf16.msrb.mxu3 %v6441_v52  ;;  %v8318_v39 = vld [vmem:[#allocation5 + $0x3c4] sm:$0xf]  ;;  %v5869_v46 = vor.u32 %v8286_v36, %v5866_v37 }
  0x6b   :  { %v6424_v56 = vld [vmem:[#allocation5 + $0x720] sm:$0xf]  ;;  %v8328_v60 = vld [vmem:[#allocation5 + $0x40c] sm:$0xf0]  ;;  %v6297_v0 = vor.u32 %v8396_v55, %v6296_v54  ;;  %1832 = vmatpush.bf16.msrb.mxu0 %v6041_v59  ;;  %v5994_v40 = vld [vmem:[#allocation5 + $0x3d0] sm:$0xf0] }
  0x6c   :  { %v6024_v58 = vld [vmem:[#allocation5 + $0x400] sm:$0xf]  ;;  %v8360_v62 = vld [vmem:[#allocation5 + $0x50c] sm:$0xf0]  ;;  %v6425_v4 = vor.u32 %v8428_v57, %v6424_v56  ;;  %v8218_v47 = vld [vmem:[#allocation5 + $0xa4] sm:$0xf]  ;;  %v5997_v50 = vor.u32 %v8318_v39, %v5994_v40 }
  0x6d   :  { %v6152_v61 = vld [vmem:[#allocation5 + $0x500] sm:$0xf]  ;;  %v8392_v2 = vld [vmem:[#allocation5 + $0x60c] sm:$0xf0]  ;;  %v6025_v11 = vor.u32 %v8328_v60, %v6024_v58  ;;  %1845 = vmatpush.bf16.msrb.mxu1 %v6169_v63  ;;  %1858 = vmatpush.bf16.msrb.mxu2 %v6297_v0  ;;  %v5594_v48 = vld [vmem:[#allocation5 + $0xb0] sm:$0xf0] }
  0x6e   :  { %v6280_v1 = vld [vmem:[#allocation5 + $0x600] sm:$0xf]  ;;  %v8424_v6 = vld [vmem:[#allocation5 + $0x70c] sm:$0xf0]  ;;  %v6153_v16 = vor.u32 %v8360_v62, %v6152_v61  ;;  %1871 = vmatpush.bf16.msrb.mxu3 %v6425_v4  ;;  %v8250_v49 = vld [vmem:[#allocation5 + $0x1a4] sm:$0xf]  ;;  %v5597_v56 = vor.u32 %v8218_v47, %v5594_v48 }
  0x6f   :  { %v6408_v5 = vld [vmem:[#allocation5 + $0x700] sm:$0xf]  ;;  %v198_v7 = vld [vmem:[#allocation2 + $0x10] sm:$0xff]  ;;  %v6281_v17 = vor.u32 %v8392_v2, %v6280_v1  ;;  %1833 = vmatpush.bf16.msrb.mxu0 %v6025_v11  ;;  %v8282_v52 = vld [vmem:[#allocation5 + $0x2a4] sm:$0xf] }
  0x70   :  { %v474_v24 = vunpack.c.l.b16 %v198_v7  ;;  %v6409_v26 = vor.u32 %v8424_v6, %v6408_v5  ;;  %v475_v28 = vunpack.c.h.b16 %v198_v7  ;;  %v5722_v51 = vld [vmem:[#allocation5 + $0x1b0] sm:$0xf0]  ;;  %v8314_v54 = vld [vmem:[#allocation5 + $0x3a4] sm:$0xf] }
  0x71   :  { %1846 = vmatpush.bf16.msrb.mxu1 %v6153_v16  ;;  %1859 = vmatpush.bf16.msrb.mxu2 %v6281_v17  ;;  %v5850_v53 = vld [vmem:[#allocation5 + $0x2b0] sm:$0xf0]  ;;  %v5725_v57 = vor.u32 %v8250_v49, %v5722_v51  ;;  %v8214_v59 = vld [vmem:[#allocation5 + $0x84] sm:$0xf] }
  0x72   :  { %v9335_v41 = vpack.c.b16 %v474_v24, %v474_v24  ;;  %1872 = vmatpush.bf16.msrb.mxu3 %v6409_v26  ;;  %v9339_v44 = vpack.c.b16 %v475_v28, %v475_v28  ;;  %v5978_v55 = vld [vmem:[#allocation5 + $0x3b0] sm:$0xf0]  ;;  %v5853_v58 = vor.u32 %v8282_v52, %v5850_v53  ;;  %v8246_v61 = vld [vmem:[#allocation5 + $0x184] sm:$0xf] }
  0x73   :  { %1878 = vmatpush.bf16.msra.mxu0 %v5629_v27  ;;  %v5578_v60 = vld [vmem:[#allocation5 + $0x90] sm:$0xf0]  ;;  %v5981_v62 = vor.u32 %v8314_v54, %v5978_v55  ;;  %v8278_v0 = vld [vmem:[#allocation5 + $0x284] sm:$0xf] }
  0x74   :  { %1860 = vmatmul.bf16.vlgmr.msrb.gmra.mxu2 %v9333_v38  ;;  %1834 = vmatmul.bf16.vlgmr.msrb.gmra.mxu0 %v9335_v41  ;;  %v5706_v63 = vld [vmem:[#allocation5 + $0x190] sm:$0xf0]  ;;  %v8310_v2 = vld [vmem:[#allocation5 + $0x384] sm:$0xf]  ;;  %v5581_v4 = vor.u32 %v8214_v59, %v5578_v60 }
  0x75   :  { %1891 = vmatpush.bf16.msra.mxu1 %v5757_v29  ;;  %1904 = vmatpush.bf16.msra.mxu2 %v5885_v30  ;;  %v5834_v1 = vld [vmem:[#allocation5 + $0x290] sm:$0xf0]  ;;  %v5709_v5 = vor.u32 %v8246_v61, %v5706_v63  ;;  %v8210_v7 = vld [vmem:[#allocation5 + $0x64] sm:$0xf] }
  0x76   :  { %1917 = vmatpush.bf16.msra.mxu3 %v6013_v34  ;;  %1847 = vmatmul.bf16.vlgmr.msrb.gmra.mxu1 %v9339_v44  ;;  %v5962_v3 = vld [vmem:[#allocation5 + $0x390] sm:$0xf0]  ;;  %v5837_v6 = vor.u32 %v8278_v0, %v5834_v1  ;;  %v8242_v9 = vld [vmem:[#allocation5 + $0x164] sm:$0xf] }
  0x77   :  { %1873 = vmatmul.bf16.vlgmr.msrb.gmra.mxu3 %v9337_v42  ;;  %1879 = vmatpush.bf16.msra.mxu0 %v5613_v43  ;;  %v5562_v8 = vld [vmem:[#allocation5 + $0x70] sm:$0xf0]  ;;  %v5965_v10 = vor.u32 %v8310_v2, %v5962_v3  ;;  %v8274_v12 = vld [vmem:[#allocation5 + $0x264] sm:$0xf] }
  0x78   :  { %v5690_v11 = vld [vmem:[#allocation5 + $0x170] sm:$0xf0]  ;;  %v8306_v14 = vld [vmem:[#allocation5 + $0x364] sm:$0xf]  ;;  %v5565_v16 = vor.u32 %v8210_v7, %v5562_v8 }
  0x79   :  { %1892 = vmatpush.bf16.msra.mxu1 %v5741_v45  ;;  %1905 = vmatpush.bf16.msra.mxu2 %v5869_v46  ;;  %v5818_v13 = vld [vmem:[#allocation5 + $0x270] sm:$0xf0]  ;;  %v5693_v17 = vor.u32 %v8242_v9, %v5690_v11  ;;  %v8206_v23 = vld [vmem:[#allocation5 + $0x44] sm:$0xf] }
  0x7a   :  { %1918 = vmatpush.bf16.msra.mxu3 %v5997_v50  ;;  %v5946_v15 = vld [vmem:[#allocation5 + $0x370] sm:$0xf0]  ;;  %v5821_v21 = vor.u32 %v8274_v12, %v5818_v13  ;;  %v8238_v25 = vld [vmem:[#allocation5 + $0x144] sm:$0xf] }
  0x7b   :  { %1880 = vmatpush.bf16.msra.mxu0 %v5597_v56  ;;  %v5546_v24 = vld [vmem:[#allocation5 + $0x50] sm:$0xf0]  ;;  %v5949_v26 = vor.u32 %v8306_v14, %v5946_v15  ;;  %v8270_v28 = vld [vmem:[#allocation5 + $0x244] sm:$0xf] }
  0x7c   :  { %v5674_v27 = vld [vmem:[#allocation5 + $0x150] sm:$0xf0]  ;;  %v8302_v30 = vld [vmem:[#allocation5 + $0x344] sm:$0xf]  ;;  %v5549_v32 = vor.u32 %v8206_v23, %v5546_v24 }
  0x7d   :  { %1893 = vmatpush.bf16.msra.mxu1 %v5725_v57  ;;  %1906 = vmatpush.bf16.msra.mxu2 %v5853_v58  ;;  %v5802_v29 = vld [vmem:[#allocation5 + $0x250] sm:$0xf0]  ;;  %v5677_v33 = vor.u32 %v8238_v25, %v5674_v27  ;;  %v8202_v35 = vld [vmem:[#allocation5 + $0x24] sm:$0xf] }
  0x7e   :  { %1919 = vmatpush.bf16.msra.mxu3 %v5981_v62  ;;  %v5930_v31 = vld [vmem:[#allocation5 + $0x350] sm:$0xf0]  ;;  %v5805_v34 = vor.u32 %v8270_v28, %v5802_v29  ;;  %v8234_v37 = vld [vmem:[#allocation5 + $0x124] sm:$0xf] }
  0x7f   :  { %1881 = vmatpush.bf16.msra.mxu0 %v5581_v4  ;;  %v5530_v36 = vld [vmem:[#allocation5 + $0x30] sm:$0xf0]  ;;  %v5933_v39 = vor.u32 %v8302_v30, %v5930_v31  ;;  %v8266_v43 = vld [vmem:[#allocation5 + $0x224] sm:$0xf] }
  0x80   :  { %v5658_v40 = vld [vmem:[#allocation5 + $0x130] sm:$0xf0]  ;;  %v8298_v46 = vld [vmem:[#allocation5 + $0x324] sm:$0xf]  ;;  %v5533_v48 = vor.u32 %v8202_v35, %v5530_v36 }
  0x81   :  { %1894 = vmatpush.bf16.msra.mxu1 %v5709_v5  ;;  %1907 = vmatpush.bf16.msra.mxu2 %v5837_v6  ;;  %v5786_v45 = vld [vmem:[#allocation5 + $0x230] sm:$0xf0]  ;;  %v8198_v49 = vld [vmem:[#allocation5 + $0x4] sm:$0xf]  ;;  %v5661_v51 = vor.u32 %v8234_v37, %v5658_v40 }
  0x82   :  { %1920 = vmatpush.bf16.msra.mxu3 %v5965_v10  ;;  %v5914_v47 = vld [vmem:[#allocation5 + $0x330] sm:$0xf0]  ;;  %v5789_v52 = vor.u32 %v8266_v43, %v5786_v45  ;;  %v8230_v53 = vld [vmem:[#allocation5 + $0x104] sm:$0xf] }
  0x83   :  { %1882 = vmatpush.bf16.msra.mxu0 %v5565_v16  ;;  %v5514_v50 = vld [vmem:[#allocation5 + $0x10] sm:$0xf0]  ;;  %v8262_v55 = vld [vmem:[#allocation5 + $0x204] sm:$0xf]  ;;  %v5917_v56 = vor.u32 %v8298_v46, %v5914_v47 }
  0x84   :  { %v5642_v54 = vld [vmem:[#allocation5 + $0x110] sm:$0xf0]  ;;  %v8294_v58 = vld [vmem:[#allocation5 + $0x304] sm:$0xf]  ;;  %v5517_v63 = vor.u32 %v8198_v49, %v5514_v50 }
  0x85   :  { %1895 = vmatpush.bf16.msra.mxu1 %v5693_v17  ;;  %1908 = vmatpush.bf16.msra.mxu2 %v5821_v21  ;;  %v5770_v57 = vld [vmem:[#allocation5 + $0x210] sm:$0xf0]  ;;  %v8354_v60 = vld [vmem:[#allocation5 + $0x4e4] sm:$0xf]  ;;  %v5645_v3 = vor.u32 %v8230_v53, %v5642_v54 }
  0x86   :  { %1921 = vmatpush.bf16.msra.mxu3 %v5949_v26  ;;  %v5898_v59 = vld [vmem:[#allocation5 + $0x310] sm:$0xf0]  ;;  %v8386_v62 = vld [vmem:[#allocation5 + $0x5e4] sm:$0xf]  ;;  %v5773_v4 = vor.u32 %v8262_v55, %v5770_v57 }
  0x87   :  { %1883 = vmatpush.bf16.msra.mxu0 %v5549_v32  ;;  %v6138_v61 = vld [vmem:[#allocation5 + $0x4f0] sm:$0xf0]  ;;  %v8418_v1 = vld [vmem:[#allocation5 + $0x6e4] sm:$0xf]  ;;  %v5901_v7 = vor.u32 %v8294_v58, %v5898_v59 }
  0x88   :  { %v6266_v0 = vld [vmem:[#allocation5 + $0x5f0] sm:$0xf0]  ;;  %v8450_v5 = vld [vmem:[#allocation5 + $0x7e4] sm:$0xf]  ;;  %v6141_v8 = vor.u32 %v8354_v60, %v6138_v61 }
  0x89   :  { %1896 = vmatpush.bf16.msra.mxu1 %v5677_v33  ;;  %1909 = vmatpush.bf16.msra.mxu2 %v5805_v34  ;;  %v6394_v2 = vld [vmem:[#allocation5 + $0x6f0] sm:$0xf0]  ;;  %v6269_v9 = vor.u32 %v8386_v62, %v6266_v0  ;;  %v8350_v11 = vld [vmem:[#allocation5 + $0x4c4] sm:$0xf] }
  0x8a   :  { %1922 = vmatpush.bf16.msra.mxu3 %v5933_v39  ;;  %v6522_v6 = vld [vmem:[#allocation5 + $0x7f0] sm:$0xf0]  ;;  %v6397_v10 = vor.u32 %v8418_v1, %v6394_v2  ;;  %v8382_v13 = vld [vmem:[#allocation5 + $0x5c4] sm:$0xf] }
  0x8b   :  { %1884 = vmatpush.bf16.msra.mxu0 %v5533_v48  ;;  %v6122_v12 = vld [vmem:[#allocation5 + $0x4d0] sm:$0xf0]  ;;  %v6525_v14 = vor.u32 %v8450_v5, %v6522_v6  ;;  %v8414_v16 = vld [vmem:[#allocation5 + $0x6c4] sm:$0xf] }
  0x8c   :  { %v6250_v15 = vld [vmem:[#allocation5 + $0x5d0] sm:$0xf0]  ;;  %v8446_v21 = vld [vmem:[#allocation5 + $0x7c4] sm:$0xf]  ;;  %v6125_v24 = vor.u32 %v8350_v11, %v6122_v12 }
  0x8d   :  { %1897 = vmatpush.bf16.msra.mxu1 %v5661_v51  ;;  %1910 = vmatpush.bf16.msra.mxu2 %v5789_v52  ;;  %v6378_v17 = vld [vmem:[#allocation5 + $0x6d0] sm:$0xf0]  ;;  %v6253_v25 = vor.u32 %v8382_v13, %v6250_v15  ;;  %v8346_v27 = vld [vmem:[#allocation5 + $0x4a4] sm:$0xf] }
  0x8e   :  { %1923 = vmatpush.bf16.msra.mxu3 %v5917_v56  ;;  %v6506_v23 = vld [vmem:[#allocation5 + $0x7d0] sm:$0xf0]  ;;  %v6381_v26 = vor.u32 %v8414_v16, %v6378_v17  ;;  %v8378_v29 = vld [vmem:[#allocation5 + $0x5a4] sm:$0xf] }
  0x8f   :  { %1885 = vmatpush.bf16.msra.mxu0 %v5517_v63  ;;  %v6106_v28 = vld [vmem:[#allocation5 + $0x4b0] sm:$0xf0]  ;;  %v6509_v30 = vor.u32 %v8446_v21, %v6506_v23  ;;  %v8410_v32 = vld [vmem:[#allocation5 + $0x6a4] sm:$0xf] }
  0x90   :  { %v6234_v31 = vld [vmem:[#allocation5 + $0x5b0] sm:$0xf0]  ;;  %v8442_v34 = vld [vmem:[#allocation5 + $0x7a4] sm:$0xf]  ;;  %v6109_v36 = vor.u32 %v8346_v27, %v6106_v28 }
  0x91   :  { %1898 = vmatpush.bf16.msra.mxu1 %v5645_v3  ;;  %1911 = vmatpush.bf16.msra.mxu2 %v5773_v4  ;;  %v6362_v33 = vld [vmem:[#allocation5 + $0x6b0] sm:$0xf0]  ;;  %v6237_v37 = vor.u32 %v8378_v29, %v6234_v31  ;;  %v8342_v40 = vld [vmem:[#allocation5 + $0x484] sm:$0xf] }
  0x92   :  { %1924 = vmatpush.bf16.msra.mxu3 %v5901_v7  ;;  %v6490_v35 = vld [vmem:[#allocation5 + $0x7b0] sm:$0xf0]  ;;  %1886 = vmatmul.bf16.vlgmr.msra.gmra.mxu0 %v9323_v19  ;;  %v6365_v39 = vor.u32 %v8410_v32, %v6362_v33  ;;  %v8374_v45 = vld [vmem:[#allocation5 + $0x584] sm:$0xf] }
  0x93   :  { %1930 = vmatpush.bf16.msrb.mxu0 %v6141_v8  ;;  %v6090_v43 = vld [vmem:[#allocation5 + $0x490] sm:$0xf0]  ;;  %v6493_v46 = vor.u32 %v8442_v34, %v6490_v35  ;;  %v8406_v48 = vld [vmem:[#allocation5 + $0x684] sm:$0xf] }
  0x94   :  { %1912 = vmatmul.bf16.vlgmr.msra.gmra.mxu2 %v9321_v18  ;;  %1899 = vmatmul.bf16.vlgmr.msra.gmra.mxu1 %v9327_v22  ;;  %v6218_v47 = vld [vmem:[#allocation5 + $0x590] sm:$0xf0]  ;;  %v8438_v50 = vld [vmem:[#allocation5 + $0x784] sm:$0xf]  ;;  %v6093_v52 = vor.u32 %v8342_v40, %v6090_v43  ;;  %v5632_v43 = vld [vmem:[#allocation5 + $0xe8] sm:$0xf] }
  0x95   :  { %1943 = vmatpush.bf16.msrb.mxu1 %v6269_v9  ;;  %1956 = vmatpush.bf16.msrb.mxu2 %v6397_v10  ;;  %v6346_v49 = vld [vmem:[#allocation5 + $0x690] sm:$0xf0]  ;;  %v6221_v53 = vor.u32 %v8374_v45, %v6218_v47  ;;  %v8338_v55 = vld [vmem:[#allocation5 + $0x464] sm:$0xf]  ;;  %v8229_v45 = vld [vmem:[#allocation5 + $0xf4] sm:$0xf0] }
  0x96   :  { %1969 = vmatpush.bf16.msrb.mxu3 %v6525_v14  ;;  %v6474_v51 = vld [vmem:[#allocation5 + $0x790] sm:$0xf0]  ;;  %v6349_v54 = vor.u32 %v8406_v48, %v6346_v49  ;;  %v8370_v57 = vld [vmem:[#allocation5 + $0x564] sm:$0xf]  ;;  %v8261_v48 = vld [vmem:[#allocation5 + $0x1f4] sm:$0xf0] }
  0x97   :  { %1925 = vmatmul.bf16.vlgmr.msra.gmra.mxu3 %v9325_v20  ;;  %1931 = vmatpush.bf16.msrb.mxu0 %v6125_v24  ;;  %v6074_v56 = vld [vmem:[#allocation5 + $0x470] sm:$0xf0]  ;;  %v6477_v58 = vor.u32 %v8438_v50, %v6474_v51  ;;  %v8402_v60 = vld [vmem:[#allocation5 + $0x664] sm:$0xf]  ;;  %v5888_v49 = vld [vmem:[#allocation5 + $0x2e8] sm:$0xf] }
  0x98   :  { %v6202_v59 = vld [vmem:[#allocation5 + $0x570] sm:$0xf0]  ;;  %v8434_v62 = vld [vmem:[#allocation5 + $0x764] sm:$0xf]  ;;  %v6077_v0 = vor.u32 %v8338_v55, %v6074_v56  ;;  %v8293_v50 = vld [vmem:[#allocation5 + $0x2f4] sm:$0xf0]  ;;  %v5633_v56 = vor.u32 %v8229_v45, %v5632_v43 }
  0x99   :  { %1944 = vmatpush.bf16.msrb.mxu1 %v6253_v25  ;;  %1957 = vmatpush.bf16.msrb.mxu2 %v6381_v26  ;;  %v6330_v61 = vld [vmem:[#allocation5 + $0x670] sm:$0xf0]  ;;  %v6205_v1 = vor.u32 %v8370_v57, %v6202_v59  ;;  %v8334_v3 = vld [vmem:[#allocation5 + $0x444] sm:$0xf]  ;;  %v5616_v59 = vld [vmem:[#allocation5 + $0xc8] sm:$0xf] }
  0x9a   :  { %1970 = vmatpush.bf16.msrb.mxu3 %v6509_v30  ;;  %v6458_v63 = vld [vmem:[#allocation5 + $0x770] sm:$0xf0]  ;;  %v6333_v2 = vor.u32 %v8402_v60, %v6330_v61  ;;  %v8366_v5 = vld [vmem:[#allocation5 + $0x544] sm:$0xf]  ;;  %v8225_v60 = vld [vmem:[#allocation5 + $0xd4] sm:$0xf0] }
  0x9b   :  { %1932 = vmatpush.bf16.msrb.mxu0 %v6109_v36  ;;  %v6058_v4 = vld [vmem:[#allocation5 + $0x450] sm:$0xf0]  ;;  %v6461_v6 = vor.u32 %v8434_v62, %v6458_v63  ;;  %v8398_v8 = vld [vmem:[#allocation5 + $0x644] sm:$0xf]  ;;  %v5744_v61 = vld [vmem:[#allocation5 + $0x1c8] sm:$0xf] }
  0x9c   :  { %v6186_v7 = vld [vmem:[#allocation5 + $0x550] sm:$0xf0]  ;;  %v8430_v10 = vld [vmem:[#allocation5 + $0x744] sm:$0xf]  ;;  %v6061_v12 = vor.u32 %v8334_v3, %v6058_v4  ;;  %v8257_v63 = vld [vmem:[#allocation5 + $0x1d4] sm:$0xf0]  ;;  %v5617_v4 = vor.u32 %v8225_v60, %v5616_v59 }
  0x9d   :  { %1945 = vmatpush.bf16.msrb.mxu1 %v6237_v37  ;;  %1958 = vmatpush.bf16.msrb.mxu2 %v6365_v39  ;;  %v6314_v9 = vld [vmem:[#allocation5 + $0x650] sm:$0xf0]  ;;  %v6189_v13 = vor.u32 %v8366_v5, %v6186_v7  ;;  %v8330_v15 = vld [vmem:[#allocation5 + $0x424] sm:$0xf]  ;;  %v8321_v3 = vld [vmem:[#allocation5 + $0x3d4] sm:$0xf0]  ;;  %v5745_v5 = vor.u32 %v8257_v63, %v5744_v61 }
  0x9e   :  { %1971 = vmatpush.bf16.msrb.mxu3 %v6493_v46  ;;  %v6442_v11 = vld [vmem:[#allocation5 + $0x750] sm:$0xf0]  ;;  %v6317_v14 = vor.u32 %v8398_v8, %v6314_v9  ;;  %v8362_v17 = vld [vmem:[#allocation5 + $0x524] sm:$0xf]  ;;  %v5760_v46 = vld [vmem:[#allocation5 + $0x1e8] sm:$0xf] }
  0x9f   :  { %1933 = vmatpush.bf16.msrb.mxu0 %v6093_v52  ;;  %v6042_v16 = vld [vmem:[#allocation5 + $0x430] sm:$0xf0]  ;;  %v6445_v21 = vor.u32 %v8430_v10, %v6442_v11  ;;  %v8394_v24 = vld [vmem:[#allocation5 + $0x624] sm:$0xf]  ;;  %v5761_v57 = vor.u32 %v8261_v48, %v5760_v46  ;;  %v5600_v7 = vld [vmem:[#allocation5 + $0xa8] sm:$0xf] }
  0xa0   :  { %v6170_v23 = vld [vmem:[#allocation5 + $0x530] sm:$0xf0]  ;;  %v8426_v26 = vld [vmem:[#allocation5 + $0x724] sm:$0xf]  ;;  %v6045_v28 = vor.u32 %v8330_v15, %v6042_v16  ;;  %v8221_v8 = vld [vmem:[#allocation5 + $0xb4] sm:$0xf0] }
  0xa1   :  { %1946 = vmatpush.bf16.msrb.mxu1 %v6221_v53  ;;  %1959 = vmatpush.bf16.msrb.mxu2 %v6349_v54  ;;  %v6298_v25 = vld [vmem:[#allocation5 + $0x630] sm:$0xf0]  ;;  %v8326_v29 = vld [vmem:[#allocation5 + $0x404] sm:$0xf]  ;;  %v6173_v31 = vor.u32 %v8362_v17, %v6170_v23  ;;  %v6016_v53 = vld [vmem:[#allocation5 + $0x3e8] sm:$0xf]  ;;  %v5601_v16 = vor.u32 %v8221_v8, %v5600_v7 }
  0xa2   :  { %1972 = vmatpush.bf16.msrb.mxu3 %v6477_v58  ;;  %v6426_v27 = vld [vmem:[#allocation5 + $0x730] sm:$0xf0]  ;;  %v6301_v32 = vor.u32 %v8394_v24, %v6298_v25  ;;  %v8358_v33 = vld [vmem:[#allocation5 + $0x504] sm:$0xf]  ;;  %v8325_v54 = vld [vmem:[#allocation5 + $0x3f4] sm:$0xf0]  ;;  %v5889_v58 = vor.u32 %v8293_v50, %v5888_v49 }
  0xa3   :  { %1934 = vmatpush.bf16.msrb.mxu0 %v6077_v0  ;;  %v6026_v30 = vld [vmem:[#allocation5 + $0x410] sm:$0xf0]  ;;  %v8390_v35 = vld [vmem:[#allocation5 + $0x604] sm:$0xf]  ;;  %v6429_v36 = vor.u32 %v8426_v26, %v6426_v27  ;;  %v6017_v62 = vor.u32 %v8325_v54, %v6016_v53  ;;  %v5872_v0 = vld [vmem:[#allocation5 + $0x2c8] sm:$0xf] }
  0xa4   :  { %v6154_v34 = vld [vmem:[#allocation5 + $0x510] sm:$0xf0]  ;;  %v8422_v39 = vld [vmem:[#allocation5 + $0x704] sm:$0xf]  ;;  %v6029_v47 = vor.u32 %v8326_v29, %v6026_v30  ;;  %v5728_v9 = vld [vmem:[#allocation5 + $0x1a8] sm:$0xf] }
  0xa5   :  { %1947 = vmatpush.bf16.msrb.mxu1 %v6205_v1  ;;  %1960 = vmatpush.bf16.msrb.mxu2 %v6333_v2  ;;  %v6282_v37 = vld [vmem:[#allocation5 + $0x610] sm:$0xf0]  ;;  %v6157_v51 = vor.u32 %v8358_v33, %v6154_v34  ;;  %v8289_v1 = vld [vmem:[#allocation5 + $0x2d4] sm:$0xf0]  ;;  %v6000_v2 = vld [vmem:[#allocation5 + $0x3c8] sm:$0xf] }
  0xa6   :  { %1973 = vmatpush.bf16.msrb.mxu3 %v6461_v6  ;;  %v6410_v40 = vld [vmem:[#allocation5 + $0x710] sm:$0xf0]  ;;  %v6285_v52 = vor.u32 %v8390_v35, %v6282_v37  ;;  %v5873_v6 = vor.u32 %v8289_v1, %v5872_v0  ;;  %v6001_v10 = vor.u32 %v8321_v3, %v6000_v2  ;;  %v8253_v11 = vld [vmem:[#allocation5 + $0x1b4] sm:$0xf0]  ;;  %v5584_v23 = vld [vmem:[#allocation5 + $0x88] sm:$0xf] }
  0xa7   :  { %1935 = vmatpush.bf16.msrb.mxu0 %v6061_v12  ;;  %v6413_v55 = vor.u32 %v8422_v39, %v6410_v40  ;;  %v5856_v12 = vld [vmem:[#allocation5 + $0x2a8] sm:$0xf]  ;;  %v8317_v15 = vld [vmem:[#allocation5 + $0x3b4] sm:$0xf0]  ;;  %v5729_v17 = vor.u32 %v8253_v11, %v5728_v9 }
  0xa8   :  { %v8217_v24 = vld [vmem:[#allocation5 + $0x94] sm:$0xf0]  ;;  %v5712_v25 = vld [vmem:[#allocation5 + $0x188] sm:$0xf] }
  0xa9   :  { %1948 = vmatpush.bf16.msrb.mxu1 %v6189_v13  ;;  %1961 = vmatpush.bf16.msrb.mxu2 %v6317_v14  ;;  %v8285_v13 = vld [vmem:[#allocation5 + $0x2b4] sm:$0xf0]  ;;  %v5984_v14 = vld [vmem:[#allocation5 + $0x3a8] sm:$0xf] }
  0xaa   :  { %1974 = vmatpush.bf16.msrb.mxu3 %v6445_v21  ;;  %v5857_v21 = vor.u32 %v8285_v13, %v5856_v12  ;;  %v5985_v26 = vor.u32 %v8317_v15, %v5984_v14  ;;  %v8249_v27 = vld [vmem:[#allocation5 + $0x194] sm:$0xf0]  ;;  %v5968_v30 = vld [vmem:[#allocation5 + $0x388] sm:$0xf] }
  0xab   :  { %1936 = vmatpush.bf16.msrb.mxu0 %v6045_v28  ;;  %v5840_v28 = vld [vmem:[#allocation5 + $0x288] sm:$0xf]  ;;  %v8281_v29 = vld [vmem:[#allocation5 + $0x294] sm:$0xf0]  ;;  %v5713_v33 = vor.u32 %v8249_v27, %v5712_v25 }
  0xac   :  { %v5841_v34 = vor.u32 %v8281_v29, %v5840_v28  ;;  %v5568_v35 = vld [vmem:[#allocation5 + $0x68] sm:$0xf]  ;;  %v8245_v40 = vld [vmem:[#allocation5 + $0x174] sm:$0xf0] }
  0xad   :  { %1949 = vmatpush.bf16.msrb.mxu1 %v6173_v31  ;;  %1962 = vmatpush.bf16.msrb.mxu2 %v6301_v32  ;;  %v8313_v31 = vld [vmem:[#allocation5 + $0x394] sm:$0xf0]  ;;  %v5585_v32 = vor.u32 %v8217_v24, %v5584_v23  ;;  %v5696_v37 = vld [vmem:[#allocation5 + $0x168] sm:$0xf] }
  0xae   :  { %1975 = vmatpush.bf16.msrb.mxu3 %v6429_v36  ;;  %v8213_v36 = vld [vmem:[#allocation5 + $0x74] sm:$0xf0]  ;;  %v5969_v39 = vor.u32 %v8313_v31, %v5968_v30  ;;  %v5824_v43 = vld [vmem:[#allocation5 + $0x268] sm:$0xf]  ;;  %v5697_v49 = vor.u32 %v8245_v40, %v5696_v37 }
  0xaf   :  { %1937 = vmatpush.bf16.msrb.mxu0 %v6029_v47  ;;  %v8277_v45 = vld [vmem:[#allocation5 + $0x274] sm:$0xf0]  ;;  %v5952_v46 = vld [vmem:[#allocation5 + $0x368] sm:$0xf]  ;;  %v5569_v48 = vor.u32 %v8213_v36, %v5568_v35 }
  0xb0   :  { %v8309_v47 = vld [vmem:[#allocation5 + $0x374] sm:$0xf0]  ;;  %v5825_v50 = vor.u32 %v8277_v45, %v5824_v43  ;;  %v5680_v53 = vld [vmem:[#allocation5 + $0x148] sm:$0xf] }
  0xb1   :  { %1950 = vmatpush.bf16.msrb.mxu1 %v6157_v51  ;;  %1963 = vmatpush.bf16.msrb.mxu2 %v6285_v52  ;;  %v5552_v51 = vld [vmem:[#allocation5 + $0x48] sm:$0xf]  ;;  %v8209_v52 = vld [vmem:[#allocation5 + $0x54] sm:$0xf0]  ;;  %v5953_v54 = vor.u32 %v8309_v47, %v5952_v46 }
  0xb2   :  { %1976 = vmatpush.bf16.msrb.mxu3 %v6413_v55  ;;  %1938 = vmatmul.bf16.vlgmr.msrb.gmra.mxu0 %v9335_v41  ;;  %v8241_v55 = vld [vmem:[#allocation5 + $0x154] sm:$0xf0]  ;;  %v5553_v60 = vor.u32 %v8209_v52, %v5552_v51  ;;  %v5536_v63 = vld [vmem:[#allocation5 + $0x28] sm:$0xf] }
  0xb3   :  { %1982 = vmatpush.bf16.msra.mxu0 %v5633_v56  ;;  %v5808_v56 = vld [vmem:[#allocation5 + $0x248] sm:$0xf]  ;;  %v8305_v59 = vld [vmem:[#allocation5 + $0x354] sm:$0xf0]  ;;  %v5681_v61 = vor.u32 %v8241_v55, %v5680_v53 }
  0xb4   :  { %1964 = vmatmul.bf16.vlgmr.msrb.gmra.mxu2 %v9333_v38  ;;  %1951 = vmatmul.bf16.vlgmr.msrb.gmra.mxu1 %v9339_v44  ;;  %v8205_v0 = vld [vmem:[#allocation5 + $0x34] sm:$0xf0]  ;;  %v5664_v1 = vld [vmem:[#allocation5 + $0x128] sm:$0xf] }
  0xb5   :  { %1995 = vmatpush.bf16.msra.mxu1 %v5761_v57  ;;  %2008 = vmatpush.bf16.msra.mxu2 %v5889_v58  ;;  %v8273_v57 = vld [vmem:[#allocation5 + $0x254] sm:$0xf0]  ;;  %v5936_v58 = vld [vmem:[#allocation5 + $0x348] sm:$0xf]  ;;  %v5537_v8 = vor.u32 %v8205_v0, %v5536_v63 }
  0xb6   :  { %2021 = vmatpush.bf16.msra.mxu3 %v6017_v62  ;;  %v5809_v62 = vor.u32 %v8273_v57, %v5808_v56  ;;  %v5937_v2 = vor.u32 %v8305_v59, %v5936_v58  ;;  %v8237_v3 = vld [vmem:[#allocation5 + $0x134] sm:$0xf0]  ;;  %v5520_v9 = vld [vmem:[#allocation5 + $0x8] sm:$0xf] }
  0xb7   :  { %1977 = vmatmul.bf16.vlgmr.msrb.gmra.mxu3 %v9337_v42  ;;  %1983 = vmatpush.bf16.msra.mxu0 %v5617_v4  ;;  %v5792_v4 = vld [vmem:[#allocation5 + $0x228] sm:$0xf]  ;;  %v8301_v7 = vld [vmem:[#allocation5 + $0x334] sm:$0xf0]  ;;  %v5665_v11 = vor.u32 %v8237_v3, %v5664_v1 }
  0xb8   :  { %v5648_v13 = vld [vmem:[#allocation5 + $0x108] sm:$0xf]  ;;  %v8233_v14 = vld [vmem:[#allocation5 + $0x114] sm:$0xf0] }
  0xb9   :  { %1996 = vmatpush.bf16.msra.mxu1 %v5745_v5  ;;  %2009 = vmatpush.bf16.msra.mxu2 %v5873_v6  ;;  %v8269_v5 = vld [vmem:[#allocation5 + $0x234] sm:$0xf0]  ;;  %v5920_v6 = vld [vmem:[#allocation5 + $0x328] sm:$0xf]  ;;  %v5649_v31 = vor.u32 %v8233_v14, %v5648_v13 }
  0xba   :  { %2022 = vmatpush.bf16.msra.mxu3 %v6001_v10  ;;  %v8201_v10 = vld [vmem:[#allocation5 + $0x14] sm:$0xf0]  ;;  %v5793_v12 = vor.u32 %v8269_v5, %v5792_v4  ;;  %v5776_v15 = vld [vmem:[#allocation5 + $0x208] sm:$0xf] }
  0xbb   :  { %1984 = vmatpush.bf16.msra.mxu0 %v5601_v16  ;;  %v5921_v16 = vor.u32 %v8301_v7, %v5920_v6  ;;  %v8297_v23 = vld [vmem:[#allocation5 + $0x314] sm:$0xf0]  ;;  %v6144_v24 = vld [vmem:[#allocation5 + $0x4e8] sm:$0xf]  ;;  %v5521_v27 = vor.u32 %v8201_v10, %v5520_v9 }
  0xbc   :  { %v8357_v25 = vld [vmem:[#allocation5 + $0x4f4] sm:$0xf0]  ;;  %v6400_v29 = vld [vmem:[#allocation5 + $0x6e8] sm:$0xf] }
  0xbd   :  { %1997 = vmatpush.bf16.msra.mxu1 %v5729_v17  ;;  %2010 = vmatpush.bf16.msra.mxu2 %v5857_v21  ;;  %v8265_v17 = vld [vmem:[#allocation5 + $0x214] sm:$0xf0]  ;;  %v5904_v21 = vld [vmem:[#allocation5 + $0x308] sm:$0xf]  ;;  %v6145_v36 = vor.u32 %v8357_v25, %v6144_v24 }
  0xbe   :  { %2023 = vmatpush.bf16.msra.mxu3 %v5985_v26  ;;  %v6272_v26 = vld [vmem:[#allocation5 + $0x5e8] sm:$0xf]  ;;  %v8389_v28 = vld [vmem:[#allocation5 + $0x5f4] sm:$0xf0]  ;;  %v5905_v35 = vor.u32 %v8297_v23, %v5904_v21 }
  0xbf   :  { %1985 = vmatpush.bf16.msra.mxu0 %v5585_v32  ;;  %v8421_v30 = vld [vmem:[#allocation5 + $0x6f4] sm:$0xf0]  ;;  %v5777_v32 = vor.u32 %v8265_v17, %v5776_v15  ;;  %v6273_v37 = vor.u32 %v8389_v28, %v6272_v26  ;;  %v6128_v40 = vld [vmem:[#allocation5 + $0x4c8] sm:$0xf]  ;;  %v9357_v26 = vld [vmem:[#allocation7] sm:$0xf] }
  0xc0   :  { %v8353_v43 = vld [vmem:[#allocation5 + $0x4d4] sm:$0xf0]  ;;  %v6256_v45 = vld [vmem:[#allocation5 + $0x5c8] sm:$0xf] }
  0xc1   :  { %1998 = vmatpush.bf16.msra.mxu1 %v5713_v33  ;;  %2011 = vmatpush.bf16.msra.mxu2 %v5841_v34  ;;  %v6528_v33 = vld [vmem:[#allocation5 + $0x7e8] sm:$0xf]  ;;  %v8453_v34 = vld [vmem:[#allocation5 + $0x7f4] sm:$0xf0]  ;;  %v6129_v52 = vor.u32 %v8353_v43, %v6128_v40 }
  0xc2   :  { %2024 = vmatpush.bf16.msra.mxu3 %v5969_v39  ;;  %v6401_v39 = vor.u32 %v8421_v30, %v6400_v29  ;;  %v6529_v46 = vor.u32 %v8453_v34, %v6528_v33  ;;  %v8385_v47 = vld [vmem:[#allocation5 + $0x5d4] sm:$0xf0]  ;;  %v6112_v55 = vld [vmem:[#allocation5 + $0x4a8] sm:$0xf] }
  0xc3   :  { %1986 = vmatpush.bf16.msra.mxu0 %v5569_v48  ;;  %v6384_v48 = vld [vmem:[#allocation5 + $0x6c8] sm:$0xf]  ;;  %v8449_v51 = vld [vmem:[#allocation5 + $0x7d4] sm:$0xf0]  ;;  %v6257_v53 = vor.u32 %v8385_v47, %v6256_v45 }
  0xc4   :  { %v8349_v56 = vld [vmem:[#allocation5 + $0x4b4] sm:$0xf0]  ;;  %v6240_v57 = vld [vmem:[#allocation5 + $0x5a8] sm:$0xf] }
  0xc5   :  { %1999 = vmatpush.bf16.msra.mxu1 %v5697_v49  ;;  %2012 = vmatpush.bf16.msra.mxu2 %v5825_v50  ;;  %v8417_v49 = vld [vmem:[#allocation5 + $0x6d4] sm:$0xf0]  ;;  %v6512_v50 = vld [vmem:[#allocation5 + $0x7c8] sm:$0xf]  ;;  %v6113_v0 = vor.u32 %v8349_v56, %v6112_v55 }
  0xc6   :  { %2025 = vmatpush.bf16.msra.mxu3 %v5953_v54  ;;  %v6385_v54 = vor.u32 %v8417_v49, %v6384_v48  ;;  %v6513_v58 = vor.u32 %v8449_v51, %v6512_v50  ;;  %v8381_v59 = vld [vmem:[#allocation5 + $0x5b4] sm:$0xf0]  ;;  %v6096_v3 = vld [vmem:[#allocation5 + $0x488] sm:$0xf] }
  0xc7   :  { %1987 = vmatpush.bf16.msra.mxu0 %v5553_v60  ;;  %v6368_v60 = vld [vmem:[#allocation5 + $0x6a8] sm:$0xf]  ;;  %v8445_v63 = vld [vmem:[#allocation5 + $0x7b4] sm:$0xf0]  ;;  %v6241_v1 = vor.u32 %v8381_v59, %v6240_v57 }
  0xc8   :  { %v8345_v4 = vld [vmem:[#allocation5 + $0x494] sm:$0xf0]  ;;  %v6224_v5 = vld [vmem:[#allocation5 + $0x588] sm:$0xf] }
  0xc9   :  { %2000 = vmatpush.bf16.msra.mxu1 %v5681_v61  ;;  %2013 = vmatpush.bf16.msra.mxu2 %v5809_v62  ;;  %v8413_v61 = vld [vmem:[#allocation5 + $0x6b4] sm:$0xf0]  ;;  %v6496_v62 = vld [vmem:[#allocation5 + $0x7a8] sm:$0xf] }
  0xca   :  { %2026 = vmatpush.bf16.msra.mxu3 %v5937_v2  ;;  %v6369_v2 = vor.u32 %v8413_v61, %v6368_v60  ;;  %v6497_v6 = vor.u32 %v8445_v63, %v6496_v62  ;;  %v8377_v7 = vld [vmem:[#allocation5 + $0x594] sm:$0xf0]  ;;  %v6480_v10 = vld [vmem:[#allocation5 + $0x788] sm:$0xf] }
  0xcb   :  { %1988 = vmatpush.bf16.msra.mxu0 %v5537_v8  ;;  %v6352_v8 = vld [vmem:[#allocation5 + $0x688] sm:$0xf]  ;;  %v8409_v9 = vld [vmem:[#allocation5 + $0x694] sm:$0xf0]  ;;  %v6225_v14 = vor.u32 %v8377_v7, %v6224_v5 }
  0xcc   :  { %v6080_v13 = vld [vmem:[#allocation5 + $0x468] sm:$0xf]  ;;  %v6353_v15 = vor.u32 %v8409_v9, %v6352_v8  ;;  %v8373_v21 = vld [vmem:[#allocation5 + $0x574] sm:$0xf0] }
  0xcd   :  { %2001 = vmatpush.bf16.msra.mxu1 %v5665_v11  ;;  %2014 = vmatpush.bf16.msra.mxu2 %v5793_v12  ;;  %v8441_v11 = vld [vmem:[#allocation5 + $0x794] sm:$0xf0]  ;;  %v6097_v12 = vor.u32 %v8345_v4, %v6096_v3  ;;  %v6208_v17 = vld [vmem:[#allocation5 + $0x568] sm:$0xf] }
  0xce   :  { %2027 = vmatpush.bf16.msra.mxu3 %v5921_v16  ;;  %v8341_v16 = vld [vmem:[#allocation5 + $0x474] sm:$0xf0]  ;;  %v6481_v23 = vor.u32 %v8441_v11, %v6480_v10  ;;  %v6336_v24 = vld [vmem:[#allocation5 + $0x668] sm:$0xf] }
  0xcf   :  { %1989 = vmatpush.bf16.msra.mxu0 %v5521_v27  ;;  %v8405_v25 = vld [vmem:[#allocation5 + $0x674] sm:$0xf0]  ;;  %v6464_v27 = vld [vmem:[#allocation5 + $0x768] sm:$0xf]  ;;  %v6081_v29 = vor.u32 %v8341_v16, %v6080_v13  ;;  %v8227_v13 = vld [vmem:[#allocation5 + $0xec] sm:$0xf] }
  0xd0   :  { %v8437_v28 = vld [vmem:[#allocation5 + $0x774] sm:$0xf0]  ;;  %v6064_v30 = vld [vmem:[#allocation5 + $0x448] sm:$0xf] }
  0xd1   :  { %2002 = vmatpush.bf16.msra.mxu1 %v5649_v31  ;;  %2015 = vmatpush.bf16.msra.mxu2 %v5777_v32  ;;  %v6209_v31 = vor.u32 %v8373_v21, %v6208_v17  ;;  %v6337_v32 = vor.u32 %v8405_v25, %v6336_v24  ;;  %v8337_v33 = vld [vmem:[#allocation5 + $0x454] sm:$0xf0]  ;;  %v6192_v34 = vld [vmem:[#allocation5 + $0x548] sm:$0xf]  ;;  %v5762_v17 = vld [vmem:[#allocation5 + $0x1f8] sm:$0xf0] }
  0xd2   :  { %2028 = vmatpush.bf16.msra.mxu3 %v5905_v35  ;;  %1990 = vmatmul.bf16.vlgmr.msra.gmra.mxu0 %v9323_v19  ;;  %v458_v35 = vperm.slane %v9357_v26, 0  ;;  %v8401_v40 = vld [vmem:[#allocation5 + $0x654] sm:$0xf0]  ;;  %v6448_v43 = vld [vmem:[#allocation5 + $0x748] sm:$0xf] }
  0xd3   :  { %2034 = vmatpush.bf16.msrb.mxu0 %v6145_v36  ;;  %v6465_v36 = vor.u32 %v8437_v28, %v6464_v27  ;;  %v8433_v45 = vld [vmem:[#allocation5 + $0x754] sm:$0xf0]  ;;  %v6048_v50 = vld [vmem:[#allocation5 + $0x428] sm:$0xf]  ;;  %v8291_v21 = vld [vmem:[#allocation5 + $0x2ec] sm:$0xf] }
  0xd4   :  { %2016 = vmatmul.bf16.vlgmr.msra.gmra.mxu2 %v9321_v18  ;;  %2003 = vmatmul.bf16.vlgmr.msra.gmra.mxu1 %v9327_v22  ;;  %v8333_v51 = vld [vmem:[#allocation5 + $0x434] sm:$0xf0]  ;;  %v6449_v55 = vor.u32 %v8433_v45, %v6448_v43  ;;  %v6304_v57 = vld [vmem:[#allocation5 + $0x628] sm:$0xf]  ;;  %v5746_v43 = vld [vmem:[#allocation5 + $0x1d8] sm:$0xf0] }
  0xd5   :  { %2047 = vmatpush.bf16.msrb.mxu1 %v6273_v37  ;;  %2060 = vmatpush.bf16.msrb.mxu2 %v6401_v39  ;;  %v8369_v37 = vld [vmem:[#allocation5 + $0x554] sm:$0xf0]  ;;  %v6320_v39 = vld [vmem:[#allocation5 + $0x648] sm:$0xf]  ;;  %v6049_v62 = vor.u32 %v8333_v51, %v6048_v50  ;;  %v8287_v45 = vld [vmem:[#allocation5 + $0x2cc] sm:$0xf] }
  0xd6   :  { %2073 = vmatpush.bf16.msrb.mxu3 %v6529_v46  ;;  %v6065_v46 = vor.u32 %v8337_v33, %v6064_v30  ;;  %v6193_v48 = vor.u32 %v8369_v37, %v6192_v34  ;;  %v6321_v49 = vor.u32 %v8401_v40, %v6320_v39  ;;  %v8365_v56 = vld [vmem:[#allocation5 + $0x534] sm:$0xf0]  ;;  %v6432_v59 = vld [vmem:[#allocation5 + $0x728] sm:$0xf]  ;;  %v6018_v30 = vld [vmem:[#allocation5 + $0x3f8] sm:$0xf0] }
  0xd7   :  { %2029 = vmatmul.bf16.vlgmr.msra.gmra.mxu3 %v9325_v20  ;;  %2035 = vmatpush.bf16.msrb.mxu0 %v6129_v52  ;;  %v6176_v52 = vld [vmem:[#allocation5 + $0x528] sm:$0xf]  ;;  %v8429_v60 = vld [vmem:[#allocation5 + $0x734] sm:$0xf0]  ;;  %v5618_v37 = vld [vmem:[#allocation5 + $0xd8] sm:$0xf0] }
  0xd8   :  { %v6032_v63 = vld [vmem:[#allocation5 + $0x408] sm:$0xf]  ;;  %v8361_v4 = vld [vmem:[#allocation5 + $0x514] sm:$0xf0]  ;;  %v6433_v7 = vor.u32 %v8429_v60, %v6432_v59  ;;  %v8255_v39 = vld [vmem:[#allocation5 + $0x1cc] sm:$0xf] }
  0xd9   :  { %2048 = vmatpush.bf16.msrb.mxu1 %v6257_v53  ;;  %2061 = vmatpush.bf16.msrb.mxu2 %v6385_v54  ;;  %v6160_v3 = vld [vmem:[#allocation5 + $0x508] sm:$0xf]  ;;  %v8393_v8 = vld [vmem:[#allocation5 + $0x614] sm:$0xf0]  ;;  %v8283_v59 = vld [vmem:[#allocation5 + $0x2ac] sm:$0xf] }
  0xda   :  { %2074 = vmatpush.bf16.msrb.mxu3 %v6513_v58  ;;  %v8397_v58 = vld [vmem:[#allocation5 + $0x634] sm:$0xf0]  ;;  %v6288_v5 = vld [vmem:[#allocation5 + $0x608] sm:$0xf]  ;;  %v6161_v27 = vor.u32 %v8361_v4, %v6160_v3  ;;  %v5858_v60 = vld [vmem:[#allocation5 + $0x2b8] sm:$0xf0] }
  0xdb   :  { %2036 = vmatpush.bf16.msrb.mxu0 %v6113_v0  ;;  %v8329_v0 = vld [vmem:[#allocation5 + $0x414] sm:$0xf0]  ;;  %v6416_v9 = vld [vmem:[#allocation5 + $0x708] sm:$0xf]  ;;  %v6289_v28 = vor.u32 %v8393_v8, %v6288_v5  ;;  %v5586_v3 = vld [vmem:[#allocation5 + $0x98] sm:$0xf0] }
  0xdc   :  { %v8425_v10 = vld [vmem:[#allocation5 + $0x714] sm:$0xf0]  ;;  %v6033_v16 = vor.u32 %v8329_v0, %v6032_v63  ;;  %v8247_v4 = vld [vmem:[#allocation5 + $0x18c] sm:$0xf]  ;;  %v5842_v8 = vld [vmem:[#allocation5 + $0x298] sm:$0xf0] }
  0xdd   :  { %2049 = vmatpush.bf16.msrb.mxu1 %v6241_v1  ;;  %2062 = vmatpush.bf16.msrb.mxu2 %v6369_v2  ;;  %v1783_v47 = vpop.f32.mrf.mxu0  ;;  %v1796_v54 = vpop.f32.mrf.mxu1  ;;  %v6177_v1 = vor.u32 %v8365_v56, %v6176_v52  ;;  %v6305_v2 = vor.u32 %v8397_v58, %v6304_v57  ;;  %v5749_v52 = vor.u32 %v8255_v39, %v5746_v43  ;;  %v8251_v56 = vld [vmem:[#allocation5 + $0x1ac] sm:$0xf]  ;;  %v5730_v58 = vld [vmem:[#allocation5 + $0x1b8] sm:$0xf0] }
  0xde   :  { %2075 = vmatpush.bf16.msrb.mxu3 %v6497_v6  ;;  %v1784_v53 = vadd.f32 %v1783_v47, %v458_v35  ;;  %v1809_v6 = vpop.f32.mrf.mxu2  ;;  %v8319_v47 = vld [vmem:[#allocation5 + $0x3cc] sm:$0xf]  ;;  %v5733_v0 = vor.u32 %v8251_v56, %v5730_v58  ;;  %v5682_v43 = vld [vmem:[#allocation5 + $0x158] sm:$0xf0] }
  0xdf   :  { %2037 = vmatpush.bf16.msrb.mxu0 %v6097_v12  ;;  %v1822_v12 = vpop.f32.mrf.mxu3  ;;  %v8239_v39 = vld [vmem:[#allocation5 + $0x14c] sm:$0xf] }
  0xe0   :  { %v1797_v61 = vadd.f32 %v1796_v54, %v1784_v53  ;;  %v8219_v54 = vld [vmem:[#allocation5 + $0xac] sm:$0xf] }
  0xe1   :  { %2050 = vmatpush.bf16.msrb.mxu1 %v6225_v14  ;;  %2063 = vmatpush.bf16.msrb.mxu2 %v6353_v15  ;;  %v5634_v14 = vld [vmem:[#allocation5 + $0xf8] sm:$0xf0]  ;;  %v8259_v15 = vld [vmem:[#allocation5 + $0x1ec] sm:$0xf] }
  0xe2   :  { %2076 = vmatpush.bf16.msrb.mxu3 %v6481_v23  ;;  %v1810_v11 = vadd.f32 %v1809_v6, %v1797_v61  ;;  %v5890_v23 = vld [vmem:[#allocation5 + $0x2f8] sm:$0xf0]  ;;  %v5637_v33 = vor.u32 %v8227_v13, %v5634_v14  ;;  %v5765_v34 = vor.u32 %v8259_v15, %v5762_v17  ;;  %v8315_v61 = vld [vmem:[#allocation5 + $0x3ac] sm:$0xf] }
  0xe3   :  { %2038 = vmatpush.bf16.msrb.mxu0 %v6081_v29  ;;  %v8323_v29 = vld [vmem:[#allocation5 + $0x3ec] sm:$0xf]  ;;  %v5893_v35 = vor.u32 %v8291_v21, %v5890_v23  ;;  %v5714_v6 = vld [vmem:[#allocation5 + $0x198] sm:$0xf0] }
  0xe4   :  { %v9360_v24 = vadd.f32 %v1822_v12, %v1810_v11  ;;  %v6021_v40 = vor.u32 %v8323_v29, %v6018_v30  ;;  %v5717_v13 = vor.u32 %v8247_v4, %v5714_v6  ;;  %v8211_v15 = vld [vmem:[#allocation5 + $0x6c] sm:$0xf]  ;;  %v5826_v29 = vld [vmem:[#allocation5 + $0x278] sm:$0xf0] }
  0xe5   :  { %2051 = vmatpush.bf16.msrb.mxu1 %v6209_v31  ;;  %2064 = vmatpush.bf16.msrb.mxu2 %v6337_v32  ;;  %v1785_v25 = vpop.f32.mrf.mxu0  ;;  %v1798_v31 = vpop.f32.mrf.mxu1  ;;  %v6417_v32 = vor.u32 %v8425_v10, %v6416_v9  ;;  %v8311_v9 = vld [vmem:[#allocation5 + $0x38c] sm:$0xf]  ;;  %v5970_v10 = vld [vmem:[#allocation5 + $0x398] sm:$0xf0] }
  0xe6   :  { %2077 = vmatpush.bf16.msrb.mxu3 %v6465_v36  ;;  %v8223_v36 = vld [vmem:[#allocation5 + $0xcc] sm:$0xf]  ;;  %v5973_v25 = vor.u32 %v8311_v9, %v5970_v10  ;;  %v5954_v31 = vld [vmem:[#allocation5 + $0x378] sm:$0xf0] }
  0xe7   :  { %2039 = vmatpush.bf16.msrb.mxu0 %v6065_v46  ;;  %v5874_v46 = vld [vmem:[#allocation5 + $0x2d8] sm:$0xf0]  ;;  %v5621_v50 = vor.u32 %v8223_v36, %v5618_v37  ;;  %v1824_v51 = vpop.f32.mrf.mxu3  ;;  %v8243_v17 = vld [vmem:[#allocation5 + $0x16c] sm:$0xf] }
  0xe8   :  { %v5877_v53 = vor.u32 %v8287_v45, %v5874_v46  ;;  %v8307_v30 = vld [vmem:[#allocation5 + $0x36c] sm:$0xf]  ;;  %v5554_v37 = vld [vmem:[#allocation5 + $0x58] sm:$0xf0] }
  0xe9   :  { %2052 = vmatpush.bf16.msrb.mxu1 %v6193_v48  ;;  %2065 = vmatpush.bf16.msrb.mxu2 %v6321_v49  ;;  %v6002_v48 = vld [vmem:[#allocation5 + $0x3d8] sm:$0xf0]  ;;  %v1811_v49 = vpop.f32.mrf.mxu2  ;;  %v8207_v36 = vld [vmem:[#allocation5 + $0x4c] sm:$0xf] }
  0xea   :  { %2078 = vmatpush.bf16.msrb.mxu3 %v6449_v55  ;;  %v5602_v55 = vld [vmem:[#allocation5 + $0xb8] sm:$0xf0]  ;;  %v6005_v57 = vor.u32 %v8319_v47, %v6002_v48  ;;  %v8271_v45 = vld [vmem:[#allocation5 + $0x24c] sm:$0xf]  ;;  %v5557_v51 = vor.u32 %v8207_v36, %v5554_v37 }
  0xeb   :  { %2040 = vmatpush.bf16.msrb.mxu0 %v6049_v62  ;;  %v5986_v62 = vld [vmem:[#allocation5 + $0x3b8] sm:$0xf0]  ;;  %v5605_v63 = vor.u32 %v8219_v54, %v5602_v55  ;;  %v8303_v49 = vld [vmem:[#allocation5 + $0x34c] sm:$0xf]  ;;  %v5685_v54 = vor.u32 %v8239_v39, %v5682_v43 }
  0xec   :  { %v5989_v5 = vor.u32 %v8315_v61, %v5986_v62  ;;  %v5810_v46 = vld [vmem:[#allocation5 + $0x258] sm:$0xf0]  ;;  %v8203_v56 = vld [vmem:[#allocation5 + $0x2c] sm:$0xf] }
  0xed   :  { %2053 = vmatpush.bf16.msrb.mxu1 %v6177_v1  ;;  %2066 = vmatpush.bf16.msrb.mxu2 %v6305_v2  ;;  %v5861_v1 = vor.u32 %v8283_v59, %v5858_v60  ;;  %v8215_v2 = vld [vmem:[#allocation5 + $0x8c] sm:$0xf]  ;;  %v5813_v55 = vor.u32 %v8271_v45, %v5810_v46  ;;  %v5666_v61 = vld [vmem:[#allocation5 + $0x138] sm:$0xf0] }
  0xee   :  { %2079 = vmatpush.bf16.msrb.mxu3 %v6433_v7  ;;  %v8279_v7 = vld [vmem:[#allocation5 + $0x28c] sm:$0xf]  ;;  %v5589_v11 = vor.u32 %v8215_v2, %v5586_v3  ;;  %v5522_v4 = vld [vmem:[#allocation5 + $0x18] sm:$0xf0] }
  0xef   :  { %2041 = vmatpush.bf16.msrb.mxu0 %v6033_v16  ;;  %v5845_v14 = vor.u32 %v8279_v7, %v5842_v8  ;;  %v5570_v16 = vld [vmem:[#allocation5 + $0x78] sm:$0xf0]  ;;  %v8235_v58 = vld [vmem:[#allocation5 + $0x12c] sm:$0xf] }
  0xf0   :  { %v8267_v62 = vld [vmem:[#allocation5 + $0x22c] sm:$0xf]  ;;  %v5650_v8 = vld [vmem:[#allocation5 + $0x118] sm:$0xf0] }
  0xf1   :  { %2054 = vmatpush.bf16.msrb.mxu1 %v6161_v27  ;;  %2067 = vmatpush.bf16.msrb.mxu2 %v6289_v28  ;;  %v1835_v12 = vpop.f32.mrf.mxu0  ;;  %v5698_v27 = vld [vmem:[#allocation5 + $0x178] sm:$0xf0]  ;;  %v8275_v28 = vld [vmem:[#allocation5 + $0x26c] sm:$0xf] }
  0xf2   :  { %2080 = vmatpush.bf16.msrb.mxu3 %v6417_v32  ;;  %2042 = vmatmul.bf16.vlgmr.msrb.gmra.mxu0 %v9335_v41  ;;  %v1836_v21 = vadd.f32 %v1835_v12, %v9360_v24  ;;  %v5957_v24 = vor.u32 %v8307_v30, %v5954_v31  ;;  %v8199_v3 = vld [vmem:[#allocation5 + $0xc] sm:$0xf]  ;;  %v5778_v12 = vld [vmem:[#allocation5 + $0x218] sm:$0xf0] }
  0xf3   :  { %2086 = vmatpush.bf16.msra.mxu0 %v5637_v33  ;;  %v1848_v23 = vpop.f32.mrf.mxu1  ;;  %v5573_v33 = vor.u32 %v8211_v15, %v5570_v16  ;;  %v8231_v7 = vld [vmem:[#allocation5 + $0x10c] sm:$0xf]  ;;  %v6130_v39 = vld [vmem:[#allocation5 + $0x4d8] sm:$0xf0] }
  0xf4   :  { %2068 = vmatmul.bf16.vlgmr.msrb.gmra.mxu2 %v9333_v38  ;;  %2055 = vmatmul.bf16.vlgmr.msrb.gmra.mxu1 %v9339_v44  ;;  %v1849_v32 = vadd.f32 %v1848_v23, %v1836_v21  ;;  %v8263_v9 = vld [vmem:[#allocation5 + $0x20c] sm:$0xf]  ;;  %v5525_v23 = vor.u32 %v8199_v3, %v5522_v4  ;;  %v6258_v43 = vld [vmem:[#allocation5 + $0x5d8] sm:$0xf0] }
  0xf5   :  { %2099 = vmatpush.bf16.msra.mxu1 %v5765_v34  ;;  %2112 = vmatpush.bf16.msra.mxu2 %v5893_v35  ;;  %v5701_v34 = vor.u32 %v8243_v17, %v5698_v27  ;;  %v5829_v35 = vor.u32 %v8275_v28, %v5826_v29  ;;  %v8355_v16 = vld [vmem:[#allocation5 + $0x4ec] sm:$0xf]  ;;  %v6146_v17 = vld [vmem:[#allocation5 + $0x4f8] sm:$0xf0]  ;;  %v5653_v29 = vor.u32 %v8231_v7, %v5650_v8 }
  0xf6   :  { %2125 = vmatpush.bf16.msra.mxu3 %v6021_v40  ;;  %v8387_v21 = vld [vmem:[#allocation5 + $0x5ec] sm:$0xf]  ;;  %v6402_v28 = vld [vmem:[#allocation5 + $0x6f8] sm:$0xf0]  ;;  %v5781_v30 = vor.u32 %v8263_v9, %v5778_v12 }
  0xf7   :  { %2081 = vmatmul.bf16.vlgmr.msrb.gmra.mxu3 %v9337_v42  ;;  %2087 = vmatpush.bf16.msra.mxu0 %v5621_v50  ;;  %v1861_v40 = vpop.f32.mrf.mxu2  ;;  %v5938_v50 = vld [vmem:[#allocation5 + $0x358] sm:$0xf0]  ;;  %v8419_v27 = vld [vmem:[#allocation5 + $0x6ec] sm:$0xf] }
  0xf8   :  { %v1862_v47 = vadd.f32 %v1861_v40, %v1849_v32  ;;  %v5941_v60 = vor.u32 %v8303_v49, %v5938_v50  ;;  %v8451_v31 = vld [vmem:[#allocation5 + $0x7ec] sm:$0xf]  ;;  %v6530_v32 = vld [vmem:[#allocation5 + $0x7f8] sm:$0xf0]  ;;  %v6405_v36 = vor.u32 %v8419_v27, %v6402_v28 }
  0xf9   :  { %2100 = vmatpush.bf16.msra.mxu1 %v5749_v52  ;;  %2113 = vmatpush.bf16.msra.mxu2 %v5877_v53  ;;  %v1837_v53 = vpop.f32.mrf.mxu0  ;;  %v8351_v37 = vld [vmem:[#allocation5 + $0x4cc] sm:$0xf]  ;;  %v6386_v46 = vld [vmem:[#allocation5 + $0x6d8] sm:$0xf0] }
  0xfa   :  { %2126 = vmatpush.bf16.msra.mxu3 %v6005_v57  ;;  %v1874_v48 = vpop.f32.mrf.mxu3  ;;  %v5538_v57 = vld [vmem:[#allocation5 + $0x38] sm:$0xf0]  ;;  %v8383_v40 = vld [vmem:[#allocation5 + $0x5cc] sm:$0xf]  ;;  %v6133_v49 = vor.u32 %v8351_v37, %v6130_v39 }
  0xfb   :  { %2088 = vmatpush.bf16.msra.mxu0 %v5605_v63  ;;  %v9367_v52 = vadd.f32 %v1874_v48, %v1862_v47  ;;  %v1850_v59 = vpop.f32.mrf.mxu1  ;;  %v5794_v63 = vld [vmem:[#allocation5 + $0x238] sm:$0xf0]  ;;  %v5541_v2 = vor.u32 %v8203_v56, %v5538_v57  ;;  %v8415_v45 = vld [vmem:[#allocation5 + $0x6cc] sm:$0xf]  ;;  %v6261_v50 = vor.u32 %v8383_v40, %v6258_v43 }
  0xfc   :  { %v5797_v6 = vor.u32 %v8267_v62, %v5794_v63  ;;  %v8447_v47 = vld [vmem:[#allocation5 + $0x7cc] sm:$0xf]  ;;  %v6514_v48 = vld [vmem:[#allocation5 + $0x7d8] sm:$0xf0] }
  0xfd   :  { %2101 = vmatpush.bf16.msra.mxu1 %v5733_v0  ;;  %2114 = vmatpush.bf16.msra.mxu2 %v5861_v1  ;;  %v8299_v0 = vld [vmem:[#allocation5 + $0x32c] sm:$0xf]  ;;  %v5922_v1 = vld [vmem:[#allocation5 + $0x338] sm:$0xf0]  ;;  %v6517_v56 = vor.u32 %v8447_v47, %v6514_v48 }
  0xfe   :  { %2127 = vmatpush.bf16.msra.mxu3 %v5989_v5  ;;  %v5669_v5 = vor.u32 %v8235_v58, %v5666_v61  ;;  %v8347_v53 = vld [vmem:[#allocation5 + $0x4ac] sm:$0xf]  ;;  %v6242_v57 = vld [vmem:[#allocation5 + $0x5b8] sm:$0xf0] }
  0xff   :  { %2089 = vmatpush.bf16.msra.mxu0 %v5589_v11  ;;  %v1863_v10 = vpop.f32.mrf.mxu2  ;;  %v5925_v11 = vor.u32 %v8299_v0, %v5922_v1  ;;  %v8411_v58 = vld [vmem:[#allocation5 + $0x6ac] sm:$0xf]  ;;  %v6370_v59 = vld [vmem:[#allocation5 + $0x6b8] sm:$0xf0] }
 0x100   :  { %v6498_v61 = vld [vmem:[#allocation5 + $0x7b8] sm:$0xf0]  ;;  %v6373_v0 = vor.u32 %v8411_v58, %v6370_v59  ;;  %v8343_v1 = vld [vmem:[#allocation5 + $0x48c] sm:$0xf]  ;;  %v459_v58 = vperm.slane %v9357_v26, 1 }
 0x101   :  { %2102 = vmatpush.bf16.msra.mxu1 %v5717_v13  ;;  %2115 = vmatpush.bf16.msra.mxu2 %v5845_v14  ;;  %v8295_v13 = vld [vmem:[#allocation5 + $0x30c] sm:$0xf]  ;;  %v5906_v14 = vld [vmem:[#allocation5 + $0x318] sm:$0xf0] }
 0x102   :  { %2128 = vmatpush.bf16.msra.mxu3 %v5973_v25  ;;  %v1876_v15 = vpop.f32.mrf.mxu3  ;;  %v6274_v25 = vld [vmem:[#allocation5 + $0x5f8] sm:$0xf0]  ;;  %v8439_v7 = vld [vmem:[#allocation5 + $0x78c] sm:$0xf] }
 0x103   :  { %2090 = vmatpush.bf16.msra.mxu0 %v5573_v33  ;;  %v5909_v33 = vor.u32 %v8295_v13, %v5906_v14  ;;  %v6226_v4 = vld [vmem:[#allocation5 + $0x598] sm:$0xf0]  ;;  %v8339_v10 = vld [vmem:[#allocation5 + $0x46c] sm:$0xf] }
 0x104   :  { %v8371_v12 = vld [vmem:[#allocation5 + $0x56c] sm:$0xf]  ;;  %v6210_v15 = vld [vmem:[#allocation5 + $0x578] sm:$0xf0] }
 0x105   :  { %2103 = vmatpush.bf16.msra.mxu1 %v5701_v34  ;;  %2116 = vmatpush.bf16.msra.mxu2 %v5829_v35  ;;  %v6149_v34 = vor.u32 %v8355_v16, %v6146_v17  ;;  %v6277_v35 = vor.u32 %v8387_v21, %v6274_v25  ;;  %v8403_v16 = vld [vmem:[#allocation5 + $0x66c] sm:$0xf]  ;;  %v6338_v17 = vld [vmem:[#allocation5 + $0x678] sm:$0xf0]  ;;  %v6213_v27 = vor.u32 %v8371_v12, %v6210_v15 }
 0x106   :  { %2129 = vmatpush.bf16.msra.mxu3 %v5957_v24  ;;  %v6533_v24 = vor.u32 %v8451_v31, %v6530_v32  ;;  %v8435_v21 = vld [vmem:[#allocation5 + $0x76c] sm:$0xf]  ;;  %v6341_v28 = vor.u32 %v8403_v16, %v6338_v17  ;;  %v6450_v40 = vld [vmem:[#allocation5 + $0x758] sm:$0xf0] }
 0x107   :  { %2091 = vmatpush.bf16.msra.mxu0 %v5557_v51  ;;  %v6389_v51 = vor.u32 %v8415_v45, %v6386_v46  ;;  %v8367_v31 = vld [vmem:[#allocation5 + $0x54c] sm:$0xf]  ;;  %v6050_v48 = vld [vmem:[#allocation5 + $0x438] sm:$0xf0] }
 0x108   :  { %v8431_v39 = vld [vmem:[#allocation5 + $0x74c] sm:$0xf]  ;;  %v8469_v26 = vld [vmem:[#allocation8 + $0x74] sm:$0xf0] }
 0x109   :  { %2104 = vmatpush.bf16.msra.mxu1 %v5685_v54  ;;  %2117 = vmatpush.bf16.msra.mxu2 %v5813_v55  ;;  %v6114_v54 = vld [vmem:[#allocation5 + $0x4b8] sm:$0xf0]  ;;  %v8379_v55 = vld [vmem:[#allocation5 + $0x5ac] sm:$0xf] }
 0x10a   :  { %2130 = vmatpush.bf16.msra.mxu3 %v5941_v60  ;;  %v8443_v60 = vld [vmem:[#allocation5 + $0x7ac] sm:$0xf]  ;;  %v6117_v62 = vor.u32 %v8347_v53, %v6114_v54  ;;  %v6245_v63 = vor.u32 %v8379_v55, %v6242_v57  ;;  %v6178_v53 = vld [vmem:[#allocation5 + $0x538] sm:$0xf0] }
 0x10b   :  { %2092 = vmatpush.bf16.msra.mxu0 %v5541_v2  ;;  %v6098_v2 = vld [vmem:[#allocation5 + $0x498] sm:$0xf0]  ;;  %v6501_v3 = vor.u32 %v8443_v60, %v6498_v61  ;;  %v8331_v47 = vld [vmem:[#allocation5 + $0x42c] sm:$0xf] }
 0x10c   :  { %v8395_v54 = vld [vmem:[#allocation5 + $0x62c] sm:$0xf]  ;;  %v6306_v55 = vld [vmem:[#allocation5 + $0x638] sm:$0xf0]  ;;  %v6053_v59 = vor.u32 %v8331_v47, %v6050_v48  ;;  %v6560_v47 = vld [vmem:[#allocation8 + $0x30] sm:$0xf] }
 0x10d   :  { %2105 = vmatpush.bf16.msra.mxu1 %v5669_v5  ;;  %2118 = vmatpush.bf16.msra.mxu2 %v5797_v6  ;;  %v8407_v5 = vld [vmem:[#allocation5 + $0x68c] sm:$0xf]  ;;  %v6354_v6 = vld [vmem:[#allocation5 + $0x698] sm:$0xf0]  ;;  %v6624_v48 = vld [vmem:[#allocation8 + $0xb0] sm:$0xf] }
 0x10e   :  { %2131 = vmatpush.bf16.msra.mxu3 %v5925_v11  ;;  %v6357_v9 = vor.u32 %v8407_v5, %v6354_v6  ;;  %v6082_v11 = vld [vmem:[#allocation5 + $0x478] sm:$0xf0]  ;;  %v8327_v60 = vld [vmem:[#allocation5 + $0x40c] sm:$0xf] }
 0x10f   :  { %2093 = vmatpush.bf16.msra.mxu0 %v5525_v23  ;;  %v9373_v8 = vpop.f32.mrf.mxu0  ;;  %v6466_v23 = vld [vmem:[#allocation5 + $0x778] sm:$0xf0]  ;;  %v6085_v25 = vor.u32 %v8339_v10, %v6082_v11  ;;  %v8423_v5 = vld [vmem:[#allocation5 + $0x70c] sm:$0xf] }
 0x110   :  { %v6434_v57 = vld [vmem:[#allocation5 + $0x738] sm:$0xf0] }
 0x111   :  { %2106 = vmatpush.bf16.msra.mxu1 %v5653_v29  ;;  %2119 = vmatpush.bf16.msra.mxu2 %v5781_v30  ;;  %v9375_v13 = vpop.f32.mrf.mxu1  ;;  %v8335_v29 = vld [vmem:[#allocation5 + $0x44c] sm:$0xf]  ;;  %v6066_v30 = vld [vmem:[#allocation5 + $0x458] sm:$0xf0] }
 0x112   :  { %2132 = vmatpush.bf16.msra.mxu3 %v5909_v33  ;;  %2094 = vmatmul.bf16.vlgmr.msra.gmra.mxu0 %v9323_v19  ;;  %v6482_v19 = vld [vmem:[#allocation5 + $0x798] sm:$0xf0]  ;;  %v6469_v33 = vor.u32 %v8435_v21, %v6466_v23  ;;  %v6584_v21 = vld [vmem:[#allocation8 + $0x60] sm:$0xf]  ;;  %v8467_v23 = vld [vmem:[#allocation8 + $0x64] sm:$0xf0] }
 0x113   :  { %2138 = vmatpush.bf16.msrb.mxu0 %v6149_v34  ;;  %v6485_v14 = vor.u32 %v8439_v7, %v6482_v19  ;;  %v6194_v34 = vld [vmem:[#allocation5 + $0x558] sm:$0xf0]  ;;  %v6592_v19 = vld [vmem:[#allocation8 + $0x70] sm:$0xf] }
 0x114   :  { %2120 = vmatmul.bf16.vlgmr.msra.gmra.mxu2 %v9321_v18  ;;  %2107 = vmatmul.bf16.vlgmr.msra.gmra.mxu1 %v9327_v22  ;;  %v8375_v18 = vld [vmem:[#allocation5 + $0x58c] sm:$0xf]  ;;  %v6197_v45 = vor.u32 %v8367_v31, %v6194_v34  ;;  %v6418_v7 = vld [vmem:[#allocation5 + $0x718] sm:$0xf0]  ;;  %v6593_v15 = vor.u32 %v8469_v26, %v6592_v19  ;;  %v6608_v19 = vld [vmem:[#allocation8 + $0x90] sm:$0xf] }
 0x115   :  { %2151 = vmatpush.bf16.msrb.mxu1 %v6277_v35  ;;  %2164 = vmatpush.bf16.msrb.mxu2 %v6405_v36  ;;  %v6229_v22 = vor.u32 %v8375_v18, %v6226_v4  ;;  %v8399_v35 = vld [vmem:[#allocation5 + $0x64c] sm:$0xf]  ;;  %v6322_v36 = vld [vmem:[#allocation5 + $0x658] sm:$0xf0] }
 0x116   :  { %2177 = vmatpush.bf16.msrb.mxu3 %v6533_v24  ;;  %v6069_v24 = vor.u32 %v8335_v29, %v6066_v30  ;;  %v6325_v46 = vor.u32 %v8399_v35, %v6322_v36  ;;  %v6290_v4 = vld [vmem:[#allocation5 + $0x618] sm:$0xf0]  ;;  %v6576_v30 = vld [vmem:[#allocation8 + $0x50] sm:$0xf] }
 0x117   :  { %2133 = vmatmul.bf16.vlgmr.msra.gmra.mxu3 %v9325_v20  ;;  %2139 = vmatpush.bf16.msrb.mxu0 %v6133_v49  ;;  %v6101_v20 = vor.u32 %v8343_v1, %v6098_v2  ;;  %v9377_v32 = vpop.f32.mrf.mxu2  ;;  %v1889_v43 = vpop.f32.mrf.mxu0  ;;  %v8363_v49 = vld [vmem:[#allocation5 + $0x52c] sm:$0xf]  ;;  %v6162_v1 = vld [vmem:[#allocation5 + $0x518] sm:$0xf0] }
 0x118   :  { %v6181_v61 = vor.u32 %v8363_v49, %v6178_v53  ;;  %v8485_v10 = vld [vmem:[#allocation8 + $0xf4] sm:$0xf0]  ;;  %v8499_v53 = vld [vmem:[#allocation8 + $0x164] sm:$0xf0] }
 0x119   :  { %2152 = vmatpush.bf16.msrb.mxu1 %v6261_v50  ;;  %2165 = vmatpush.bf16.msrb.mxu2 %v6389_v51  ;;  %v1902_v50 = vpop.f32.mrf.mxu1  ;;  %v6453_v51 = vor.u32 %v8431_v39, %v6450_v40  ;;  %v8465_v31 = vld [vmem:[#allocation8 + $0x54] sm:$0xf0]  ;;  %v8463_v39 = vld [vmem:[#allocation8 + $0x44] sm:$0xf0]  ;;  %v6632_v40 = vld [vmem:[#allocation8 + $0xc0] sm:$0xf] }
 0x11a   :  { %2178 = vmatpush.bf16.msrb.mxu3 %v6517_v56  ;;  %v9379_v37 = vpop.f32.mrf.mxu3  ;;  %v8427_v56 = vld [vmem:[#allocation5 + $0x72c] sm:$0xf]  ;;  %v6577_v34 = vor.u32 %v8465_v31, %v6576_v30  ;;  %v8501_v43 = vld [vmem:[#allocation8 + $0x174] sm:$0xf0]  ;;  %v8484_v30 = vld [vmem:[#allocation8 + $0xf4] sm:$0xf] }
 0x11b   :  { %2140 = vmatpush.bf16.msrb.mxu0 %v6117_v62  ;;  %v6309_v62 = vor.u32 %v8395_v54, %v6306_v55  ;;  %v6437_v18 = vor.u32 %v8427_v56, %v6434_v57  ;;  %v6658_v31 = vld [vmem:[#allocation8 + $0xf8] sm:$0xf0] }
 0x11d   :  { %2153 = vmatpush.bf16.msrb.mxu1 %v6245_v63  ;;  %2166 = vmatpush.bf16.msrb.mxu2 %v6373_v0  ;;  %v6034_v63 = vld [vmem:[#allocation5 + $0x418] sm:$0xf0]  ;;  %v8359_v0 = vld [vmem:[#allocation5 + $0x50c] sm:$0xf] }
 0x11e   :  { %2179 = vmatpush.bf16.msrb.mxu3 %v6501_v3  ;;  %v8391_v3 = vld [vmem:[#allocation5 + $0x60c] sm:$0xf]  ;;  %v6165_v11 = vor.u32 %v8359_v0, %v6162_v1  ;;  %v6704_v0 = vld [vmem:[#allocation8 + $0x150] sm:$0xf]  ;;  %v8497_v1 = vld [vmem:[#allocation8 + $0x154] sm:$0xf0] }
 0x11f   :  { %2141 = vmatpush.bf16.msrb.mxu0 %v6101_v20  ;;  %v1915_v2 = vpop.f32.mrf.mxu2  ;;  %v1888_v20 = vadd.f32 %v9373_v8, %v459_v58  ;;  %v6293_v12 = vor.u32 %v8391_v3, %v6290_v4  ;;  %v6585_v8 = vor.u32 %v8467_v23, %v6584_v21  ;;  %v6552_v58 = vld [vmem:[#allocation8 + $0x20] sm:$0xf]  ;;  %v8471_v21 = vld [vmem:[#allocation8 + $0x84] sm:$0xf0]  ;;  %v8468_v23 = vld [vmem:[#allocation8 + $0x74] sm:$0xf] }
 0x120   :  { %v6705_v2 = vor.u32 %v8497_v1, %v6704_v0  ;;  %v8478_v0 = vld [vmem:[#allocation8 + $0xc4] sm:$0xf]  ;;  %v6634_v1 = vld [vmem:[#allocation8 + $0xc8] sm:$0xf0] }
 0x121   :  { %2154 = vmatpush.bf16.msrb.mxu1 %v6229_v22  ;;  %2167 = vmatpush.bf16.msrb.mxu2 %v6357_v9  ;;  %v6037_v22 = vor.u32 %v8327_v60, %v6034_v63  ;;  %v6656_v9 = vld [vmem:[#allocation8 + $0xf0] sm:$0xf]  ;;  %v1901_v17 = vadd.f32 %v9375_v13, %v1888_v20  ;;  %v6616_v60 = vld [vmem:[#allocation8 + $0xa0] sm:$0xf]  ;;  %v8473_v20 = vld [vmem:[#allocation8 + $0x94] sm:$0xf0] }
 0x122   :  { %2180 = vmatpush.bf16.msrb.mxu3 %v6485_v14  ;;  %v1928_v6 = vpop.f32.mrf.mxu3  ;;  %v6421_v14 = vor.u32 %v8423_v5, %v6418_v7  ;;  %v6657_v16 = vor.u32 %v8485_v10, %v6656_v9  ;;  %v6640_v13 = vld [vmem:[#allocation8 + $0xd0] sm:$0xf]  ;;  %v8457_v7 = vld [vmem:[#allocation8 + $0x14] sm:$0xf0]  ;;  %v8495_v9 = vld [vmem:[#allocation8 + $0x144] sm:$0xf0] }
 0x123   :  { %2142 = vmatpush.bf16.msrb.mxu0 %v6085_v25  ;;  %v6648_v25 = vld [vmem:[#allocation8 + $0xe0] sm:$0xf]  ;;  %v1914_v29 = vadd.f32 %v9377_v32, %v1901_v17  ;;  %v8479_v32 = vld [vmem:[#allocation8 + $0xc4] sm:$0xf0]  ;;  %v6544_v6 = vld [vmem:[#allocation8 + $0x10] sm:$0xf] }
 0x124   :  { %v6600_v17 = vld [vmem:[#allocation8 + $0x80] sm:$0xf] }
 0x125   :  { %2155 = vmatpush.bf16.msrb.mxu1 %v6213_v27  ;;  %2168 = vmatpush.bf16.msrb.mxu2 %v6341_v28  ;;  %v8483_v27 = vld [vmem:[#allocation8 + $0xe4] sm:$0xf0]  ;;  %v1927_v35 = vadd.f32 %v9379_v37, %v1914_v29  ;;  %v8477_v37 = vld [vmem:[#allocation8 + $0xb4] sm:$0xf0] }
 0x126   :  { %2181 = vmatpush.bf16.msrb.mxu3 %v6469_v33  ;;  %v6649_v28 = vor.u32 %v8483_v27, %v6648_v25  ;;  %v8481_v33 = vld [vmem:[#allocation8 + $0xd4] sm:$0xf0]  ;;  %v6625_v57 = vor.u32 %v8477_v37, %v6624_v48  ;;  %v6594_v27 = vld [vmem:[#allocation8 + $0x78] sm:$0xf0] }
 0x127   :  { %2143 = vmatpush.bf16.msrb.mxu0 %v6069_v24  ;;  %v6641_v36 = vor.u32 %v8481_v33, %v6640_v13  ;;  %v6720_v24 = vld [vmem:[#allocation8 + $0x170] sm:$0xf]  ;;  %v8493_v29 = vld [vmem:[#allocation8 + $0x134] sm:$0xf0]  ;;  %v6578_v37 = vld [vmem:[#allocation8 + $0x58] sm:$0xf0] }
 0x128   :  { %v8489_v48 = vld [vmem:[#allocation8 + $0x114] sm:$0xf0] }
 0x129   :  { %2156 = vmatpush.bf16.msrb.mxu1 %v6197_v45  ;;  %2169 = vmatpush.bf16.msrb.mxu2 %v6325_v46  ;;  %v6721_v45 = vor.u32 %v8501_v43, %v6720_v24  ;;  %v6633_v46 = vor.u32 %v8479_v32, %v6632_v40  ;;  %v6661_v40 = vor.u32 %v8484_v30, %v6658_v31  ;;  %v6586_v32 = vld [vmem:[#allocation8 + $0x68] sm:$0xf0]  ;;  %v6680_v24 = vld [vmem:[#allocation8 + $0x120] sm:$0xf]  ;;  %v8491_v43 = vld [vmem:[#allocation8 + $0x124] sm:$0xf0] }
 0x12a   :  { %2182 = vmatpush.bf16.msrb.mxu3 %v6453_v51  ;;  %v6712_v51 = vld [vmem:[#allocation8 + $0x160] sm:$0xf]  ;;  %v6546_v30 = vld [vmem:[#allocation8 + $0x18] sm:$0xf0]  ;;  %v8472_v31 = vld [vmem:[#allocation8 + $0x94] sm:$0xf] }
 0x12b   :  { %2144 = vmatpush.bf16.msrb.mxu0 %v6053_v59  ;;  %v6713_v54 = vor.u32 %v8499_v53, %v6712_v51  ;;  %v8459_v59 = vld [vmem:[#allocation8 + $0x24] sm:$0xf0]  ;;  %v8480_v51 = vld [vmem:[#allocation8 + $0xd4] sm:$0xf] }
 0x12d   :  { %2157 = vmatpush.bf16.msrb.mxu1 %v6181_v61  ;;  %2170 = vmatpush.bf16.msrb.mxu2 %v6309_v62  ;;  %v8475_v62 = vld [vmem:[#allocation8 + $0xa4] sm:$0xf0] }
 0x12e   :  { %2183 = vmatpush.bf16.msrb.mxu3 %v6437_v18  ;;  %v6553_v18 = vor.u32 %v8459_v59, %v6552_v58  ;;  %v6617_v5 = vor.u32 %v8475_v62, %v6616_v60  ;;  %v6722_v58 = vld [vmem:[#allocation8 + $0x178] sm:$0xf0]  ;;  %v6570_v62 = vld [vmem:[#allocation8 + $0x48] sm:$0xf0] }
 0x12f   :  { %2145 = vmatpush.bf16.msrb.mxu0 %v6037_v22  ;;  %v6696_v22 = vld [vmem:[#allocation8 + $0x140] sm:$0xf] }
 0x130   :  { %v6697_v10 = vor.u32 %v8495_v9, %v6696_v22  ;;  %v6714_v22 = vld [vmem:[#allocation8 + $0x168] sm:$0xf0] }
 0x131   :  { %2158 = vmatpush.bf16.msrb.mxu1 %v6165_v11  ;;  %2171 = vmatpush.bf16.msrb.mxu2 %v6293_v12  ;;  %v1952_v50 = vpop.f32.mrf.mxu1  ;;  %v6545_v12 = vor.u32 %v8457_v7, %v6544_v6  ;;  %v8476_v6 = vld [vmem:[#allocation8 + $0xb4] sm:$0xf] }
 0x132   :  { %2184 = vmatpush.bf16.msrb.mxu3 %v6421_v14  ;;  %2146 = vmatmul.bf16.vlgmr.msrb.gmra.mxu0 %v9335_v41  ;;  %v6568_v41 = vld [vmem:[#allocation8 + $0x40] sm:$0xf] }
 0x133   :  { %2588 = vmatpush.bf16.msra.mxu0 %v6593_v15  ;;  %v6536_v14 = vld [vmem:[#allocation8] sm:$0xf]  ;;  %v8455_v15 = vld [vmem:[#allocation8 + $0x4] sm:$0xf0] }
 0x134   :  { %2159 = vmatmul.bf16.vlgmr.msrb.gmra.mxu1 %v9339_v44  ;;  %2172 = vmatmul.bf16.vlgmr.msrb.gmra.mxu2 %v9333_v38  ;;  %v6569_v44 = vor.u32 %v8463_v39, %v6568_v41  ;;  %v1939_v38 = vpop.f32.mrf.mxu0  ;;  %v6597_v41 = vor.u32 %v8468_v23, %v6594_v27  ;;  %v8466_v39 = vld [vmem:[#allocation8 + $0x64] sm:$0xf]  ;;  %v6706_v23 = vld [vmem:[#allocation8 + $0x158] sm:$0xf0] }
 0x135   :  { %2601 = vmatpush.bf16.msra.mxu1 %v6657_v16  ;;  %2185 = vmatmul.bf16.vlgmr.msrb.gmra.mxu3 %v9337_v42  ;;  %v8461_v42 = vld [vmem:[#allocation8 + $0x34] sm:$0xf0]  ;;  %v1940_v49 = vadd.f32 %v1939_v38, %v1927_v35  ;;  %v6609_v16 = vor.u32 %v8473_v20, %v6608_v19  ;;  %v2190_v35 = vmax.f32 %v9367_v52, 0.0  ;;  %v6681_v38 = vor.u32 %v8491_v43, %v6680_v24  ;;  %v6626_v19 = vld [vmem:[#allocation8 + $0xb8] sm:$0xf0] }
 0x136   :  { %2614 = vmatpush.bf16.msra.mxu2 %v6721_v45  ;;  %v6561_v55 = vor.u32 %v8461_v42, %v6560_v47  ;;  %v8482_v45 = vld [vmem:[#allocation8 + $0xe4] sm:$0xf]  ;;  %v6589_v52 = vor.u32 %v8466_v39, %v6586_v32  ;;  %v6672_v42 = vld [vmem:[#allocation8 + $0x110] sm:$0xf] }
 0x137   :  { %2589 = vmatpush.bf16.msra.mxu0 %v6585_v8  ;;  %v1953_v56 = vadd.f32 %v1952_v50, %v1940_v49  ;;  %v1965_v61 = vpop.f32.mrf.mxu2  ;;  %v9393_v47 = vpack.c.bf16 %v2190_v35, %v2190_v35  ;;  %v8464_v50 = vld [vmem:[#allocation8 + $0x54] sm:$0xf]  ;;  %v6673_v53 = vor.u32 %v8489_v48, %v6672_v42  ;;  %v8498_v20 = vld [vmem:[#allocation8 + $0x164] sm:$0xf]  ;;  %v6602_v42 = vld [vmem:[#allocation8 + $0x88] sm:$0xf0] }
 0x138   :  { %v6581_v59 = vor.u32 %v8464_v50, %v6578_v37  ;;  %v6717_v9 = vor.u32 %v8498_v20, %v6714_v22  ;;  %v8494_v35 = vld [vmem:[#allocation8 + $0x144] sm:$0xf] }
 0x139   :  { %2602 = vmatpush.bf16.msra.mxu1 %v6649_v28  ;;  %v1966_v3 = vadd.f32 %v1965_v61, %v1953_v56  ;;  %v1954_v26 = vpop.f32.mrf.mxu1  ;;  %v6688_v28 = vld [vmem:[#allocation8 + $0x130] sm:$0xf]  ;;  %v8487_v56 = vld [vmem:[#allocation8 + $0x104] sm:$0xf0]  ;;  %v8462_v61 = vld [vmem:[#allocation8 + $0x44] sm:$0xf] }
 0x13a   :  { %2615 = vmatpush.bf16.msra.mxu2 %v6713_v54  ;;  %v1978_v63 = vpop.f32.mrf.mxu3  ;;  %v6689_v13 = vor.u32 %v8493_v29, %v6688_v28  ;;  %v6642_v54 = vld [vmem:[#allocation8 + $0xd8] sm:$0xf0]  ;;  %v8456_v29 = vld [vmem:[#allocation8 + $0x14] sm:$0xf]  ;;  %v8454_v24 = vld [vmem:[#allocation8 + $0x4] sm:$0xf] }
 0x13b   :  { %2590 = vmatpush.bf16.msra.mxu0 %v6577_v34  ;;  %v1979_v11 = vadd.f32 %v1978_v63, %v1966_v3  ;;  %v6537_v34 = vor.u32 %v8455_v15, %v6536_v14  ;;  %v6645_v60 = vor.u32 %v8480_v51, %v6642_v54  ;;  %v6637_v3 = vor.u32 %v8478_v0, %v6634_v1  ;;  %v6554_v14 = vld [vmem:[#allocation8 + $0x28] sm:$0xf0]  ;;  %v8474_v15 = vld [vmem:[#allocation8 + $0xa4] sm:$0xf] }
 0x13c   :  { %v1941_v4 = vpop.f32.mrf.mxu0  ;;  %v6549_v39 = vor.u32 %v8456_v29, %v6546_v30  ;;  %v8490_v37 = vld [vmem:[#allocation8 + $0x124] sm:$0xf]  ;;  %v6682_v51 = vld [vmem:[#allocation8 + $0x128] sm:$0xf0]  ;;  %v8507_v29 = vld [vmem:[#allocation8 + $0x1a4] sm:$0xf0] }
 0x13d   :  { %2603 = vmatpush.bf16.msra.mxu1 %v6641_v36  ;;  %v2191_v33 = vmax.f32 %v1979_v11, 0.0  ;;  %v6601_v36 = vor.u32 %v8471_v21, %v6600_v17  ;;  %v8460_v4 = vld [vmem:[#allocation8 + $0x34] sm:$0xf]  ;;  %v6629_v11 = vor.u32 %v8476_v6, %v6626_v19  ;;  %v8486_v0 = vld [vmem:[#allocation8 + $0x104] sm:$0xf] }
 0x13e   :  { %2616 = vmatpush.bf16.msra.mxu2 %v6705_v2  ;;  %v8496_v21 = vld [vmem:[#allocation8 + $0x154] sm:$0xf]  ;;  %v6666_v1 = vld [vmem:[#allocation8 + $0x108] sm:$0xf0]  ;;  %v8513_v19 = vld [vmem:[#allocation8 + $0x1d4] sm:$0xf0] }
 0x13f   :  { %2591 = vmatpush.bf16.msra.mxu0 %v6569_v44  ;;  %v1967_v25 = vpop.f32.mrf.mxu2  ;;  %v6650_v44 = vld [vmem:[#allocation8 + $0xe8] sm:$0xf0]  ;;  %v6709_v27 = vor.u32 %v8496_v21, %v6706_v23 }
 0x140   :  { %v6653_v49 = vor.u32 %v8482_v45, %v6650_v44  ;;  %v6538_v45 = vld [vmem:[#allocation8 + $0x8] sm:$0xf0]  ;;  %v8492_v44 = vld [vmem:[#allocation8 + $0x134] sm:$0xf] }
 0x141   :  { %2604 = vmatpush.bf16.msra.mxu1 %v6633_v46  ;;  %v9391_v46 = vpack.c.bf16 %v2191_v33, %v2191_v33  ;;  %v6610_v33 = vld [vmem:[#allocation8 + $0x98] sm:$0xf0] }
 0x142   :  { %2617 = vmatpush.bf16.msra.mxu2 %v6697_v10  ;;  %v1980_v8 = vpop.f32.mrf.mxu3  ;;  %v6613_v43 = vor.u32 %v8472_v31, %v6610_v33 }
 0x143   :  { %2592 = vmatpush.bf16.msra.mxu0 %v6561_v55  ;;  %v6664_v55 = vld [vmem:[#allocation8 + $0x100] sm:$0xf] }
 0x144   :  { %v6665_v63 = vor.u32 %v8487_v56, %v6664_v55  ;;  %v6541_v55 = vor.u32 %v8454_v24, %v6538_v45  ;;  %v8517_v56 = vld [vmem:[#allocation8 + $0x1f4] sm:$0xf0]  ;;  %v8516_v24 = vld [vmem:[#allocation8 + $0x1f4] sm:$0xf] }
 0x145   :  { %2605 = vmatpush.bf16.msra.mxu1 %v6625_v57  ;;  %v8500_v57 = vld [vmem:[#allocation8 + $0x174] sm:$0xf] }
 0x146   :  { %2618 = vmatpush.bf16.msra.mxu2 %v6689_v13  ;;  %v6725_v2 = vor.u32 %v8500_v57, %v6722_v58 }
 0x147   :  { %2593 = vmatpush.bf16.msra.mxu0 %v6553_v18  ;;  %v6573_v18 = vor.u32 %v8462_v61, %v6570_v62  ;;  %v6674_v61 = vld [vmem:[#allocation8 + $0x118] sm:$0xf0] }
 0x149   :  { %2606 = vmatpush.bf16.msra.mxu1 %v6617_v5  ;;  %v6562_v5 = vld [vmem:[#allocation8 + $0x38] sm:$0xf0] }
 0x14a   :  { %2619 = vmatpush.bf16.msra.mxu2 %v6681_v38  ;;  %v6565_v10 = vor.u32 %v8460_v4, %v6562_v5  ;;  %v6690_v38 = vld [vmem:[#allocation8 + $0x138] sm:$0xf0]  ;;  %v6776_v4 = vld [vmem:[#allocation8 + $0x1e0] sm:$0xf]  ;;  %v8515_v5 = vld [vmem:[#allocation8 + $0x1e4] sm:$0xf0] }
 0x14b   :  { %2594 = vmatpush.bf16.msra.mxu0 %v6545_v12  ;;  %v8458_v12 = vld [vmem:[#allocation8 + $0x24] sm:$0xf]  ;;  %v6777_v6 = vor.u32 %v8515_v5, %v6776_v4  ;;  %v6738_v4 = vld [vmem:[#allocation8 + $0x198] sm:$0xf0] }
 0x14c   :  { %v6557_v8 = vor.u32 %v8458_v12, %v6554_v14 }
 0x14d   :  { %2607 = vmatpush.bf16.msra.mxu1 %v6609_v16  ;;  %v6618_v16 = vld [vmem:[#allocation8 + $0xa8] sm:$0xf0] }
 0x14e   :  { %2620 = vmatpush.bf16.msra.mxu2 %v6673_v53  ;;  %v6621_v28 = vor.u32 %v8474_v15, %v6618_v16  ;;  %v6784_v53 = vld [vmem:[#allocation8 + $0x1f0] sm:$0xf] }
 0x14f   :  { %2595 = vmatpush.bf16.msra.mxu0 %v6537_v34  ;;  %v1991_v7 = vpop.f32.mrf.mxu0  ;;  %v6785_v58 = vor.u32 %v8517_v56, %v6784_v53  ;;  %v6752_v16 = vld [vmem:[#allocation8 + $0x1b0] sm:$0xf] }
 0x151   :  { %2608 = vmatpush.bf16.msra.mxu1 %v6601_v36  ;;  %v9397_v26 = vpop.f32.mrf.mxu1  ;;  %v6698_v36 = vld [vmem:[#allocation8 + $0x148] sm:$0xf0]  ;;  %2627 = vmatpush.bf16.msra.mxu3 %v6785_v58 }
 0x152   :  { %2596 = vmatmul.bf16.vlgmr.msra.gmra.mxu0 %v9393_v47  ;;  %2621 = vmatpush.bf16.msra.mxu2 %v6665_v63 }
 0x153   :  { %2640 = vmatpush.bf16.msrb.mxu0 %v6597_v41  ;;  %v6701_v41 = vor.u32 %v8494_v35, %v6698_v36  ;;  %v8505_v35 = vld [vmem:[#allocation8 + $0x194] sm:$0xf0] }
 0x154   :  { %2609 = vmatmul.bf16.vlgmr.msra.gmra.mxu1 %v9391_v46 }
 0x155   :  { %2653 = vmatpush.bf16.msrb.mxu1 %v6661_v40  ;;  %v9399_v40 = vld [vmem:[#allocation7] sm:$0xf]  ;;  %2628 = vmatpush.bf16.msra.mxu3 %v6777_v6 }
 0x156   :  { %2666 = vmatpush.bf16.msrb.mxu2 %v6725_v2  ;;  %v460_v32 = vperm.slane %v9399_v40, 2 }
 0x157   :  { %2641 = vmatpush.bf16.msrb.mxu0 %v6589_v52  ;;  %v2017_v17 = vpop.f32.mrf.mxu2  ;;  %v1993_v13 = vpop.f32.mrf.mxu0  ;;  %v8470_v52 = vld [vmem:[#allocation8 + $0x84] sm:$0xf] }
 0x158   :  { %v1992_v54 = vadd.f32 %v1991_v7, %v460_v32  ;;  %v6605_v57 = vor.u32 %v8470_v52, %v6602_v42  ;;  %v6768_v7 = vld [vmem:[#allocation8 + $0x1d0] sm:$0xf] }
 0x159   :  { %2654 = vmatpush.bf16.msrb.mxu1 %v6653_v49  ;;  %v2006_v34 = vpop.f32.mrf.mxu1  ;;  %v6693_v49 = vor.u32 %v8492_v44, %v6690_v38  ;;  %v8514_v44 = vld [vmem:[#allocation8 + $0x1e4] sm:$0xf]  ;;  %v6778_v38 = vld [vmem:[#allocation8 + $0x1e8] sm:$0xf0] }
 0x15a   :  { %2667 = vmatpush.bf16.msrb.mxu2 %v6717_v9  ;;  %v2030_v25 = vpop.f32.mrf.mxu3  ;;  %v2005_v62 = vadd.f32 %v9397_v26, %v1992_v54  ;;  %v6769_v9 = vor.u32 %v8513_v19, %v6768_v7  ;;  %v6736_v34 = vld [vmem:[#allocation8 + $0x190] sm:$0xf]  ;;  %v6781_v42 = vor.u32 %v8514_v44, %v6778_v38  ;;  %v8510_v54 = vld [vmem:[#allocation8 + $0x1c4] sm:$0xf]  ;;  %v6730_v19 = vld [vmem:[#allocation8 + $0x188] sm:$0xf0] }
 0x15b   :  { %2642 = vmatpush.bf16.msrb.mxu0 %v6581_v59  ;;  %v6685_v59 = vor.u32 %v8490_v37, %v6682_v51  ;;  %v6737_v36 = vor.u32 %v8505_v35, %v6736_v34  ;;  %v8502_v7 = vld [vmem:[#allocation8 + $0x184] sm:$0xf]  ;;  %v8533_v44 = vld [vmem:[#allocation10 + $0x78] sm:$0xff]  ;;  %v8524_v38 = vld [vmem:[#allocation10 + $0x30] sm:$0xff] }
 0x15c   :  { %v2018_v2 = vadd.f32 %v2017_v17, %v2005_v62  ;;  %2629 = vmatpush.bf16.msra.mxu3 %v6769_v9  ;;  %v8509_v17 = vld [vmem:[#allocation8 + $0x1b4] sm:$0xf0] }
 0x15d   :  { %2655 = vmatpush.bf16.msrb.mxu1 %v6645_v60  ;;  %v8488_v60 = vld [vmem:[#allocation8 + $0x114] sm:$0xf] }
 0x15e   :  { %2668 = vmatpush.bf16.msrb.mxu2 %v6709_v27  ;;  %v6677_v63 = vor.u32 %v8488_v60, %v6674_v61  ;;  %v6753_v27 = vor.u32 %v8509_v17, %v6752_v16  ;;  %v6754_v60 = vld [vmem:[#allocation8 + $0x1b8] sm:$0xf0]  ;;  %v461_v61 = vperm.slane %v9399_v40, 3 }
 0x15f   :  { %2643 = vmatpush.bf16.msrb.mxu0 %v6573_v18  ;;  %v2019_v48 = vpop.f32.mrf.mxu2  ;;  %v6669_v18 = vor.u32 %v8486_v0, %v6666_v1  ;;  %v6746_v0 = vld [vmem:[#allocation8 + $0x1a8] sm:$0xf0] }
 0x161   :  { %2656 = vmatpush.bf16.msrb.mxu1 %v6637_v3  ;;  %v2031_v3 = vadd.f32 %v2030_v25, %v2018_v2 }
 0x162   :  { %2669 = vmatpush.bf16.msrb.mxu2 %v6701_v41  ;;  %v2032_v50 = vpop.f32.mrf.mxu3  ;;  %v6728_v41 = vld [vmem:[#allocation8 + $0x180] sm:$0xf] }
 0x163   :  { %2644 = vmatpush.bf16.msrb.mxu0 %v6565_v10  ;;  %v6760_v10 = vld [vmem:[#allocation8 + $0x1c0] sm:$0xf]  ;;  %v6770_v50 = vld [vmem:[#allocation8 + $0x1d8] sm:$0xf0] }
 0x165   :  { %2657 = vmatpush.bf16.msrb.mxu1 %v6629_v11  ;;  %v8511_v11 = vld [vmem:[#allocation8 + $0x1c4] sm:$0xf0] }
 0x166   :  { %2670 = vmatpush.bf16.msrb.mxu2 %v6693_v49  ;;  %v8512_v49 = vld [vmem:[#allocation8 + $0x1d4] sm:$0xf] }
 0x167   :  { %2645 = vmatpush.bf16.msrb.mxu0 %v6557_v8  ;;  %v6773_v37 = vor.u32 %v8512_v49, %v6770_v50  ;;  %v8522_v49 = vld [vmem:[#allocation10 + $0x20] sm:$0xff]  ;;  %v8521_v50 = vld [vmem:[#allocation10 + $0x18] sm:$0xff] }
 0x169   :  { %2658 = vmatpush.bf16.msrb.mxu1 %v6621_v28  ;;  %v6744_v28 = vld [vmem:[#allocation8 + $0x1a0] sm:$0xf] }
 0x16a   :  { %2671 = vmatpush.bf16.msrb.mxu2 %v6685_v59  ;;  %v6745_v13 = vor.u32 %v8507_v29, %v6744_v28  ;;  %v8508_v59 = vld [vmem:[#allocation8 + $0x1b4] sm:$0xf] }
 0x16b   :  { %2646 = vmatpush.bf16.msrb.mxu0 %v6549_v39  ;;  %v8503_v39 = vld [vmem:[#allocation8 + $0x184] sm:$0xf0]  ;;  %v6757_v62 = vor.u32 %v8508_v59, %v6754_v60  ;;  %v8529_v59 = vld [vmem:[#allocation10 + $0x58] sm:$0xff]  ;;  %v8528_v60 = vld [vmem:[#allocation10 + $0x50] sm:$0xff] }
 0x16c   :  { %v6729_v32 = vor.u32 %v8503_v39, %v6728_v41 }
 0x16d   :  { %2659 = vmatpush.bf16.msrb.mxu1 %v6613_v43  ;;  %v6786_v43 = vld [vmem:[#allocation8 + $0x1f8] sm:$0xf0] }
 0x16e   :  { %2672 = vmatpush.bf16.msrb.mxu2 %v6677_v63  ;;  %v6789_v45 = vor.u32 %v8516_v24, %v6786_v43  ;;  %v8506_v63 = vld [vmem:[#allocation8 + $0x1a4] sm:$0xf] }
 0x16f   :  { %2647 = vmatpush.bf16.msrb.mxu0 %v6541_v55  ;;  %v2043_v26 = vpop.f32.mrf.mxu0  ;;  %v6762_v55 = vld [vmem:[#allocation8 + $0x1c8] sm:$0xf0] }
 0x170   :  { %v2044_v20 = vadd.f32 %v2043_v26, %v2031_v3  ;;  %v8504_v3 = vld [vmem:[#allocation8 + $0x194] sm:$0xf] }
 0x171   :  { %2660 = vmatpush.bf16.msrb.mxu1 %v6605_v57  ;;  %v2056_v22 = vpop.f32.mrf.mxu1  ;;  %v6765_v57 = vor.u32 %v8510_v54, %v6762_v55  ;;  %v6741_v6 = vor.u32 %v8504_v3, %v6738_v4  ;;  %v8519_v55 = vld [vmem:[#allocation10 + $0x8] sm:$0xff]  ;;  %v6904_v3 = vld [vmem:[#allocation11 + $0x60] sm:$0xf] }
 0x172   :  { %2648 = vmatmul.bf16.vlgmr.msrb.gmra.mxu0 %v9393_v47  ;;  %2673 = vmatpush.bf16.msrb.mxu2 %v6669_v18  ;;  %v2057_v47 = vadd.f32 %v2056_v22, %v2044_v20  ;;  %v6749_v18 = vor.u32 %v8506_v63, %v6746_v0  ;;  %v6733_v20 = vor.u32 %v8502_v7, %v6730_v19  ;;  %v6912_v63 = vld [vmem:[#allocation11 + $0x70] sm:$0xf]  ;;  %v8549_v0 = vld [vmem:[#allocation11 + $0x74] sm:$0xf0]  ;;  %v8547_v4 = vld [vmem:[#allocation11 + $0x64] sm:$0xf0] }
 0x173   :  { %v6906_v7 = vld [vmem:[#allocation11 + $0x68] sm:$0xf0]  ;;  %v6905_v19 = vor.u32 %v8547_v4, %v6904_v3  ;;  %v8610_v3 = vld [vmem:[#allocation14 + $0x1e4] sm:$0xf]  ;;  %v7162_v4 = vld [vmem:[#allocation14 + $0x1f0] sm:$0xf0] }
 0x174   :  { %2661 = vmatmul.bf16.vlgmr.msrb.gmra.mxu1 %v9391_v46  ;;  %v6761_v46 = vor.u32 %v8511_v11, %v6760_v10 }
 0x175   :  { %2841 = vmatpush.bf16.msra.mxu1 %v8533_v44 }
 0x176   :  { %2630 = vmatpush.bf16.msra.mxu3 %v6761_v46 }
 0x177   :  { %v2069_v12 = vpop.f32.mrf.mxu2  ;;  %v2045_v23 = vpop.f32.mrf.mxu0 }
 0x178   :  { %v2070_v14 = vadd.f32 %v2069_v12, %v2057_v47 }
 0x179   :  { %v2058_v25 = vpop.f32.mrf.mxu1 }
 0x17a   :  { %v2082_v15 = vpop.f32.mrf.mxu3  ;;  %2631 = vmatpush.bf16.msra.mxu3 %v6753_v27 }
 0x17b   :  { %v2083_v21 = vadd.f32 %v2082_v15, %v2070_v14 }
 0x17d   :  { %v2192_v8 = vmax.f32 %v2083_v21, 0.0 }
 0x17e   :  { %2632 = vmatpush.bf16.msra.mxu3 %v6745_v13 }
 0x17f   :  { %v2196_v30 = vpack.c.bf16 %v2192_v8, %v2192_v8  ;;  %v2071_v31 = vpop.f32.mrf.mxu2  ;;  %v2262_v8 = vld [vmem:[%s9520_s4] sm:$0x3] }
 0x180   :  { %v2264_v28 = vperm.slane %v2262_v8, 0  ;;  %v2265_v35 = vperm.slane %v2262_v8, 1 }
 0x181   :  { %2622 = vmatmul.bf16.vlgmr.msra.gmra.mxu2 %v2196_v30 }
 0x182   :  { %v2084_v33 = vpop.f32.mrf.mxu3  ;;  %2633 = vmatpush.bf16.msra.mxu3 %v6737_v36 }
 0x186   :  { %2634 = vmatpush.bf16.msra.mxu3 %v6729_v32 }
 0x18a   :  { %2679 = vmatpush.bf16.msrb.mxu3 %v6789_v45  ;;  %v8525_v45 = vld [vmem:[#allocation10 + $0x38] sm:$0xff] }
 0x18b   :  { %2828 = vmatpush.bf16.msra.mxu0 %v8525_v45  ;;  %v8538_v45 = vld [vmem:[#allocation11 + $0x24] sm:$0xf] }
 0x18e   :  { %2680 = vmatpush.bf16.msrb.mxu3 %v6781_v42  ;;  %v8523_v42 = vld [vmem:[#allocation10 + $0x28] sm:$0xff] }
 0x18f   :  { %v2095_v52 = vpop.f32.mrf.mxu0  ;;  %2829 = vmatpush.bf16.msra.mxu0 %v8524_v38  ;;  %v6874_v38 = vld [vmem:[#allocation11 + $0x28] sm:$0xf0] }
 0x190   :  { %v2096_v5 = vadd.f32 %v2095_v52, %v461_v61  ;;  %v8532_v52 = vld [vmem:[#allocation10 + $0x70] sm:$0xff]  ;;  %v8527_v61 = vld [vmem:[#allocation10 + $0x48] sm:$0xff] }
 0x191   :  { %2674 = vmatmul.bf16.vlgmr.msrb.gmra.mxu2 %v2196_v30  ;;  %v2108_v48 = vpop.f32.mrf.mxu1  ;;  %2842 = vmatpush.bf16.msra.mxu1 %v8532_v52  ;;  %v6864_v52 = vld [vmem:[#allocation11 + $0x10] sm:$0xf] }
 0x192   :  { %2681 = vmatpush.bf16.msrb.mxu3 %v6773_v37  ;;  %v2109_v26 = vadd.f32 %v2108_v48, %v2096_v5 }
 0x193   :  { %2830 = vmatpush.bf16.msra.mxu0 %v8523_v42  ;;  %v8537_v42 = vld [vmem:[#allocation11 + $0x14] sm:$0xf0] }
 0x196   :  { %2682 = vmatpush.bf16.msrb.mxu3 %v6765_v57  ;;  %v8518_v57 = vld [vmem:[#allocation10] sm:$0xff] }
 0x197   :  { %v2121_v51 = vpop.f32.mrf.mxu2  ;;  %v2097_v56 = vpop.f32.mrf.mxu0  ;;  %2831 = vmatpush.bf16.msra.mxu0 %v8522_v49  ;;  %v8536_v49 = vld [vmem:[#allocation11 + $0x14] sm:$0xf] }
 0x198   :  { %v2122_v22 = vadd.f32 %v2121_v51, %v2109_v26  ;;  %v8520_v51 = vld [vmem:[#allocation10 + $0x10] sm:$0xff]  ;;  %v8531_v56 = vld [vmem:[#allocation10 + $0x68] sm:$0xff] }
 0x199   :  { %v2110_v58 = vpop.f32.mrf.mxu1  ;;  %2843 = vmatpush.bf16.msra.mxu1 %v8531_v56 }
 0x19a   :  { %v2134_v53 = vpop.f32.mrf.mxu3  ;;  %2683 = vmatpush.bf16.msrb.mxu3 %v6757_v62  ;;  %v8530_v58 = vld [vmem:[#allocation10 + $0x60] sm:$0xff] }
 0x19b   :  { %v2135_v40 = vadd.f32 %v2134_v53, %v2122_v22  ;;  %2832 = vmatpush.bf16.msra.mxu0 %v8521_v50  ;;  %v8526_v62 = vld [vmem:[#allocation10 + $0x40] sm:$0xff]  ;;  %v8545_v22 = vld [vmem:[#allocation11 + $0x54] sm:$0xf0]  ;;  %v6866_v50 = vld [vmem:[#allocation11 + $0x18] sm:$0xf0] }
 0x19d   :  { %2844 = vmatpush.bf16.msra.mxu1 %v8530_v58 }
 0x19e   :  { %2684 = vmatpush.bf16.msrb.mxu3 %v6749_v18  ;;  %v6914_v18 = vld [vmem:[#allocation11 + $0x78] sm:$0xf0] }
 0x19f   :  { %v2123_v1 = vpop.f32.mrf.mxu2  ;;  %2833 = vmatpush.bf16.msra.mxu0 %v8520_v51  ;;  %v6869_v51 = vor.u32 %v8536_v49, %v6866_v50  ;;  %v6970_v49 = vld [vmem:[#allocation14 + $0x70] sm:$0xf0]  ;;  %v8594_v50 = vld [vmem:[#allocation14 + $0x164] sm:$0xf] }
 0x1a0   :  { %v8548_v1 = vld [vmem:[#allocation11 + $0x74] sm:$0xf] }
 0x1a1   :  { %2845 = vmatpush.bf16.msra.mxu1 %v8529_v59  ;;  %v6917_v5 = vor.u32 %v8548_v1, %v6914_v18  ;;  %v7032_v59 = vld [vmem:[#allocation14 + $0xe0] sm:$0xf]  ;;  %v7034_v1 = vld [vmem:[#allocation14 + $0xf0] sm:$0xf0] }
 0x1a2   :  { %v2136_v2 = vpop.f32.mrf.mxu3  ;;  %2685 = vmatpush.bf16.msrb.mxu3 %v6741_v6  ;;  %v8546_v6 = vld [vmem:[#allocation11 + $0x64] sm:$0xf] }
 0x1a3   :  { %2834 = vmatpush.bf16.msra.mxu0 %v8519_v55  ;;  %v6913_v2 = vor.u32 %v8549_v0, %v6912_v63  ;;  %v6909_v26 = vor.u32 %v8546_v6, %v6906_v7  ;;  %v8534_v55 = vld [vmem:[#allocation11 + $0x4] sm:$0xf]  ;;  %v8612_v63 = vld [vmem:[#allocation14 + $0x1ec] sm:$0xf0]  ;;  %v7165_v6 = vor.u32 %v8610_v3, %v7162_v4 }
 0x1a4   :  { %v8578_v0 = vld [vmem:[#allocation14 + $0xe4] sm:$0xf]  ;;  %v8576_v7 = vld [vmem:[#allocation14 + $0xcc] sm:$0xf0]  ;;  %v6936_v4 = vld [vmem:[#allocation14 + $0x20] sm:$0xf] }
 0x1a5   :  { %2846 = vmatpush.bf16.msra.mxu1 %v8528_v60  ;;  %2958 = vmatpush.bf16.msra.mxu2 %v6913_v2  ;;  %v8580_v60 = vld [vmem:[#allocation14 + $0xec] sm:$0xf0]  ;;  %v7037_v18 = vor.u32 %v8578_v0, %v7034_v1  ;;  %v7082_v0 = vld [vmem:[#allocation14 + $0x150] sm:$0xf0]  ;;  %v8890_v1 = vld [vmem:[%s9522_s6] ss:$0 sm:$0xff] }
 0x1a6   :  { %2686 = vmatpush.bf16.msrb.mxu3 %v6733_v20  ;;  %v6896_v20 = vld [vmem:[#allocation11 + $0x50] sm:$0xf] }
 0x1a7   :  { %2835 = vmatpush.bf16.msra.mxu0 %v8518_v57  ;;  %v6858_v57 = vld [vmem:[#allocation11 + $0x8] sm:$0xf0] }
 0x1a8   :  { %v6861_v58 = vor.u32 %v8534_v55, %v6858_v57  ;;  %v8560_v57 = vld [vmem:[#allocation14 + $0x4c] sm:$0xf0] }
 0x1a9   :  { %2847 = vmatpush.bf16.msra.mxu1 %v8527_v61  ;;  %2959 = vmatpush.bf16.msra.mxu2 %v6905_v19  ;;  %v7160_v61 = vld [vmem:[#allocation14 + $0x1e0] sm:$0xf] }
 0x1aa   :  { %v7161_v2 = vor.u32 %v8612_v63, %v7160_v61  ;;  %v7144_v19 = vld [vmem:[#allocation14 + $0x1c0] sm:$0xf]  ;;  %v8558_v61 = vld [vmem:[#allocation14 + $0x44] sm:$0xf] }
 0x1ab   :  { %v8590_v63 = vld [vmem:[#allocation14 + $0x144] sm:$0xf] }
 0x1ad   :  { %2848 = vmatpush.bf16.msra.mxu1 %v8526_v62  ;;  %v7033_v62 = vor.u32 %v8580_v60, %v7032_v59  ;;  %v8592_v60 = vld [vmem:[#allocation14 + $0x14c] sm:$0xf0] }
 0x1af   :  { %v2147_v9 = vpop.f32.mrf.mxu0  ;;  %3382 = vmatpush.bf16.msrb.mxu0 %v7033_v62  ;;  %v6954_v62 = vld [vmem:[#allocation14 + $0x50] sm:$0xf0] }
 0x1b0   :  { %v2148_v10 = vadd.f32 %v2147_v9, %v2135_v40  ;;  %v8544_v40 = vld [vmem:[#allocation11 + $0x54] sm:$0xf]  ;;  %v6898_v9 = vld [vmem:[#allocation11 + $0x58] sm:$0xf0]  ;;  %v6957_v3 = vor.u32 %v8558_v61, %v6954_v62  ;;  %v7136_v61 = vld [vmem:[#allocation14 + $0x1a8] sm:$0xf] }
 0x1b1   :  { %v2160_v47 = vpop.f32.mrf.mxu1  ;;  %3395 = vmatpush.bf16.msrb.mxu1 %v7161_v2 }
 0x1b2   :  { %v2161_v11 = vadd.f32 %v2160_v47, %v2148_v10  ;;  %v6897_v10 = vor.u32 %v8545_v22, %v6896_v20 }
 0x1b4   :  { %2960 = vmatpush.bf16.msra.mxu2 %v6897_v10 }
 0x1b7   :  { %v2173_v12 = vpop.f32.mrf.mxu2  ;;  %v2149_v15 = vpop.f32.mrf.mxu0 }
 0x1b8   :  { %v2174_v46 = vadd.f32 %v2173_v12, %v2161_v11  ;;  %v2186_v14 = vpop.f32.mrf.mxu3  ;;  %v6901_v12 = vor.u32 %v8544_v40, %v6898_v9  ;;  %v8574_v40 = vld [vmem:[#allocation14 + $0xc4] sm:$0xf]  ;;  %v7018_v9 = vld [vmem:[#allocation14 + $0xd0] sm:$0xf0] }
 0x1b9   :  { %v2162_v16 = vpop.f32.mrf.mxu1  ;;  %v7021_v10 = vor.u32 %v8574_v40, %v7018_v9  ;;  %v7066_v40 = vld [vmem:[#allocation14 + $0x130] sm:$0xf0] }
 0x1ba   :  { %v2187_v17 = vadd.f32 %v2186_v14, %v2174_v46 }
 0x1bc   :  { %v2193_v21 = vmax.f32 %v2187_v17, 0.0 }
 0x1be   :  { %v2197_v23 = vpack.c.bf16 %v2193_v21, %v2193_v21 }
 0x1bf   :  { %v2175_v25 = vpop.f32.mrf.mxu2 }
 0x1c0   :  { %v2188_v27 = vpop.f32.mrf.mxu3  ;;  %2635 = vmatmul.bf16.vlgmr.msra.gmra.mxu3 %v2197_v23 }
 0x1c1   :  { %2971 = vmatpush.bf16.msra.mxu3 %v6917_v5  ;;  %v7016_v5 = vld [vmem:[#allocation14 + $0xc0] sm:$0xf] }
 0x1c2   :  { %v7017_v20 = vor.u32 %v8576_v7, %v7016_v5  ;;  %v8556_v5 = vld [vmem:[#allocation14 + $0x2c] sm:$0xf0]  ;;  %v7085_v7 = vor.u32 %v8590_v63, %v7082_v0  ;;  %v8605_v63 = vld [vmem:[#allocation14 + $0x1b4] sm:$0xf0]  ;;  %v8571_v0 = vld [vmem:[#allocation14 + $0xac] sm:$0xf] }
 0x1c4   :  { %3383 = vmatpush.bf16.msrb.mxu0 %v7017_v20  ;;  %v6938_v20 = vld [vmem:[#allocation14 + $0x30] sm:$0xf0] }
 0x1c5   :  { %2972 = vmatpush.bf16.msra.mxu3 %v6909_v26  ;;  %v8608_v26 = vld [vmem:[#allocation14 + $0x1cc] sm:$0xf0] }
 0x1c6   :  { %v7145_v22 = vor.u32 %v8608_v26, %v7144_v19  ;;  %v8588_v19 = vld [vmem:[#allocation14 + $0x12c] sm:$0xf0]  ;;  %v8554_v26 = vld [vmem:[#allocation14 + $0x24] sm:$0xf] }
 0x1c8   :  { %3396 = vmatpush.bf16.msrb.mxu1 %v7145_v22  ;;  %v8586_v22 = vld [vmem:[#allocation14 + $0x124] sm:$0xf] }
 0x1c9   :  { %2973 = vmatpush.bf16.msra.mxu3 %v6901_v12  ;;  %v7000_v12 = vld [vmem:[#allocation14 + $0xa0] sm:$0xf] }
 0x1cf   :  { %v2597_v29 = vpop.f32.mrf.mxu0 }
 0x1d0   :  { %v2598_v30 = vadd.f32 %v2597_v29, %v2264_v28  ;;  %2687 = vmatmul.bf16.vlgmr.msrb.gmra.mxu3 %v2197_v23  ;;  %v6888_v28 = vld [vmem:[#allocation11 + $0x40] sm:$0xf]  ;;  %v8543_v29 = vld [vmem:[#allocation11 + $0x44] sm:$0xf0] }
 0x1d1   :  { %v2610_v31 = vpop.f32.mrf.mxu1 }
 0x1d2   :  { %v9409_v13 = vadd.f32 %v2610_v31, %v2598_v30  ;;  %v8542_v30 = vld [vmem:[#allocation11 + $0x44] sm:$0xf]  ;;  %v6889_v31 = vor.u32 %v8543_v29, %v6888_v28 }
 0x1d4   :  { %2961 = vmatpush.bf16.msra.mxu2 %v6889_v31  ;;  %v8568_v31 = vld [vmem:[#allocation14 + $0x8c] sm:$0xf0] }
 0x1d7   :  { %v2599_v33 = vpop.f32.mrf.mxu0 }
 0x1d8   :  { %v6880_v33 = vld [vmem:[#allocation11 + $0x30] sm:$0xf] }
 0x1d9   :  { %v2612_v34 = vpop.f32.mrf.mxu1 }
 0x1da   :  { %v8541_v34 = vld [vmem:[#allocation11 + $0x34] sm:$0xf0] }
 0x1ef   :  { %v2649_v36 = vpop.f32.mrf.mxu0 }
 0x1f0   :  { %v2650_v41 = vadd.f32 %v2649_v36, %v2265_v35  ;;  %v8540_v36 = vld [vmem:[#allocation11 + $0x34] sm:$0xf] }
 0x1f1   :  { %v2662_v39 = vpop.f32.mrf.mxu1 }
 0x1f2   :  { %v9411_v32 = vadd.f32 %v2662_v39, %v2650_v41  ;;  %v6882_v41 = vld [vmem:[#allocation11 + $0x38] sm:$0xf0]  ;;  %v6881_v39 = vor.u32 %v8541_v34, %v6880_v33  ;;  %v8600_v34 = vld [vmem:[#allocation14 + $0x18c] sm:$0xf0] }
 0x1f4   :  { %2962 = vmatpush.bf16.msra.mxu2 %v6881_v39  ;;  %v7114_v39 = vld [vmem:[#allocation14 + $0x190] sm:$0xf0] }
 0x1f7   :  { %v2651_v24 = vpop.f32.mrf.mxu0 }
 0x1f8   :  { %v6872_v24 = vld [vmem:[#allocation11 + $0x20] sm:$0xf] }
 0x1f9   :  { %v2664_v43 = vpop.f32.mrf.mxu1 }
 0x1fa   :  { %v8539_v43 = vld [vmem:[#allocation11 + $0x24] sm:$0xf0] }
 0x1fb   :  { %v6873_v44 = vor.u32 %v8539_v43, %v6872_v24 }
 0x1fd   :  { %2963 = vmatpush.bf16.msra.mxu2 %v6873_v44  ;;  %v8564_v44 = vld [vmem:[#allocation14 + $0x6c] sm:$0xf0] }
 0x204   :  { %v2623_v48 = vpop.f32.mrf.mxu2 }
 0x205   :  { %v2624_v47 = vadd.f32 %v2623_v48, %v9409_v13  ;;  %v6890_v13 = vld [vmem:[#allocation11 + $0x48] sm:$0xf0]  ;;  %v6877_v48 = vor.u32 %v8538_v45, %v6874_v38  ;;  %v6968_v45 = vld [vmem:[#allocation14 + $0x60] sm:$0xf] }
 0x206   :  { %v6893_v35 = vor.u32 %v8542_v30, %v6890_v13  ;;  %v6984_v30 = vld [vmem:[#allocation14 + $0x80] sm:$0xf] }
 0x207   :  { %v7112_v13 = vld [vmem:[#allocation14 + $0x180] sm:$0xf] }
 0x208   :  { %2974 = vmatpush.bf16.msra.mxu3 %v6893_v35  ;;  %v8566_v35 = vld [vmem:[#allocation14 + $0x84] sm:$0xf]  ;;  %v7113_v24 = vor.u32 %v8600_v34, %v7112_v13  ;;  %v7096_v38 = vld [vmem:[#allocation14 + $0x160] sm:$0xf]  ;;  %v8579_v34 = vld [vmem:[#allocation14 + $0xec] sm:$0xf] }
 0x20c   :  { %v2625_v37 = vpop.f32.mrf.mxu2 }
 0x20d   :  { %v6865_v37 = vor.u32 %v8537_v42, %v6864_v52  ;;  %v8596_v42 = vld [vmem:[#allocation14 + $0x16c] sm:$0xf0] }
 0x20f   :  { %2964 = vmatpush.bf16.msra.mxu2 %v6865_v37  ;;  %v7098_v37 = vld [vmem:[#allocation14 + $0x170] sm:$0xf0] }
 0x210   :  { %v7101_v59 = vor.u32 %v8594_v50, %v7098_v37  ;;  %v8575_v50 = vld [vmem:[#allocation14 + $0xcc] sm:$0xf]  ;;  %v7026_v37 = vld [vmem:[#allocation14 + $0xd8] sm:$0xf0] }
 0x214   :  { %v2675_v53 = vpop.f32.mrf.mxu2 }
 0x215   :  { %v2676_v17 = vadd.f32 %v2675_v53, %v9411_v32  ;;  %v6885_v32 = vor.u32 %v8540_v36, %v6882_v41  ;;  %v6856_v53 = vld [vmem:[#allocation11] sm:$0xf]  ;;  %v6986_v36 = vld [vmem:[#allocation14 + $0x90] sm:$0xf0]  ;;  %v8598_v41 = vld [vmem:[#allocation14 + $0x184] sm:$0xf] }
 0x216   :  { %v6989_v43 = vor.u32 %v8566_v35, %v6986_v36  ;;  %v7117_v52 = vor.u32 %v8598_v41, %v7114_v39  ;;  %v7042_v35 = vld [vmem:[#allocation14 + $0xf8] sm:$0xf0]  ;;  %v8611_v39 = vld [vmem:[#allocation14 + $0x1ec] sm:$0xf] }
 0x217   :  { %2975 = vmatpush.bf16.msra.mxu3 %v6885_v32  ;;  %v6985_v32 = vor.u32 %v8568_v31, %v6984_v30  ;;  %v7168_v30 = vld [vmem:[#allocation14 + $0x1e8] sm:$0xf]  ;;  %v8613_v31 = vld [vmem:[#allocation14 + $0x1f4] sm:$0xf0] }
 0x21b   :  { %2976 = vmatpush.bf16.msra.mxu3 %v6877_v48  ;;  %v8562_v48 = vld [vmem:[#allocation14 + $0x64] sm:$0xf] }
 0x21c   :  { %v2677_v54 = vpop.f32.mrf.mxu2  ;;  %v6973_v55 = vor.u32 %v8562_v48, %v6970_v49  ;;  %v8609_v48 = vld [vmem:[#allocation14 + $0x1d4] sm:$0xf0] }
 0x21d   :  { %v8535_v54 = vld [vmem:[#allocation11 + $0x4] sm:$0xf0] }
 0x21e   :  { %v6857_v56 = vor.u32 %v8535_v54, %v6856_v53  ;;  %v7097_v54 = vor.u32 %v8596_v42, %v7096_v38  ;;  %v7045_v38 = vor.u32 %v8579_v34, %v7042_v35  ;;  %v7152_v42 = vld [vmem:[#allocation14 + $0x1c8] sm:$0xf] }
 0x21f   :  { %2977 = vmatpush.bf16.msra.mxu3 %v6869_v51  ;;  %v6969_v51 = vor.u32 %v8564_v44, %v6968_v45  ;;  %v7024_v45 = vld [vmem:[#allocation14 + $0xc8] sm:$0xf] }
 0x220   :  { %2965 = vmatpush.bf16.msra.mxu2 %v6857_v56  ;;  %v6952_v56 = vld [vmem:[#allocation14 + $0x40] sm:$0xf] }
 0x221   :  { %v6953_v2 = vor.u32 %v8560_v57, %v6952_v56  ;;  %v7153_v56 = vor.u32 %v8609_v48, %v7152_v42  ;;  %v7029_v57 = vor.u32 %v8575_v50, %v7026_v37  ;;  %v8555_v42 = vld [vmem:[#allocation14 + $0x2c] sm:$0xf]  ;;  %v7074_v37 = vld [vmem:[#allocation14 + $0x138] sm:$0xf0] }
 0x222   :  { %v8587_v50 = vld [vmem:[#allocation14 + $0x12c] sm:$0xf] }
 0x223   :  { %2978 = vmatpush.bf16.msra.mxu3 %v6861_v58  ;;  %v7080_v58 = vld [vmem:[#allocation14 + $0x140] sm:$0xf] }
 0x224   :  { %3408 = vmatpush.bf16.msrb.mxu2 %v7037_v18  ;;  %v7081_v18 = vor.u32 %v8592_v60, %v7080_v58  ;;  %v8573_v60 = vld [vmem:[#allocation14 + $0xb4] sm:$0xf0] }
 0x227   :  { %3421 = vmatpush.bf16.msrb.mxu3 %v7165_v6  ;;  %v7064_v6 = vld [vmem:[#allocation14 + $0x120] sm:$0xf] }
 0x228   :  { %3409 = vmatpush.bf16.msrb.mxu2 %v7021_v10  ;;  %v6920_v10 = vld [vmem:[#allocation14] sm:$0xf] }
 0x243   :  { %v2636_v11 = vpop.f32.mrf.mxu3 }
 0x244   :  { %v2637_v46 = vadd.f32 %v2636_v11, %v2624_v47  ;;  %v8606_v47 = vld [vmem:[#allocation14 + $0x1c4] sm:$0xf]  ;;  %v7146_v11 = vld [vmem:[#allocation14 + $0x1d0] sm:$0xf0] }
 0x246   :  { %v2692_v14 = vmax.f32 %v2637_v46, 0.0  ;;  %v8572_v46 = vld [vmem:[#allocation14 + $0xac] sm:$0xf0] }
 0x248   :  { %v2694_v15 = vpack.c.bf16 %v2692_v14, %v2692_v14  ;;  %v7149_v14 = vor.u32 %v8606_v47, %v7146_v11  ;;  %v6937_v47 = vor.u32 %v8556_v5, %v6936_v4  ;;  %v8552_v11 = vld [vmem:[#allocation14 + $0xc] sm:$0xf0]  ;;  %v7138_v4 = vld [vmem:[#allocation14 + $0x1b8] sm:$0xf0] }
 0x24a   :  { %2836 = vmatmul.bf16.vlgmr.msra.gmra.mxu0 %v2694_v15  ;;  %v7128_v15 = vld [vmem:[#allocation14 + $0x1a0] sm:$0xf]  ;;  %3422 = vmatpush.bf16.msrb.mxu3 %v7149_v14  ;;  %v7065_v14 = vor.u32 %v8588_v19, %v7064_v6  ;;  %v6992_v6 = vld [vmem:[#allocation14 + $0x88] sm:$0xf] }
 0x24b   :  { %v2638_v16 = vpop.f32.mrf.mxu3  ;;  %v7120_v19 = vld [vmem:[#allocation14 + $0x188] sm:$0xf] }
 0x24c   :  { %v8604_v16 = vld [vmem:[#allocation14 + $0x1ac] sm:$0xf0] }
 0x24d   :  { %v7129_v28 = vor.u32 %v8604_v16, %v7128_v15  ;;  %v6941_v15 = vor.u32 %v8554_v26, %v6938_v20  ;;  %v8584_v16 = vld [vmem:[#allocation14 + $0x10c] sm:$0xf0]  ;;  %v8601_v20 = vld [vmem:[#allocation14 + $0x194] sm:$0xf0] }
 0x24f   :  { %3397 = vmatpush.bf16.msrb.mxu1 %v7129_v28  ;;  %v7040_v28 = vld [vmem:[#allocation14 + $0xe8] sm:$0xf] }
 0x253   :  { %v2688_v21 = vpop.f32.mrf.mxu3  ;;  %3398 = vmatpush.bf16.msrb.mxu1 %v7113_v24 }
 0x254   :  { %v2689_v23 = vadd.f32 %v2688_v21, %v2676_v17  ;;  %v8570_v17 = vld [vmem:[#allocation14 + $0xa4] sm:$0xf]  ;;  %v7001_v21 = vor.u32 %v8572_v46, %v7000_v12  ;;  %v7048_v12 = vld [vmem:[#allocation14 + $0x100] sm:$0xf] }
 0x255   :  { %v7049_v36 = vor.u32 %v8584_v16, %v7048_v12 }
 0x256   :  { %v2693_v25 = vmax.f32 %v2689_v23, 0.0  ;;  %v7002_v23 = vld [vmem:[#allocation14 + $0xb0] sm:$0xf0]  ;;  %3384 = vmatpush.bf16.msrb.mxu0 %v7001_v21 }
 0x257   :  { %v7005_v29 = vor.u32 %v8570_v17, %v7002_v23  ;;  %3399 = vmatpush.bf16.msrb.mxu1 %v7097_v54  ;;  %v8550_v17 = vld [vmem:[#allocation14 + $0x4] sm:$0xf]  ;;  %v6922_v21 = vld [vmem:[#allocation14 + $0x10] sm:$0xf0]  ;;  %v7154_v54 = vld [vmem:[#allocation14 + $0x1d8] sm:$0xf0] }
 0x258   :  { %v2695_v27 = vpack.c.bf16 %v2693_v25, %v2693_v25  ;;  %v8602_v25 = vld [vmem:[#allocation14 + $0x1a4] sm:$0xf]  ;;  %v6925_v41 = vor.u32 %v8550_v17, %v6922_v21  ;;  %v8597_v17 = vld [vmem:[#allocation14 + $0x174] sm:$0xf0]  ;;  %v8563_v21 = vld [vmem:[#allocation14 + $0x6c] sm:$0xf] }
 0x259   :  { %3410 = vmatpush.bf16.msrb.mxu2 %v7005_v29  ;;  %v7069_v29 = vor.u32 %v8586_v22, %v7066_v40  ;;  %v8567_v22 = vld [vmem:[#allocation14 + $0x8c] sm:$0xf]  ;;  %v6994_v40 = vld [vmem:[#allocation14 + $0x98] sm:$0xf0] }
 0x25a   :  { %2849 = vmatmul.bf16.vlgmr.msra.gmra.mxu1 %v2695_v27  ;;  %v7130_v27 = vld [vmem:[#allocation14 + $0x1b0] sm:$0xf0]  ;;  %3385 = vmatpush.bf16.msrb.mxu0 %v6985_v32  ;;  %v7170_v32 = vld [vmem:[#allocation14 + $0x1f8] sm:$0xf0] }
 0x25b   :  { %v2690_v8 = vpop.f32.mrf.mxu3  ;;  %v7133_v33 = vor.u32 %v8602_v25, %v7130_v27  ;;  %3400 = vmatpush.bf16.msrb.mxu1 %v7081_v18  ;;  %v8582_v25 = vld [vmem:[#allocation14 + $0x104] sm:$0xf]  ;;  %v7050_v27 = vld [vmem:[#allocation14 + $0x110] sm:$0xf0]  ;;  %v7173_v49 = vor.u32 %v8611_v39, %v7170_v32  ;;  %v8591_v39 = vld [vmem:[#allocation14 + $0x14c] sm:$0xf] }
 0x25c   :  { %v7053_v44 = vor.u32 %v8582_v25, %v7050_v27 }
 0x25d   :  { %3423 = vmatpush.bf16.msrb.mxu3 %v7133_v33  ;;  %3411 = vmatpush.bf16.msrb.mxu2 %v6989_v43  ;;  %v6921_v33 = vor.u32 %v8552_v11, %v6920_v10  ;;  %v7169_v43 = vor.u32 %v8613_v31, %v7168_v30  ;;  %v8599_v10 = vld [vmem:[#allocation14 + $0x18c] sm:$0xf]  ;;  %v7122_v11 = vld [vmem:[#allocation14 + $0x198] sm:$0xf0]  ;;  %v8561_v31 = vld [vmem:[#allocation14 + $0x54] sm:$0xf0] }
 0x25e   :  { %3386 = vmatpush.bf16.msrb.mxu0 %v6969_v51  ;;  %v7125_v12 = vor.u32 %v8599_v10, %v7122_v11 }
 0x25f   :  { %3401 = vmatpush.bf16.msrb.mxu1 %v7065_v14  ;;  %v8565_v14 = vld [vmem:[#allocation14 + $0x74] sm:$0xf0] }
 0x261   :  { %3424 = vmatpush.bf16.msrb.mxu3 %v7117_v52  ;;  %3412 = vmatpush.bf16.msrb.mxu2 %v6973_v55  ;;  %v8577_v52 = vld [vmem:[#allocation14 + $0xd4] sm:$0xf0] }
 0x262   :  { %3387 = vmatpush.bf16.msrb.mxu0 %v6953_v2  ;;  %v7025_v55 = vor.u32 %v8577_v52, %v7024_v45  ;;  %v7137_v2 = vor.u32 %v8605_v63, %v7136_v61  ;;  %v8557_v45 = vld [vmem:[#allocation14 + $0x34] sm:$0xf0]  ;;  %v8583_v61 = vld [vmem:[#allocation14 + $0x10c] sm:$0xf] }
 0x263   :  { %3402 = vmatpush.bf16.msrb.mxu1 %v7049_v36  ;;  %v8559_v36 = vld [vmem:[#allocation14 + $0x4c] sm:$0xf]  ;;  %v8589_v52 = vld [vmem:[#allocation14 + $0x134] sm:$0xf0] }
 0x265   :  { %3425 = vmatpush.bf16.msrb.mxu3 %v7101_v59  ;;  %3413 = vmatpush.bf16.msrb.mxu2 %v6957_v3  ;;  %v7008_v59 = vld [vmem:[#allocation14 + $0xa8] sm:$0xf]  ;;  %v8603_v3 = vld [vmem:[#allocation14 + $0x1ac] sm:$0xf] }
 0x266   :  { %3388 = vmatpush.bf16.msrb.mxu0 %v6937_v47  ;;  %v7009_v62 = vor.u32 %v8573_v60, %v7008_v59  ;;  %v7141_v5 = vor.u32 %v8603_v3, %v7138_v4  ;;  %v6997_v47 = vor.u32 %v8567_v22, %v6994_v40  ;;  %v8551_v59 = vld [vmem:[#allocation14 + $0xc] sm:$0xf]  ;;  %v6930_v60 = vld [vmem:[#allocation14 + $0x18] sm:$0xf0]  ;;  %v7656_v22 = vld [vmem:[#allocation17 + $0x3c0] sm:$0xf] }
 0x267   :  { %3447 = vmatpush.bf16.msra.mxu1 %v7169_v43  ;;  %v6944_v43 = vld [vmem:[#allocation14 + $0x28] sm:$0xf]  ;;  %v8738_v40 = vld [vmem:[#allocation17 + $0x3dc] sm:$0xf0] }
 0x268   :  { %v6945_v48 = vor.u32 %v8557_v45, %v6944_v43  ;;  %v7848_v45 = vld [vmem:[#allocation17 + $0x540] sm:$0xf] }
 0x269   :  { %3426 = vmatpush.bf16.msrb.mxu3 %v7085_v7  ;;  %3414 = vmatpush.bf16.msrb.mxu2 %v6941_v15  ;;  %v8569_v7 = vld [vmem:[#allocation14 + $0x94] sm:$0xf0]  ;;  %v7104_v15 = vld [vmem:[#allocation14 + $0x168] sm:$0xf] }
 0x26a   :  { %3389 = vmatpush.bf16.msrb.mxu0 %v6921_v33  ;;  %v6993_v26 = vor.u32 %v8569_v7, %v6992_v6  ;;  %v7105_v25 = vor.u32 %v8597_v17, %v7104_v15  ;;  %v8593_v33 = vld [vmem:[#allocation14 + $0x154] sm:$0xf0]  ;;  %v7368_v17 = vld [vmem:[#allocation17 + $0x180] sm:$0xf] }
 0x26b   :  { %3448 = vmatpush.bf16.msra.mxu1 %v7153_v56  ;;  %v7056_v56 = vld [vmem:[#allocation14 + $0x108] sm:$0xf] }
 0x26d   :  { %3427 = vmatpush.bf16.msrb.mxu3 %v7069_v29  ;;  %3415 = vmatpush.bf16.msrb.mxu2 %v6925_v41  ;;  %v7106_v29 = vld [vmem:[#allocation14 + $0x178] sm:$0xf0] }
 0x26e   :  { %v6962_v41 = vld [vmem:[#allocation14 + $0x58] sm:$0xf0] }
 0x26f   :  { %3449 = vmatpush.bf16.msra.mxu1 %v7137_v2  ;;  %v6965_v32 = vor.u32 %v8559_v36, %v6962_v41  ;;  %v7336_v36 = vld [vmem:[#allocation17 + $0x140] sm:$0xf] }
 0x270   :  { %v8658_v41 = vld [vmem:[#allocation17 + $0x15c] sm:$0xf0] }
 0x271   :  { %3428 = vmatpush.bf16.msrb.mxu3 %v7053_v44 }
 0x2c7   :  { %v9415_v8 = vpop.f32.mrf.mxu0 }
 0x2c8   :  { %v2838_v9 = vadd.f32 %v8890_v1, %v9415_v8  ;;  %v8581_v8 = vld [vmem:[#allocation14 + $0xf4] sm:$0xf0]  ;;  %v7010_v1 = vld [vmem:[#allocation14 + $0xb8] sm:$0xf0] }
 0x2c9   :  { %v7041_v24 = vor.u32 %v8581_v8, %v7040_v28  ;;  %v7013_v18 = vor.u32 %v8571_v0, %v7010_v1  ;;  %v8595_v28 = vld [vmem:[#allocation14 + $0x16c] sm:$0xf]  ;;  %v6960_v8 = vld [vmem:[#allocation14 + $0x48] sm:$0xf]  ;;  %v6933_v1 = vor.u32 %v8551_v59, %v6930_v60  ;;  %v8842_v59 = vld [vmem:[#allocation17 + $0x71c] sm:$0xf0] }
 0x2ca   :  { %v7109_v30 = vor.u32 %v8595_v28, %v7106_v29  ;;  %v6961_v34 = vor.u32 %v8561_v31, %v6960_v8  ;;  %v7880_v29 = vld [vmem:[#allocation17 + $0x580] sm:$0xf] }
 0x2cb   :  { %3434 = vmatpush.bf16.msra.mxu0 %v7041_v24  ;;  %v7090_v24 = vld [vmem:[#allocation14 + $0x158] sm:$0xf0]  ;;  %v8136_v31 = vld [vmem:[#allocation17 + $0x780] sm:$0xf] }
 0x2cc   :  { %v7093_v44 = vor.u32 %v8591_v39, %v7090_v24  ;;  %v8722_v24 = vld [vmem:[#allocation17 + $0x35c] sm:$0xf0] }
 0x2cf   :  { %v2839_v53 = vpop.f32.mrf.mxu0  ;;  %3435 = vmatpush.bf16.msra.mxu0 %v7025_v55  ;;  %v8553_v55 = vld [vmem:[#allocation14 + $0x14] sm:$0xf0] }
 0x2d0   :  { %v8607_v53 = vld [vmem:[#allocation14 + $0x1cc] sm:$0xf] }
 0x2d1   :  { %v7157_v58 = vor.u32 %v8607_v53, %v7154_v54  ;;  %v6928_v54 = vld [vmem:[#allocation14 + $0x8] sm:$0xf] }
 0x2d2   :  { %v6929_v63 = vor.u32 %v8553_v55, %v6928_v54  ;;  %v7816_v55 = vld [vmem:[#allocation17 + $0x500] sm:$0xf] }
 0x2d3   :  { %3436 = vmatpush.bf16.msra.mxu0 %v7009_v62  ;;  %v7058_v62 = vld [vmem:[#allocation14 + $0x118] sm:$0xf0] }
 0x2d4   :  { %v7061_v2 = vor.u32 %v8583_v61, %v7058_v62  ;;  %v7272_v61 = vld [vmem:[#allocation17 + $0xc0] sm:$0xf] }
 0x2d5   :  { %v8642_v62 = vld [vmem:[#allocation17 + $0xdc] sm:$0xf0] }
 0x2d7   :  { %v2850_v46 = vpop.f32.mrf.mxu1  ;;  %3437 = vmatpush.bf16.msra.mxu0 %v6993_v26  ;;  %v7400_v26 = vld [vmem:[#allocation17 + $0x1c0] sm:$0xf] }
 0x2d8   :  { %v2851_v23 = vadd.f32 %v2850_v46, %v2838_v9  ;;  %v7121_v9 = vor.u32 %v8601_v20, %v7120_v19  ;;  %v6976_v46 = vld [vmem:[#allocation14 + $0x68] sm:$0xf]  ;;  %v8674_v20 = vld [vmem:[#allocation17 + $0x1dc] sm:$0xf0] }
 0x2d9   :  { %v6977_v16 = vor.u32 %v8565_v14, %v6976_v46  ;;  %v8866_v46 = vld [vmem:[#allocation17 + $0x7dc] sm:$0xf0] }
 0x2da   :  { %2854 = vst [vmem:[#allocation20] sm:$0xff] %v2851_v23  ;;  %v2855_v13 = vpack.c.bf16 %v2851_v23, %v2851_v23  ;;  %3450 = vmatpush.bf16.msra.mxu1 %v7121_v9  ;;  %v6978_v23 = vld [vmem:[#allocation14 + $0x78] sm:$0xf0]  ;;  %v7912_v9 = vld [vmem:[#allocation17 + $0x5c0] sm:$0xf] }
 0x2db   :  { %v6981_v27 = vor.u32 %v8563_v21, %v6978_v23  ;;  %3438 = vmatpush.bf16.msra.mxu0 %v6977_v16  ;;  %v7401_v16 = vor.u32 %v8674_v20, %v7400_v26  ;;  %v8666_v21 = vld [vmem:[#allocation17 + $0x19c] sm:$0xf0]  ;;  %v7657_v23 = vor.u32 %v8738_v40, %v7656_v22 }
 0x2dc   :  { %2966 = vmatmul.bf16.vlgmr.msra.gmra.mxu2 %v2855_v13  ;;  %2979 = vmatmul.bf16.vlgmr.msra.gmra.mxu3 %v2855_v13  ;;  %v7088_v13 = vld [vmem:[#allocation14 + $0x148] sm:$0xf]  ;;  %v8634_v26 = vld [vmem:[#allocation17 + $0x9c] sm:$0xf0] }
 0x2dd   :  { %3460 = vmatpush.bf16.msra.mxu2 %v7045_v38  ;;  %3473 = vmatpush.bf16.msra.mxu3 %v7173_v49  ;;  %v7089_v35 = vor.u32 %v8593_v33, %v7088_v13  ;;  %v7072_v38 = vld [vmem:[#allocation14 + $0x128] sm:$0xf]  ;;  %v6946_v49 = vld [vmem:[#allocation14 + $0x38] sm:$0xf0]  ;;  %v8858_v13 = vld [vmem:[#allocation17 + $0x79c] sm:$0xf0] }
 0x2de   :  { %3451 = vmatpush.bf16.msra.mxu1 %v7105_v25  ;;  %v6949_v53 = vor.u32 %v8555_v42, %v6946_v49  ;;  %v7624_v25 = vld [vmem:[#allocation17 + $0x380] sm:$0xf] }
 0x2df   :  { %v2852_v51 = vpop.f32.mrf.mxu1  ;;  %3439 = vmatpush.bf16.msra.mxu0 %v6961_v34  ;;  %v8850_v42 = vld [vmem:[#allocation17 + $0x75c] sm:$0xf0] }
 0x2e0   :  { %v7073_v51 = vor.u32 %v8589_v52, %v7072_v38  ;;  %v8786_v38 = vld [vmem:[#allocation17 + $0x55c] sm:$0xf0] }
 0x2e1   :  { %3461 = vmatpush.bf16.msra.mxu2 %v7029_v57  ;;  %3474 = vmatpush.bf16.msra.mxu3 %v7157_v58  ;;  %v7077_v57 = vor.u32 %v8587_v50, %v7074_v37  ;;  %v8585_v58 = vld [vmem:[#allocation14 + $0x114] sm:$0xf0]  ;;  %v8104_v52 = vld [vmem:[#allocation17 + $0x740] sm:$0xf]  ;;  %v7849_v54 = vor.u32 %v8786_v38, %v7848_v45  ;;  %v7658_v45 = vld [vmem:[#allocation17 + $0x3e0] sm:$0xf0] }
 0x2e2   :  { %3452 = vmatpush.bf16.msra.mxu1 %v7089_v35  ;;  %v7057_v0 = vor.u32 %v8585_v58, %v7056_v56  ;;  %v7369_v35 = vor.u32 %v8666_v21, %v7368_v17  ;;  %v7304_v49 = vld [vmem:[#allocation17 + $0x100] sm:$0xf]  ;;  %v8105_v56 = vor.u32 %v8850_v42, %v8104_v52 }
 0x2e3   :  { %3440 = vmatpush.bf16.msra.mxu0 %v6945_v48  ;;  %v7337_v48 = vor.u32 %v8658_v41, %v7336_v36  ;;  %v8650_v50 = vld [vmem:[#allocation17 + $0x11c] sm:$0xf0] }
 0x2e4   :  { %v8072_v58 = vld [vmem:[#allocation17 + $0x700] sm:$0xf]  ;;  %v7305_v60 = vor.u32 %v8650_v50, %v7304_v49  ;;  %v7914_v49 = vld [vmem:[#allocation17 + $0x5e0] sm:$0xf0] }
 0x2e5   :  { %3462 = vmatpush.bf16.msra.mxu2 %v7013_v18  ;;  %3475 = vmatpush.bf16.msra.mxu3 %v7141_v5  ;;  %v2872_v18 = vld [vmem:[#allocation13] sm:$0x3]  ;;  %v7496_v22 = vld [vmem:[#allocation17 + $0x280] sm:$0xf] }
 0x2e6   :  { %3453 = vmatpush.bf16.msra.mxu1 %v7073_v51  ;;  %v2874_v3 = vperm.slane %v2872_v18, 0  ;;  %v2875_v4 = vperm.slane %v2872_v18, 1  ;;  %v7560_v51 = vld [vmem:[#allocation17 + $0x300] sm:$0xf] }
 0x2e7   :  { %3441 = vmatpush.bf16.msra.mxu0 %v6929_v63  ;;  %v7784_v18 = vld [vmem:[#allocation17 + $0x4c0] sm:$0xf] }
 0x2e8   :  { %v8698_v40 = vld [vmem:[#allocation17 + $0x29c] sm:$0xf0] }
 0x2e9   :  { %3463 = vmatpush.bf16.msra.mxu2 %v6997_v47  ;;  %3476 = vmatpush.bf16.msra.mxu3 %v7125_v12  ;;  %v8802_v47 = vld [vmem:[#allocation17 + $0x5dc] sm:$0xf0] }
 0x2ea   :  { %3454 = vmatpush.bf16.msra.mxu1 %v7057_v0  ;;  %v8168_v12 = vld [vmem:[#allocation17 + $0x7c0] sm:$0xf]  ;;  %v7913_v28 = vor.u32 %v8802_v47, %v7912_v9 }
 0x2eb   :  { %v8169_v8 = vor.u32 %v8866_v46, %v8168_v12  ;;  %v7528_v0 = vld [vmem:[#allocation17 + $0x2c0] sm:$0xf] }
 0x2ec   :  { %v7752_v47 = vld [vmem:[#allocation17 + $0x480] sm:$0xf] }
 0x2ed   :  { %3464 = vmatpush.bf16.msra.mxu2 %v6981_v27  ;;  %3477 = vmatpush.bf16.msra.mxu3 %v7109_v30  ;;  %v8730_v27 = vld [vmem:[#allocation17 + $0x39c] sm:$0xf0] }
 0x2ee   :  { %v8794_v30 = vld [vmem:[#allocation17 + $0x59c] sm:$0xf0]  ;;  %v7625_v39 = vor.u32 %v8730_v27, %v7624_v25 }
 0x2ef   :  { %v7881_v43 = vor.u32 %v8794_v30, %v7880_v29  ;;  %v8008_v12 = vld [vmem:[#allocation17 + $0x680] sm:$0xf] }
 0x2f0   :  { %v8826_v46 = vld [vmem:[#allocation17 + $0x69c] sm:$0xf0] }
 0x2f1   :  { %3465 = vmatpush.bf16.msra.mxu2 %v6965_v32  ;;  %3478 = vmatpush.bf16.msra.mxu3 %v7093_v44  ;;  %v7592_v32 = vld [vmem:[#allocation17 + $0x340] sm:$0xf]  ;;  %v8137_v44 = vor.u32 %v8858_v13, %v8136_v31 }
 0x2f2   :  { %v7593_v37 = vor.u32 %v8722_v24, %v7592_v32  ;;  %v7208_v17 = vld [vmem:[#allocation17 + $0x40] sm:$0xf]  ;;  %v7402_v24 = vld [vmem:[#allocation17 + $0x1e0] sm:$0xf0] }
 0x2f3   :  { %v8626_v21 = vld [vmem:[#allocation17 + $0x5c] sm:$0xf0] }
 0x2f4   :  { %v7464_v25 = vld [vmem:[#allocation17 + $0x240] sm:$0xf] }
 0x2f5   :  { %3466 = vmatpush.bf16.msra.mxu2 %v6949_v53  ;;  %3479 = vmatpush.bf16.msra.mxu3 %v7077_v57  ;;  %v8714_v53 = vld [vmem:[#allocation17 + $0x31c] sm:$0xf0] }
 0x2f6   :  { %v8778_v57 = vld [vmem:[#allocation17 + $0x51c] sm:$0xf0]  ;;  %v7561_v63 = vor.u32 %v8714_v53, %v7560_v51  ;;  %v7370_v53 = vld [vmem:[#allocation17 + $0x1a0] sm:$0xf0] }
 0x2f7   :  { %v8690_v27 = vld [vmem:[#allocation17 + $0x25c] sm:$0xf0] }
 0x2f8   :  { %v7720_v29 = vld [vmem:[#allocation17 + $0x440] sm:$0xf] }
 0x2f9   :  { %3467 = vmatpush.bf16.msra.mxu2 %v6933_v1  ;;  %3480 = vmatpush.bf16.msra.mxu3 %v7061_v2  ;;  %v8706_v1 = vld [vmem:[#allocation17 + $0x2dc] sm:$0xf0]  ;;  %v7817_v2 = vor.u32 %v8778_v57, %v7816_v55  ;;  %v7626_v55 = vld [vmem:[#allocation17 + $0x3a0] sm:$0xf0] }
 0x2fa   :  { %v7529_v20 = vor.u32 %v8706_v1, %v7528_v0  ;;  %v8754_v30 = vld [vmem:[#allocation17 + $0x45c] sm:$0xf0]  ;;  %v8646_v1 = vld [vmem:[#allocation17 + $0x104] sm:$0xf] }
 0x2fb   :  { %v7976_v31 = vld [vmem:[#allocation17 + $0x640] sm:$0xf] }
 0x2fc   :  { %v8818_v13 = vld [vmem:[#allocation17 + $0x65c] sm:$0xf0] }
 0x2fd   :  { %v7432_v36 = vld [vmem:[#allocation17 + $0x200] sm:$0xf]  ;;  %v7977_v32 = vor.u32 %v8818_v13, %v7976_v31  ;;  %v7850_v31 = vld [vmem:[#allocation17 + $0x560] sm:$0xf0] }
 0x2fe   :  { %v8682_v41 = vld [vmem:[#allocation17 + $0x21c] sm:$0xf0] }
 0x2ff   :  { %v8746_v38 = vld [vmem:[#allocation17 + $0x41c] sm:$0xf0]  ;;  %v7433_v42 = vor.u32 %v8682_v41, %v7432_v36  ;;  %v8614_v41 = vld [vmem:[#allocation17 + $0x4] sm:$0xf] }
 0x35f   :  { %v2967_v5 = vpop.f32.mrf.mxu2  ;;  %v2980_v6 = vpop.f32.mrf.mxu3 }
 0x360   :  { %v2968_v7 = vadd.f32 %v2967_v5, %v2874_v3  ;;  %v2981_v19 = vadd.f32 %v2980_v6, %v2875_v4  ;;  %v8073_v3 = vor.u32 %v8842_v59, %v8072_v58  ;;  %v8770_v4 = vld [vmem:[#allocation17 + $0x4dc] sm:$0xf0]  ;;  %v8654_v59 = vld [vmem:[#allocation17 + $0x144] sm:$0xf] }
 0x361   :  { %v8040_v5 = vld [vmem:[#allocation17 + $0x6c0] sm:$0xf]  ;;  %v7785_v9 = vor.u32 %v8770_v4, %v7784_v18  ;;  %v7306_v18 = vld [vmem:[#allocation17 + $0x120] sm:$0xf0] }
 0x362   :  { %v2984_v10 = vmax.f32 %v2968_v7, 0.0  ;;  %v2985_v11 = vmax.f32 %v2981_v19, 0.0  ;;  %v8834_v6 = vld [vmem:[#allocation17 + $0x6dc] sm:$0xf0]  ;;  %v7273_v7 = vor.u32 %v8642_v62, %v7272_v61  ;;  %v7338_v61 = vld [vmem:[#allocation17 + $0x160] sm:$0xf0] }
 0x363   :  { %v7240_v19 = vld [vmem:[#allocation17 + $0x80] sm:$0xf]  ;;  %v8718_v62 = vld [vmem:[#allocation17 + $0x344] sm:$0xf]  ;;  %v7341_v0 = vor.u32 %v8654_v59, %v7338_v61 }
 0x364   :  { %v9421_v14 = vpack.c.bf16 %v2984_v10, %v2984_v10  ;;  %v9423_v15 = vpack.c.bf16 %v2985_v11, %v2985_v11  ;;  %v8041_v10 = vor.u32 %v8834_v6, %v8040_v5  ;;  %v8762_v11 = vld [vmem:[#allocation17 + $0x49c] sm:$0xf0]  ;;  %v7562_v4 = vld [vmem:[#allocation17 + $0x320] sm:$0xf0]  ;;  %v7309_v5 = vor.u32 %v8646_v1, %v7306_v18 }
 0x365   :  { %v8758_v59 = vld [vmem:[#allocation17 + $0x484] sm:$0xf] }
 0x366   :  { %3390 = vmatmul.bf16.vlgmr.msrb.gmra.mxu0 %v9421_v14  ;;  %3403 = vmatmul.bf16.vlgmr.msrb.gmra.mxu1 %v9423_v15  ;;  %v8750_v1 = vld [vmem:[#allocation17 + $0x444] sm:$0xf] }
 0x367   :  { %3416 = vmatmul.bf16.vlgmr.msrb.gmra.mxu2 %v9421_v14  ;;  %3429 = vmatmul.bf16.vlgmr.msrb.gmra.mxu3 %v9423_v15  ;;  %v2969_v33 = vpop.f32.mrf.mxu2  ;;  %v2982_v34 = vpop.f32.mrf.mxu3 }
 0x368   :  { %5048 = vmatpush.bf16.msrb.mxu0 %v7401_v16  ;;  %5061 = vmatpush.bf16.msrb.mxu1 %v7657_v23  ;;  %v7241_v16 = vor.u32 %v8634_v26, %v7240_v19  ;;  %v7497_v23 = vor.u32 %v8698_v40, %v7496_v22  ;;  %v8618_v33 = vld [vmem:[#allocation17 + $0x1c] sm:$0xf0]  ;;  %v7465_v34 = vor.u32 %v8690_v27, %v7464_v25  ;;  %v7274_v19 = vld [vmem:[#allocation17 + $0xe0] sm:$0xf0] }
 0x369   :  { %5074 = vmatpush.bf16.msrb.mxu2 %v7913_v28  ;;  %5087 = vmatpush.bf16.msrb.mxu3 %v8169_v8  ;;  %v7753_v28 = vor.u32 %v8762_v11, %v7752_v47  ;;  %v8009_v8 = vor.u32 %v8826_v46, %v8008_v12  ;;  %v7242_v22 = vld [vmem:[#allocation17 + $0xa0] sm:$0xf0]  ;;  %v8810_v11 = vld [vmem:[#allocation17 + $0x61c] sm:$0xf0] }
 0x36a   :  { %v8790_v40 = vld [vmem:[#allocation17 + $0x584] sm:$0xf] }
 0x36b   :  { %v7882_v47 = vld [vmem:[#allocation17 + $0x5a0] sm:$0xf0] }
 0x36c   :  { %5049 = vmatpush.bf16.msrb.mxu0 %v7369_v35  ;;  %5062 = vmatpush.bf16.msrb.mxu1 %v7625_v39  ;;  %v8670_v35 = vld [vmem:[#allocation17 + $0x1c4] sm:$0xf]  ;;  %v7721_v39 = vor.u32 %v8754_v30, %v7720_v29  ;;  %v7885_v12 = vor.u32 %v8790_v40, %v7882_v47 }
 0x36d   :  { %5075 = vmatpush.bf16.msrb.mxu2 %v7881_v43  ;;  %5088 = vmatpush.bf16.msrb.mxu3 %v8137_v44  ;;  %v8734_v43 = vld [vmem:[#allocation17 + $0x3c4] sm:$0xf]  ;;  %v7688_v44 = vld [vmem:[#allocation17 + $0x400] sm:$0xf]  ;;  %v7405_v50 = vor.u32 %v8670_v35, %v7402_v24 }
 0x36e   :  { %v7661_v51 = vor.u32 %v8734_v43, %v7658_v45  ;;  %v8170_v25 = vld [vmem:[#allocation17 + $0x7e0] sm:$0xf0] }
 0x36f   :  { %v7210_v29 = vld [vmem:[#allocation17 + $0x60] sm:$0xf0] }
 0x370   :  { %5050 = vmatpush.bf16.msrb.mxu0 %v7337_v48  ;;  %5063 = vmatpush.bf16.msrb.mxu1 %v7593_v37  ;;  %v8798_v48 = vld [vmem:[#allocation17 + $0x5c4] sm:$0xf] }
 0x371   :  { %5076 = vmatpush.bf16.msrb.mxu2 %v7849_v54  ;;  %5089 = vmatpush.bf16.msrb.mxu3 %v8105_v56  ;;  %v8662_v37 = vld [vmem:[#allocation17 + $0x184] sm:$0xf]  ;;  %v7689_v56 = vor.u32 %v8746_v38, %v7688_v44  ;;  %v7917_v57 = vor.u32 %v8798_v48, %v7914_v49 }
 0x372   :  { %v8726_v54 = vld [vmem:[#allocation17 + $0x384] sm:$0xf]  ;;  %v7373_v58 = vor.u32 %v8662_v37, %v7370_v53 }
 0x373   :  { %v8138_v35 = vld [vmem:[#allocation17 + $0x7a0] sm:$0xf0] }
 0x374   :  { %5051 = vmatpush.bf16.msrb.mxu0 %v7305_v60  ;;  %5064 = vmatpush.bf16.msrb.mxu1 %v7561_v63  ;;  %v7629_v60 = vor.u32 %v8726_v54, %v7626_v55  ;;  %v7594_v63 = vld [vmem:[#allocation17 + $0x360] sm:$0xf0] }
 0x375   :  { %5077 = vmatpush.bf16.msrb.mxu2 %v7817_v2  ;;  %5090 = vmatpush.bf16.msrb.mxu3 %v8073_v3  ;;  %v7597_v2 = vor.u32 %v8718_v62, %v7594_v63  ;;  %v8710_v3 = vld [vmem:[#allocation17 + $0x304] sm:$0xf] }
 0x376   :  { %3442 = vmatmul.bf16.vlgmr.msra.gmra.mxu0 %v9421_v14  ;;  %3455 = vmatmul.bf16.vlgmr.msra.gmra.mxu1 %v9423_v15  ;;  %v7565_v6 = vor.u32 %v8710_v3, %v7562_v4  ;;  %v8774_v24 = vld [vmem:[#allocation17 + $0x504] sm:$0xf] }
 0x377   :  { %3468 = vmatmul.bf16.vlgmr.msra.gmra.mxu2 %v9421_v14  ;;  %3481 = vmatmul.bf16.vlgmr.msra.gmra.mxu3 %v9423_v15  ;;  %v7209_v14 = vor.u32 %v8626_v21, %v7208_v17  ;;  %v7176_v15 = vld [vmem:[#allocation17] sm:$0xf]  ;;  %v7530_v17 = vld [vmem:[#allocation17 + $0x2e0] sm:$0xf0] }
 0x378   :  { %5052 = vmatpush.bf16.msrb.mxu0 %v7273_v7  ;;  %5065 = vmatpush.bf16.msrb.mxu1 %v7529_v20  ;;  %v7177_v52 = vor.u32 %v8618_v33, %v7176_v15  ;;  %v8638_v7 = vld [vmem:[#allocation17 + $0xc4] sm:$0xf] }
 0x379   :  { %5078 = vmatpush.bf16.msrb.mxu2 %v7785_v9  ;;  %5091 = vmatpush.bf16.msrb.mxu3 %v8041_v10  ;;  %v7277_v26 = vor.u32 %v8638_v7, %v7274_v19  ;;  %v8630_v20 = vld [vmem:[#allocation17 + $0x84] sm:$0xf]  ;;  %v7944_v10 = vld [vmem:[#allocation17 + $0x600] sm:$0xf] }
 0x37a   :  { %v7245_v9 = vor.u32 %v8630_v20, %v7242_v22  ;;  %v7945_v46 = vor.u32 %v8810_v11, %v7944_v10  ;;  %v8862_v21 = vld [vmem:[#allocation17 + $0x7c4] sm:$0xf]  ;;  %v9433_v22 = vld [vmem:[#allocation16] sm:$0xf] }
 0x37b   :  { %v8173_v27 = vor.u32 %v8862_v21, %v8170_v25  ;;  %v7498_v15 = vld [vmem:[#allocation17 + $0x2a0] sm:$0xf0]  ;;  %v7408_v21 = vld [vmem:[#allocation17 + $0x1c8] sm:$0xf]  ;;  %v3055_v25 = vperm.slane %v9433_v22, 1 }
 0x37c   :  { %5053 = vmatpush.bf16.msrb.mxu0 %v7241_v16  ;;  %5066 = vmatpush.bf16.msrb.mxu1 %v7497_v23  ;;  %v8702_v16 = vld [vmem:[#allocation17 + $0x2c4] sm:$0xf] }
 0x37d   :  { %5079 = vmatpush.bf16.msrb.mxu2 %v7753_v28  ;;  %5092 = vmatpush.bf16.msrb.mxu3 %v8009_v8  ;;  %v7533_v23 = vor.u32 %v8702_v16, %v7530_v17  ;;  %v8622_v28 = vld [vmem:[#allocation17 + $0x44] sm:$0xf] }
 0x37e   :  { %v8782_v8 = vld [vmem:[#allocation17 + $0x544] sm:$0xf]  ;;  %v7213_v30 = vor.u32 %v8622_v28, %v7210_v29 }
 0x37f   :  { %v7853_v13 = vor.u32 %v8782_v8, %v7850_v31  ;;  %v8854_v33 = vld [vmem:[#allocation17 + $0x784] sm:$0xf]  ;;  %v7376_v31 = vld [vmem:[#allocation17 + $0x188] sm:$0xf] }
 0x380   :  { %5054 = vmatpush.bf16.msrb.mxu0 %v7209_v14  ;;  %5067 = vmatpush.bf16.msrb.mxu1 %v7465_v34  ;;  %v8694_v14 = vld [vmem:[#allocation17 + $0x284] sm:$0xf]  ;;  %v8141_v36 = vor.u32 %v8854_v33, %v8138_v35 }
 0x381   :  { %5080 = vmatpush.bf16.msrb.mxu2 %v7721_v39  ;;  %5093 = vmatpush.bf16.msrb.mxu3 %v7977_v32  ;;  %v7501_v34 = vor.u32 %v8694_v14, %v7498_v15  ;;  %v7178_v39 = vld [vmem:[#allocation17 + $0x20] sm:$0xf0] }
 0x382   :  { %v7181_v32 = vor.u32 %v8614_v41, %v7178_v39  ;;  %v7818_v43 = vld [vmem:[#allocation17 + $0x520] sm:$0xf0]  ;;  %v8739_v41 = vld [vmem:[#allocation17 + $0x3e4] sm:$0xf0] }
 0x383   :  { %v7821_v45 = vor.u32 %v8774_v24, %v7818_v43  ;;  %v8686_v44 = vld [vmem:[#allocation17 + $0x244] sm:$0xf]  ;;  %v7344_v39 = vld [vmem:[#allocation17 + $0x148] sm:$0xf] }
 0x384   :  { %5055 = vmatpush.bf16.msrb.mxu0 %v7177_v52  ;;  %5068 = vmatpush.bf16.msrb.mxu1 %v7433_v42  ;;  %v7466_v38 = vld [vmem:[#allocation17 + $0x260] sm:$0xf0] }
 0x385   :  { %5081 = vmatpush.bf16.msrb.mxu2 %v7689_v56  ;;  %5094 = vmatpush.bf16.msrb.mxu3 %v7945_v46  ;;  %v7469_v52 = vor.u32 %v8686_v44, %v7466_v38  ;;  %v8846_v42 = vld [vmem:[#allocation17 + $0x744] sm:$0xf] }
 0x386   :  { %v8106_v48 = vld [vmem:[#allocation17 + $0x760] sm:$0xf0] }
 0x387   :  { %v8109_v49 = vor.u32 %v8846_v42, %v8106_v48  ;;  %v7786_v37 = vld [vmem:[#allocation17 + $0x4e0] sm:$0xf0]  ;;  %v8731_v42 = vld [vmem:[#allocation17 + $0x3a4] sm:$0xf0] }
 0x388   :  { %5100 = vmatpush.bf16.msra.mxu0 %v7405_v50  ;;  %5113 = vmatpush.bf16.msra.mxu1 %v7661_v51  ;;  %v8766_v50 = vld [vmem:[#allocation17 + $0x4c4] sm:$0xf] }
 0x389   :  { %5126 = vmatpush.bf16.msra.mxu2 %v7917_v57  ;;  %5139 = vmatpush.bf16.msra.mxu3 %v8173_v27  ;;  %v7789_v51 = vor.u32 %v8766_v50, %v7786_v37  ;;  %v8678_v53 = vld [vmem:[#allocation17 + $0x204] sm:$0xf]  ;;  %v7312_v50 = vld [vmem:[#allocation17 + $0x108] sm:$0xf] }
 0x38a   :  { %v7434_v54 = vld [vmem:[#allocation17 + $0x220] sm:$0xf0]  ;;  %v8651_v37 = vld [vmem:[#allocation17 + $0x124] sm:$0xf0] }
 0x38b   :  { %v8838_v55 = vld [vmem:[#allocation17 + $0x704] sm:$0xf]  ;;  %v7437_v56 = vor.u32 %v8678_v53, %v7434_v54 }
 0x38c   :  { %5101 = vmatpush.bf16.msra.mxu0 %v7373_v58  ;;  %5114 = vmatpush.bf16.msra.mxu1 %v7629_v60  ;;  %v8074_v57 = vld [vmem:[#allocation17 + $0x720] sm:$0xf0] }
 0x38d   :  { %5127 = vmatpush.bf16.msra.mxu2 %v7885_v12  ;;  %5140 = vmatpush.bf16.msra.mxu3 %v8141_v36  ;;  %v8077_v58 = vor.u32 %v8838_v55, %v8074_v57  ;;  %v7754_v60 = vld [vmem:[#allocation17 + $0x4a0] sm:$0xf0]  ;;  %v7664_v36 = vld [vmem:[#allocation17 + $0x3c8] sm:$0xf] }
 0x38e   :  { %v7757_v61 = vor.u32 %v8758_v59, %v7754_v60  ;;  %v8830_v62 = vld [vmem:[#allocation17 + $0x6c4] sm:$0xf]  ;;  %v7665_v43 = vor.u32 %v8739_v41, %v7664_v36  ;;  %v7600_v57 = vld [vmem:[#allocation17 + $0x348] sm:$0xf] }
 0x38f   :  { %v8042_v63 = vld [vmem:[#allocation17 + $0x6e0] sm:$0xf0]  ;;  %v7920_v60 = vld [vmem:[#allocation17 + $0x5c8] sm:$0xf] }
 0x390   :  { %5102 = vmatpush.bf16.msra.mxu0 %v7341_v0  ;;  %5115 = vmatpush.bf16.msra.mxu1 %v7597_v2  ;;  %v8045_v0 = vor.u32 %v8830_v62, %v8042_v63  ;;  %v7722_v2 = vld [vmem:[#allocation17 + $0x460] sm:$0xf0]  ;;  %v3057_v62 = vperm.slane %v9433_v22, 3  ;;  %v7280_v63 = vld [vmem:[#allocation17 + $0xc8] sm:$0xf] }
 0x391   :  { %5128 = vmatpush.bf16.msra.mxu2 %v7853_v13  ;;  %5141 = vmatpush.bf16.msra.mxu3 %v8109_v49  ;;  %v7725_v18 = vor.u32 %v8750_v1, %v7722_v2  ;;  %v8822_v3 = vld [vmem:[#allocation17 + $0x684] sm:$0xf]  ;;  %v8667_v13 = vld [vmem:[#allocation17 + $0x1a4] sm:$0xf0] }
 0x392   :  { %v8010_v4 = vld [vmem:[#allocation17 + $0x6a0] sm:$0xf0]  ;;  %v7377_v35 = vor.u32 %v8667_v13, %v7376_v31  ;;  %v8627_v31 = vld [vmem:[#allocation17 + $0x64] sm:$0xf0] }
 0x393   :  { %v7690_v7 = vld [vmem:[#allocation17 + $0x420] sm:$0xf0]  ;;  %v8144_v36 = vld [vmem:[#allocation17 + $0x788] sm:$0xf] }
 0x394   :  { %5103 = vmatpush.bf16.msra.mxu0 %v7309_v5  ;;  %5116 = vmatpush.bf16.msra.mxu1 %v7565_v6  ;;  %v8013_v5 = vor.u32 %v8822_v3, %v8010_v4  ;;  %v8742_v6 = vld [vmem:[#allocation17 + $0x404] sm:$0xf]  ;;  %v7568_v3 = vld [vmem:[#allocation17 + $0x308] sm:$0xf] }
 0x395   :  { %5129 = vmatpush.bf16.msra.mxu2 %v7821_v45  ;;  %5142 = vmatpush.bf16.msra.mxu3 %v8077_v58  ;;  %v7693_v19 = vor.u32 %v8742_v6, %v7690_v7  ;;  %v7978_v20 = vld [vmem:[#allocation17 + $0x660] sm:$0xf0]  ;;  %v3056_v45 = vperm.slane %v9433_v22, 2  ;;  %v8723_v58 = vld [vmem:[#allocation17 + $0x364] sm:$0xf0] }
 0x396   :  { %v8806_v47 = vld [vmem:[#allocation17 + $0x604] sm:$0xf]  ;;  %v7601_v2 = vor.u32 %v8723_v58, %v7600_v57  ;;  %v8715_v4 = vld [vmem:[#allocation17 + $0x324] sm:$0xf0] }
 0x397   :  { %v7946_v10 = vld [vmem:[#allocation17 + $0x620] sm:$0xf0]  ;;  %v8859_v41 = vld [vmem:[#allocation17 + $0x7a4] sm:$0xf0] }
 0x398   :  { %5104 = vmatpush.bf16.msra.mxu0 %v7277_v26  ;;  %5117 = vmatpush.bf16.msra.mxu1 %v7533_v23  ;;  %v8814_v26 = vld [vmem:[#allocation17 + $0x644] sm:$0xf]  ;;  %v7949_v11 = vor.u32 %v8806_v47, %v7946_v10  ;;  %v8675_v23 = vld [vmem:[#allocation17 + $0x1e4] sm:$0xf0] }
 0x399   :  { %5130 = vmatpush.bf16.msra.mxu2 %v7789_v51  ;;  %5143 = vmatpush.bf16.msra.mxu3 %v8045_v0  ;;  %v7981_v40 = vor.u32 %v8814_v26, %v7978_v20  ;;  %v7409_v28 = vor.u32 %v8675_v23, %v7408_v21  ;;  %v8643_v0 = vld [vmem:[#allocation17 + $0xe4] sm:$0xf0] }
 0x39a   :  { %v7888_v26 = vld [vmem:[#allocation17 + $0x588] sm:$0xf] }
 0x39b   :  { %v8795_v20 = vld [vmem:[#allocation17 + $0x5a4] sm:$0xf0] }
 0x39c   :  { %5105 = vmatpush.bf16.msra.mxu0 %v7245_v9  ;;  %5118 = vmatpush.bf16.msra.mxu1 %v7501_v34  ;;  %v3054_v9 = vperm.slane %v9433_v22, 0  ;;  %v7248_v22 = vld [vmem:[#allocation17 + $0x88] sm:$0xf] }
 0x39d   :  { %5131 = vmatpush.bf16.msra.mxu2 %v7757_v61  ;;  %5144 = vmatpush.bf16.msra.mxu3 %v8013_v5  ;;  %v8803_v61 = vld [vmem:[#allocation17 + $0x5e4] sm:$0xf0] }
 0x39e   :  { %v8635_v10 = vld [vmem:[#allocation17 + $0xa4] sm:$0xf0] }
 0x39f   :  { %v8176_v21 = vld [vmem:[#allocation17 + $0x7c8] sm:$0xf] }
 0x3a0   :  { %5106 = vmatpush.bf16.msra.mxu0 %v7213_v30  ;;  %5119 = vmatpush.bf16.msra.mxu1 %v7469_v52  ;;  %v7632_v52 = vld [vmem:[#allocation17 + $0x388] sm:$0xf] }
 0x3a1   :  { %5132 = vmatpush.bf16.msra.mxu2 %v7725_v18  ;;  %5145 = vmatpush.bf16.msra.mxu3 %v7981_v40  ;;  %v7633_v55 = vor.u32 %v8731_v42, %v7632_v52  ;;  %v7921_v18 = vor.u32 %v8803_v61, %v7920_v60  ;;  %v8867_v23 = vld [vmem:[#allocation17 + $0x7e4] sm:$0xf0] }
 0x3a2   :  { %v8619_v52 = vld [vmem:[#allocation17 + $0x24] sm:$0xf0] }
 0x3a3   :  { %v7792_v58 = vld [vmem:[#allocation17 + $0x4c8] sm:$0xf] }
 0x3a4   :  { %5107 = vmatpush.bf16.msra.mxu0 %v7181_v32  ;;  %5120 = vmatpush.bf16.msra.mxu1 %v7437_v56  ;;  %v8659_v32 = vld [vmem:[#allocation17 + $0x164] sm:$0xf0]  ;;  %v7313_v56 = vor.u32 %v8651_v37, %v7312_v50  ;;  %v7410_v50 = vld [vmem:[#allocation17 + $0x1e8] sm:$0xf0] }
 0x3a5   :  { %5133 = vmatpush.bf16.msra.mxu2 %v7693_v19  ;;  %5146 = vmatpush.bf16.msra.mxu3 %v7949_v11  ;;  %v7345_v38 = vor.u32 %v8659_v32, %v7344_v39  ;;  %v7281_v19 = vor.u32 %v8643_v0, %v7280_v63  ;;  %v7569_v11 = vor.u32 %v8715_v4, %v7568_v3  ;;  %v7472_v37 = vld [vmem:[#allocation17 + $0x248] sm:$0xf]  ;;  %v7378_v63 = vld [vmem:[#allocation17 + $0x1a8] sm:$0xf0] }
 0x3a6   :  { %v7440_v0 = vld [vmem:[#allocation17 + $0x208] sm:$0xf]  ;;  %v8735_v4 = vld [vmem:[#allocation17 + $0x3cc] sm:$0xf] }
 0x3e3   :  { %v3391_v12 = vpop.f32.mrf.mxu0  ;;  %v3404_v46 = vpop.f32.mrf.mxu1 }
 0x3e4   :  { %v3392_v16 = vadd.f32 %v3391_v12, %v3054_v9  ;;  %v7536_v12 = vld [vmem:[#allocation17 + $0x2c8] sm:$0xf] }
 0x3e6   :  { %v3405_v17 = vadd.f32 %v3404_v46, %v3392_v16  ;;  %v7889_v16 = vor.u32 %v8795_v20, %v7888_v26  ;;  %v8763_v26 = vld [vmem:[#allocation17 + $0x4a4] sm:$0xf0] }
 0x3e8   :  { %v3486_v27 = vmax.f32 %v3405_v17, 0.0  ;;  %v8707_v17 = vld [vmem:[#allocation17 + $0x2e4] sm:$0xf0] }
 0x3e9   :  { %v7537_v13 = vor.u32 %v8707_v17, %v7536_v12 }
 0x3ea   :  { %v9437_v29 = vpack.c.bf16 %v3486_v27, %v3486_v27  ;;  %v3417_v8 = vpop.f32.mrf.mxu2  ;;  %v3430_v30 = vpop.f32.mrf.mxu3  ;;  %v7856_v27 = vld [vmem:[#allocation17 + $0x548] sm:$0xf] }
 0x3eb   :  { %v3418_v14 = vadd.f32 %v3417_v8, %v3055_v25  ;;  %v3393_v15 = vpop.f32.mrf.mxu0  ;;  %v3406_v33 = vpop.f32.mrf.mxu1  ;;  %v7249_v25 = vor.u32 %v8635_v10, %v7248_v22  ;;  %v8048_v10 = vld [vmem:[#allocation17 + $0x6c8] sm:$0xf] }
 0x3ec   :  { %5056 = vmatmul.bf16.vlgmr.msrb.gmra.mxu0 %v9437_v29  ;;  %v7504_v15 = vld [vmem:[#allocation17 + $0x288] sm:$0xf] }
 0x3ed   :  { %v3431_v34 = vadd.f32 %v3430_v30, %v3418_v14  ;;  %5152 = vmatpush.bf16.msrb.mxu0 %v7409_v28  ;;  %v8787_v28 = vld [vmem:[#allocation17 + $0x564] sm:$0xf0]  ;;  %v8177_v14 = vor.u32 %v8867_v23, %v8176_v21 }
 0x3ee   :  { %v7216_v30 = vld [vmem:[#allocation17 + $0x48] sm:$0xf] }
 0x3ef   :  { %v3487_v24 = vmax.f32 %v3431_v34, 0.0  ;;  %v7857_v34 = vor.u32 %v8787_v28, %v7856_v27  ;;  %v7728_v21 = vld [vmem:[#allocation17 + $0x448] sm:$0xf]  ;;  %v8647_v27 = vld [vmem:[#allocation17 + $0x10c] sm:$0xf] }
 0x3f0   :  { %v8755_v23 = vld [vmem:[#allocation17 + $0x464] sm:$0xf0]  ;;  %v7314_v28 = vld [vmem:[#allocation17 + $0x128] sm:$0xf0] }
 0x3f1   :  { %v9441_v44 = vpack.c.bf16 %v3487_v24, %v3487_v24  ;;  %5153 = vmatpush.bf16.msrb.mxu0 %v7377_v35  ;;  %v8699_v35 = vld [vmem:[#allocation17 + $0x2a4] sm:$0xf0]  ;;  %v7217_v24 = vor.u32 %v8627_v31, %v7216_v30 }
 0x3f2   :  { %v3419_v48 = vpop.f32.mrf.mxu2  ;;  %v3432_v49 = vpop.f32.mrf.mxu3  ;;  %v7505_v42 = vor.u32 %v8699_v35, %v7504_v15  ;;  %v8016_v30 = vld [vmem:[#allocation17 + $0x688] sm:$0xf]  ;;  %v7602_v15 = vld [vmem:[#allocation17 + $0x368] sm:$0xf0] }
 0x3f3   :  { %5069 = vmatmul.bf16.vlgmr.msrb.gmra.mxu1 %v9441_v44  ;;  %v3443_v51 = vpop.f32.mrf.mxu0  ;;  %v3456_v53 = vpop.f32.mrf.mxu1  ;;  %v8145_v48 = vor.u32 %v8859_v41, %v8144_v36  ;;  %v8671_v49 = vld [vmem:[#allocation17 + $0x1cc] sm:$0xf]  ;;  %v8827_v31 = vld [vmem:[#allocation17 + $0x6a4] sm:$0xf0] }
 0x3f4   :  { %5165 = vmatpush.bf16.msrb.mxu1 %v7665_v43  ;;  %v3444_v54 = vadd.f32 %v3443_v51, %v3056_v45  ;;  %v7824_v43 = vld [vmem:[#allocation17 + $0x508] sm:$0xf]  ;;  %v7413_v57 = vor.u32 %v8671_v49, %v7410_v50  ;;  %v8639_v41 = vld [vmem:[#allocation17 + $0xcc] sm:$0xf] }
 0x3f5   :  { %5154 = vmatpush.bf16.msrb.mxu0 %v7345_v38  ;;  %v8779_v45 = vld [vmem:[#allocation17 + $0x524] sm:$0xf0]  ;;  %v7570_v49 = vld [vmem:[#allocation17 + $0x328] sm:$0xf0] }
 0x3f6   :  { %v3457_v59 = vadd.f32 %v3456_v53, %v3444_v54  ;;  %v7184_v38 = vld [vmem:[#allocation17 + $0x8] sm:$0xf]  ;;  %v7825_v51 = vor.u32 %v8779_v45, %v7824_v43  ;;  %v7922_v43 = vld [vmem:[#allocation17 + $0x5e8] sm:$0xf0] }
 0x3f7   :  { %v8691_v53 = vld [vmem:[#allocation17 + $0x264] sm:$0xf0] }
 0x3f8   :  { %v3488_v1 = vmax.f32 %v3457_v59, 0.0  ;;  %5166 = vmatpush.bf16.msrb.mxu1 %v7633_v55  ;;  %v8112_v54 = vld [vmem:[#allocation17 + $0x748] sm:$0xf]  ;;  %v7473_v60 = vor.u32 %v8691_v53, %v7472_v37 }
 0x3f9   :  { %5155 = vmatpush.bf16.msrb.mxu0 %v7313_v56  ;;  %v8851_v55 = vld [vmem:[#allocation17 + $0x764] sm:$0xf0]  ;;  %v7185_v56 = vor.u32 %v8619_v52, %v7184_v38 }
 0x3fa   :  { %v9445_v5 = vpack.c.bf16 %v3488_v1, %v3488_v1  ;;  %v3469_v6 = vpop.f32.mrf.mxu2  ;;  %v3482_v7 = vpop.f32.mrf.mxu3  ;;  %v8771_v59 = vld [vmem:[#allocation17 + $0x4e4] sm:$0xf0]  ;;  %v8113_v61 = vor.u32 %v8851_v55, %v8112_v54  ;;  %v7250_v54 = vld [vmem:[#allocation17 + $0xa8] sm:$0xf0] }
 0x3fb   :  { %v3470_v40 = vadd.f32 %v3469_v6, %v3057_v62  ;;  %v3445_v9 = vpop.f32.mrf.mxu0  ;;  %v3458_v47 = vpop.f32.mrf.mxu1  ;;  %v8663_v62 = vld [vmem:[#allocation17 + $0x18c] sm:$0xf]  ;;  %v8683_v1 = vld [vmem:[#allocation17 + $0x224] sm:$0xf0]  ;;  %v7793_v3 = vor.u32 %v8771_v59, %v7792_v58 }
 0x3fc   :  { %5167 = vmatpush.bf16.msrb.mxu1 %v7601_v2  ;;  %5082 = vmatmul.bf16.vlgmr.msrb.gmra.mxu2 %v9445_v5  ;;  %v8080_v2 = vld [vmem:[#allocation17 + $0x708] sm:$0xf]  ;;  %v7666_v6 = vld [vmem:[#allocation17 + $0x3e8] sm:$0xf0]  ;;  %v7441_v20 = vor.u32 %v8683_v1, %v7440_v0 }
 0x3fd   :  { %v3483_v46 = vadd.f32 %v3482_v7, %v3470_v40  ;;  %5108 = vmatmul.bf16.vlgmr.msra.gmra.mxu0 %v9437_v29  ;;  %5178 = vmatpush.bf16.msrb.mxu2 %v7921_v18  ;;  %v8843_v18 = vld [vmem:[#allocation17 + $0x724] sm:$0xf0]  ;;  %v7381_v7 = vor.u32 %v8663_v62, %v7378_v63  ;;  %v8655_v9 = vld [vmem:[#allocation17 + $0x14c] sm:$0xf]  ;;  %v7669_v22 = vor.u32 %v8735_v4, %v7666_v6 }
 0x3fe   :  { %5156 = vmatpush.bf16.msrb.mxu0 %v7281_v19  ;;  %v7760_v19 = vld [vmem:[#allocation17 + $0x488] sm:$0xf]  ;;  %v8081_v40 = vor.u32 %v8843_v18, %v8080_v2  ;;  %v7346_v47 = vld [vmem:[#allocation17 + $0x168] sm:$0xf0] }
 0x3ff   :  { %v3489_v8 = vmax.f32 %v3483_v46, 0.0  ;;  %v7761_v12 = vor.u32 %v8763_v26, %v7760_v19  ;;  %v8727_v46 = vld [vmem:[#allocation17 + $0x38c] sm:$0xf]  ;;  %v7349_v17 = vor.u32 %v8655_v9, %v7346_v47  ;;  %v7696_v35 = vld [vmem:[#allocation17 + $0x408] sm:$0xf] }
 0x400   :  { %5168 = vmatpush.bf16.msrb.mxu1 %v7569_v11  ;;  %v8835_v11 = vld [vmem:[#allocation17 + $0x6e4] sm:$0xf0]  ;;  %v8791_v55 = vld [vmem:[#allocation17 + $0x58c] sm:$0xf] }
 0x401   :  { %v9449_v33 = vpack.c.bf16 %v3489_v8, %v3489_v8  ;;  %5179 = vmatpush.bf16.msrb.mxu2 %v7889_v16  ;;  %v7634_v16 = vld [vmem:[#allocation17 + $0x3a8] sm:$0xf0]  ;;  %v8747_v36 = vld [vmem:[#allocation17 + $0x424] sm:$0xf0] }
 0x402   :  { %5157 = vmatpush.bf16.msrb.mxu0 %v7249_v25  ;;  %v3471_v39 = vpop.f32.mrf.mxu2  ;;  %v3484_v32 = vpop.f32.mrf.mxu3  ;;  %v8049_v25 = vor.u32 %v8835_v11, %v8048_v10  ;;  %v7637_v8 = vor.u32 %v8727_v46, %v7634_v16  ;;  %v7984_v38 = vld [vmem:[#allocation17 + $0x648] sm:$0xf]  ;;  %v8863_v62 = vld [vmem:[#allocation17 + $0x7cc] sm:$0xf] }
 0x403   :  { %5095 = vmatmul.bf16.vlgmr.msrb.gmra.mxu3 %v9449_v33  ;;  %5121 = vmatmul.bf16.vlgmr.msra.gmra.mxu1 %v9441_v44  ;;  %v8017_v39 = vor.u32 %v8827_v31, %v8016_v30  ;;  %v7282_v32 = vld [vmem:[#allocation17 + $0xe8] sm:$0xf0]  ;;  %v8819_v52 = vld [vmem:[#allocation17 + $0x664] sm:$0xf0] }
 0x404   :  { %5169 = vmatpush.bf16.msrb.mxu1 %v7537_v13  ;;  %5191 = vmatpush.bf16.msrb.mxu3 %v8177_v14  ;;  %v7729_v13 = vor.u32 %v8755_v23, %v7728_v21  ;;  %v8719_v14 = vld [vmem:[#allocation17 + $0x34c] sm:$0xf]  ;;  %v7285_v50 = vor.u32 %v8639_v41, %v7282_v32  ;;  %v7985_v53 = vor.u32 %v8819_v52, %v7984_v38  ;;  %v7952_v58 = vld [vmem:[#allocation17 + $0x608] sm:$0xf]  ;;  %v7416_v21 = vld [vmem:[#allocation17 + $0x1d0] sm:$0xf] }
 0x405   :  { %5180 = vmatpush.bf16.msrb.mxu2 %v7857_v34  ;;  %v7317_v34 = vor.u32 %v8647_v27, %v7314_v28  ;;  %v7605_v45 = vor.u32 %v8719_v14, %v7602_v15  ;;  %v8811_v59 = vld [vmem:[#allocation17 + $0x624] sm:$0xf0]  ;;  %v8178_v63 = vld [vmem:[#allocation17 + $0x7e8] sm:$0xf0]  ;;  %v8676_v23 = vld [vmem:[#allocation17 + $0x1ec] sm:$0xf0] }
 0x406   :  { %5158 = vmatpush.bf16.msrb.mxu0 %v7217_v24  ;;  %v8799_v24 = vld [vmem:[#allocation17 + $0x5cc] sm:$0xf]  ;;  %v7953_v18 = vor.u32 %v8811_v59, %v7952_v58  ;;  %v8181_v19 = vor.u32 %v8863_v62, %v8178_v63  ;;  %v8668_v41 = vld [vmem:[#allocation17 + $0x1ac] sm:$0xf0] }
 0x407   :  { %v7925_v37 = vor.u32 %v8799_v24, %v7922_v43  ;;  %v8623_v2 = vld [vmem:[#allocation17 + $0x4c] sm:$0xf]  ;;  %v7672_v38 = vld [vmem:[#allocation17 + $0x3d0] sm:$0xf] }
 0x408   :  { %5170 = vmatpush.bf16.msrb.mxu1 %v7505_v42  ;;  %5192 = vmatpush.bf16.msrb.mxu3 %v8145_v48  ;;  %v7697_v42 = vor.u32 %v8747_v36, %v7696_v35  ;;  %v8711_v48 = vld [vmem:[#allocation17 + $0x30c] sm:$0xf]  ;;  %v7384_v36 = vld [vmem:[#allocation17 + $0x190] sm:$0xf] }
 0x409   :  { %5181 = vmatpush.bf16.msrb.mxu2 %v7825_v51  ;;  %v8631_v51 = vld [vmem:[#allocation17 + $0x8c] sm:$0xf]  ;;  %v8740_v52 = vld [vmem:[#allocation17 + $0x3ec] sm:$0xf0] }
 0x40a   :  { %5159 = vmatpush.bf16.msrb.mxu0 %v7185_v56  ;;  %v7890_v56 = vld [vmem:[#allocation17 + $0x5a8] sm:$0xf0]  ;;  %v7253_v0 = vor.u32 %v8631_v51, %v7250_v54  ;;  %v7352_v51 = vld [vmem:[#allocation17 + $0x150] sm:$0xf]  ;;  %v7673_v54 = vor.u32 %v8740_v52, %v7672_v38 }
 0x40b   :  { %v7893_v1 = vor.u32 %v8791_v55, %v7890_v56  ;;  %v8783_v4 = vld [vmem:[#allocation17 + $0x54c] sm:$0xf]  ;;  %v7640_v58 = vld [vmem:[#allocation17 + $0x390] sm:$0xf] }
 0x40c   :  { %5171 = vmatpush.bf16.msrb.mxu1 %v7473_v60  ;;  %5193 = vmatpush.bf16.msrb.mxu3 %v8113_v61  ;;  %v8703_v60 = vld [vmem:[#allocation17 + $0x2cc] sm:$0xf]  ;;  %v8732_v59 = vld [vmem:[#allocation17 + $0x3ac] sm:$0xf0] }
 0x40d   :  { %5134 = vmatmul.bf16.vlgmr.msra.gmra.mxu2 %v9445_v5  ;;  %5160 = vmatmul.bf16.vlgmr.msrb.gmra.mxu0 %v9437_v29  ;;  %v7538_v61 = vld [vmem:[#allocation17 + $0x2e8] sm:$0xf0] }
 0x40e   :  { %5204 = vmatpush.bf16.msra.mxu0 %v7413_v57  ;;  %5182 = vmatpush.bf16.msrb.mxu2 %v7793_v3  ;;  %v7573_v57 = vor.u32 %v8711_v48, %v7570_v49  ;;  %v7218_v3 = vld [vmem:[#allocation17 + $0x68] sm:$0xf0] }
 0x40f   :  { %v7858_v6 = vld [vmem:[#allocation17 + $0x568] sm:$0xf0]  ;;  %v7221_v47 = vor.u32 %v8623_v2, %v7218_v3  ;;  %v7641_v2 = vor.u32 %v8732_v59, %v7640_v58  ;;  %v8780_v58 = vld [vmem:[#allocation17 + $0x52c] sm:$0xf0] }
 0x410   :  { %5172 = vmatpush.bf16.msrb.mxu1 %v7441_v20  ;;  %5194 = vmatpush.bf16.msrb.mxu3 %v8081_v40  ;;  %v8695_v26 = vld [vmem:[#allocation17 + $0x28c] sm:$0xf] }
 0x411   :  { %v7506_v20 = vld [vmem:[#allocation17 + $0x2a8] sm:$0xf0] }
 0x412   :  { %5205 = vmatpush.bf16.msra.mxu0 %v7381_v7  ;;  %5183 = vmatpush.bf16.msrb.mxu2 %v7761_v12  ;;  %v7541_v7 = vor.u32 %v8703_v60, %v7538_v61  ;;  %v8855_v40 = vld [vmem:[#allocation17 + $0x78c] sm:$0xf]  ;;  %v7509_v16 = vor.u32 %v8695_v26, %v7506_v20 }
 0x413   :  { %5147 = vmatmul.bf16.vlgmr.msra.gmra.mxu3 %v9449_v33  ;;  %5173 = vmatmul.bf16.vlgmr.msrb.gmra.mxu1 %v9441_v44  ;;  %v8146_v9 = vld [vmem:[#allocation17 + $0x7a8] sm:$0xf0] }
 0x414   :  { %5217 = vmatpush.bf16.msra.mxu1 %v7669_v22  ;;  %5195 = vmatpush.bf16.msrb.mxu3 %v8049_v25  ;;  %v7861_v22 = vor.u32 %v8783_v4, %v7858_v6  ;;  %v8615_v10 = vld [vmem:[#allocation17 + $0xc] sm:$0xf]  ;;  %v7608_v6 = vld [vmem:[#allocation17 + $0x350] sm:$0xf] }
 0x415   :  { %v7186_v11 = vld [vmem:[#allocation17 + $0x28] sm:$0xf0] }
 0x416   :  { %5206 = vmatpush.bf16.msra.mxu0 %v7349_v17  ;;  %5184 = vmatpush.bf16.msrb.mxu2 %v7729_v13  ;;  %v8775_v12 = vld [vmem:[#allocation17 + $0x50c] sm:$0xf]  ;;  %v8149_v17 = vor.u32 %v8855_v40, %v8146_v9  ;;  %v7189_v30 = vor.u32 %v8615_v10, %v7186_v11  ;;  %v7417_v13 = vor.u32 %v8676_v23, %v7416_v21  ;;  %v7288_v40 = vld [vmem:[#allocation17 + $0xd0] sm:$0xf] }
 0x417   :  { %v7826_v46 = vld [vmem:[#allocation17 + $0x528] sm:$0xf0]  ;;  %v8804_v10 = vld [vmem:[#allocation17 + $0x5ec] sm:$0xf0] }
 0x418   :  { %5218 = vmatpush.bf16.msra.mxu1 %v7637_v8  ;;  %5196 = vmatpush.bf16.msrb.mxu3 %v8017_v39  ;;  %v8687_v25 = vld [vmem:[#allocation17 + $0x24c] sm:$0xf]  ;;  %v7829_v31 = vor.u32 %v8775_v12, %v7826_v46  ;;  %v8716_v21 = vld [vmem:[#allocation17 + $0x32c] sm:$0xf0] }
 0x419   :  { %v7474_v27 = vld [vmem:[#allocation17 + $0x268] sm:$0xf0] }
 0x41a   :  { %5207 = vmatpush.bf16.msra.mxu0 %v7317_v34  ;;  %5185 = vmatpush.bf16.msrb.mxu2 %v7697_v42  ;;  %v8847_v28 = vld [vmem:[#allocation17 + $0x74c] sm:$0xf]  ;;  %v7477_v34 = vor.u32 %v8687_v25, %v7474_v27  ;;  %v7385_v42 = vor.u32 %v8668_v41, %v7384_v36  ;;  %v7256_v27 = vld [vmem:[#allocation17 + $0x90] sm:$0xf] }
 0x41b   :  { %v8114_v8 = vld [vmem:[#allocation17 + $0x768] sm:$0xf0]  ;;  %v8184_v36 = vld [vmem:[#allocation17 + $0x7d0] sm:$0xf] }
 0x41c   :  { %5219 = vmatpush.bf16.msra.mxu1 %v7605_v45  ;;  %5197 = vmatpush.bf16.msrb.mxu3 %v7985_v53  ;;  %v8767_v14 = vld [vmem:[#allocation17 + $0x4cc] sm:$0xf]  ;;  %v8117_v35 = vor.u32 %v8847_v28, %v8114_v8  ;;  %v8660_v53 = vld [vmem:[#allocation17 + $0x16c] sm:$0xf0] }
 0x41d   :  { %5186 = vmatmul.bf16.vlgmr.msrb.gmra.mxu2 %v9445_v5  ;;  %v7794_v15 = vld [vmem:[#allocation17 + $0x4e8] sm:$0xf0]  ;;  %v7353_v60 = vor.u32 %v8660_v53, %v7352_v51  ;;  %v8636_v8 = vld [vmem:[#allocation17 + $0xac] sm:$0xf0] }
 0x41e   :  { %5208 = vmatpush.bf16.msra.mxu0 %v7285_v50  ;;  %5230 = vmatpush.bf16.msra.mxu2 %v7925_v37  ;;  %v8679_v39 = vld [vmem:[#allocation17 + $0x20c] sm:$0xf]  ;;  %v7797_v45 = vor.u32 %v8767_v14, %v7794_v15  ;;  %v8868_v41 = vld [vmem:[#allocation17 + $0x7ec] sm:$0xf0] }
 0x41f   :  { %v7442_v32 = vld [vmem:[#allocation17 + $0x228] sm:$0xf0]  ;;  %v8185_v52 = vor.u32 %v8868_v41, %v8184_v36  ;;  %v8860_v51 = vld [vmem:[#allocation17 + $0x7ac] sm:$0xf0] }
 0x420   :  { %5220 = vmatpush.bf16.msra.mxu1 %v7573_v57  ;;  %5198 = vmatpush.bf16.msrb.mxu3 %v7953_v18  ;;  %v8839_v24 = vld [vmem:[#allocation17 + $0x70c] sm:$0xf]  ;;  %v7445_v50 = vor.u32 %v8679_v39, %v7442_v32  ;;  %v7257_v39 = vor.u32 %v8636_v8, %v7256_v27  ;;  %v8656_v27 = vld [vmem:[#allocation17 + $0x154] sm:$0xf]  ;;  %v7736_v36 = vld [vmem:[#allocation17 + $0x450] sm:$0xf] }
 0x421   :  { %v8082_v43 = vld [vmem:[#allocation17 + $0x728] sm:$0xf0]  ;;  %v7354_v8 = vld [vmem:[#allocation17 + $0x170] sm:$0xf0]  ;;  %v8756_v41 = vld [vmem:[#allocation17 + $0x46c] sm:$0xf0] }
 0x422   :  { %5209 = vmatpush.bf16.msra.mxu0 %v7253_v0  ;;  %5231 = vmatpush.bf16.msra.mxu2 %v7893_v1  ;;  %v8759_v48 = vld [vmem:[#allocation17 + $0x48c] sm:$0xf]  ;;  %v8085_v37 = vor.u32 %v8839_v24, %v8082_v43  ;;  %v7320_v0 = vld [vmem:[#allocation17 + $0x110] sm:$0xf] }
 0x423   :  { %5199 = vmatmul.bf16.vlgmr.msrb.gmra.mxu3 %v9449_v33  ;;  %v7762_v49 = vld [vmem:[#allocation17 + $0x4a8] sm:$0xf0]  ;;  %v8652_v1 = vld [vmem:[#allocation17 + $0x12c] sm:$0xf0] }
 0x424   :  { %5221 = vmatpush.bf16.msra.mxu1 %v7541_v7  ;;  %5243 = vmatpush.bf16.msra.mxu3 %v8181_v19  ;;  %v8831_v55 = vld [vmem:[#allocation17 + $0x6cc] sm:$0xf]  ;;  %v7765_v57 = vor.u32 %v8759_v48, %v7762_v49  ;;  %v8724_v7 = vld [vmem:[#allocation17 + $0x36c] sm:$0xf0]  ;;  %v7321_v19 = vor.u32 %v8652_v1, %v7320_v0 }
 0x425   :  { %v8050_v56 = vld [vmem:[#allocation17 + $0x6e8] sm:$0xf0]  ;;  %v7609_v11 = vor.u32 %v8724_v7, %v7608_v6  ;;  %v7224_v43 = vld [vmem:[#allocation17 + $0x50] sm:$0xf] }
 0x426   :  { %5210 = vmatpush.bf16.msra.mxu0 %v7221_v47  ;;  %5232 = vmatpush.bf16.msra.mxu2 %v7861_v22  ;;  %v8751_v61 = vld [vmem:[#allocation17 + $0x44c] sm:$0xf]  ;;  %v8053_v63 = vor.u32 %v8831_v55, %v8050_v56  ;;  %v8644_v47 = vld [vmem:[#allocation17 + $0xec] sm:$0xf0] }
 0x427   :  { %v7730_v62 = vld [vmem:[#allocation17 + $0x468] sm:$0xf0]  ;;  %v7928_v22 = vld [vmem:[#allocation17 + $0x5d0] sm:$0xf]  ;;  %v7289_v23 = vor.u32 %v8644_v47, %v7288_v40  ;;  %v7386_v40 = vld [vmem:[#allocation17 + $0x1b0] sm:$0xf0] }
 0x428   :  { %5222 = vmatpush.bf16.msra.mxu1 %v7509_v16  ;;  %5244 = vmatpush.bf16.msra.mxu3 %v8149_v17  ;;  %v8823_v18 = vld [vmem:[#allocation17 + $0x68c] sm:$0xf]  ;;  %v7733_v4 = vor.u32 %v8751_v61, %v7730_v62  ;;  %v7576_v17 = vld [vmem:[#allocation17 + $0x310] sm:$0xf]  ;;  %v7929_v25 = vor.u32 %v8804_v10, %v7928_v22  ;;  %v8672_v61 = vld [vmem:[#allocation17 + $0x1d4] sm:$0xf] }
 0x429   :  { %v8018_v3 = vld [vmem:[#allocation17 + $0x6a8] sm:$0xf0]  ;;  %v8788_v48 = vld [vmem:[#allocation17 + $0x56c] sm:$0xf0]  ;;  %v7418_v62 = vld [vmem:[#allocation17 + $0x1f0] sm:$0xf0] }
 0x42a   :  { %5211 = vmatpush.bf16.msra.mxu0 %v7189_v30  ;;  %5233 = vmatpush.bf16.msra.mxu2 %v7829_v31  ;;  %v8743_v26 = vld [vmem:[#allocation17 + $0x40c] sm:$0xf]  ;;  %v8021_v9 = vor.u32 %v8823_v18, %v8018_v3  ;;  %v7896_v30 = vld [vmem:[#allocation17 + $0x590] sm:$0xf] }
 0x42b   :  { %v7698_v20 = vld [vmem:[#allocation17 + $0x428] sm:$0xf0]  ;;  %v8796_v31 = vld [vmem:[#allocation17 + $0x5ac] sm:$0xf0] }
 0x42c   :  { %5223 = vmatpush.bf16.msra.mxu1 %v7477_v34  ;;  %5245 = vmatpush.bf16.msra.mxu3 %v8117_v35  ;;  %v8815_v12 = vld [vmem:[#allocation17 + $0x64c] sm:$0xf]  ;;  %v7701_v16 = vor.u32 %v8743_v26, %v7698_v20  ;;  %v7544_v34 = vld [vmem:[#allocation17 + $0x2d0] sm:$0xf]  ;;  %v7897_v32 = vor.u32 %v8796_v31, %v7896_v30  ;;  %v8664_v20 = vld [vmem:[#allocation17 + $0x194] sm:$0xf] }
 0x42d   :  { %5212 = vmatmul.bf16.vlgmr.msra.gmra.mxu0 %v9437_v29  ;;  %v7986_v46 = vld [vmem:[#allocation17 + $0x668] sm:$0xf0]  ;;  %v8708_v35 = vld [vmem:[#allocation17 + $0x2ec] sm:$0xf0] }
 0x42e   :  { %5256 = vmatpush.bf16.msrb.mxu0 %v7417_v13  ;;  %5234 = vmatpush.bf16.msra.mxu2 %v7797_v45  ;;  %v7989_v28 = vor.u32 %v8815_v12, %v7986_v46  ;;  %v7577_v13 = vor.u32 %v8716_v21, %v7576_v17  ;;  %v8807_v14 = vld [vmem:[#allocation17 + $0x60c] sm:$0xf]  ;;  %v8628_v45 = vld [vmem:[#allocation17 + $0x6c] sm:$0xf0]  ;;  %v7545_v38 = vor.u32 %v8708_v35, %v7544_v34  ;;  %v7674_v12 = vld [vmem:[#allocation17 + $0x3f0] sm:$0xf0] }
 0x42f   :  { %v7954_v15 = vld [vmem:[#allocation17 + $0x628] sm:$0xf0]  ;;  %v7512_v49 = vld [vmem:[#allocation17 + $0x290] sm:$0xf]  ;;  %v7225_v53 = vor.u32 %v8628_v45, %v7224_v43  ;;  %v7357_v34 = vor.u32 %v8656_v27, %v7354_v8  ;;  %v8154_v27 = vld [vmem:[#allocation17 + $0x7b0] sm:$0xf0] }
 0x430   :  { %5224 = vmatpush.bf16.msra.mxu1 %v7445_v50  ;;  %5246 = vmatpush.bf16.msra.mxu3 %v8085_v37  ;;  %v7957_v24 = vor.u32 %v8807_v14, %v7954_v15  ;;  %v8700_v50 = vld [vmem:[#allocation17 + $0x2ac] sm:$0xf0]  ;;  %v7642_v14 = vld [vmem:[#allocation17 + $0x3b0] sm:$0xf0] }
 0x431   :  { %v8152_v37 = vld [vmem:[#allocation17 + $0x790] sm:$0xf]  ;;  %v7513_v59 = vor.u32 %v8700_v50, %v7512_v49  ;;  %v8616_v8 = vld [vmem:[#allocation17 + $0x14] sm:$0xf] }
 0x432   :  { %5257 = vmatpush.bf16.msrb.mxu0 %v7385_v42  ;;  %5235 = vmatpush.bf16.msra.mxu2 %v7765_v57  ;;  %v7864_v42 = vld [vmem:[#allocation17 + $0x550] sm:$0xf] }
 0x433   :  { %5225 = vmatmul.bf16.vlgmr.msra.gmra.mxu1 %v9441_v44  ;;  %v7865_v55 = vor.u32 %v8788_v48, %v7864_v42  ;;  %v8620_v56 = vld [vmem:[#allocation17 + $0x2c] sm:$0xf0]  ;;  %v7737_v42 = vor.u32 %v8756_v41, %v7736_v36  ;;  %v8677_v36 = vld [vmem:[#allocation17 + $0x1f4] sm:$0xf0]  ;;  %v8688_v41 = vld [vmem:[#allocation17 + $0x254] sm:$0xf] }
 0x434   :  { %5269 = vmatpush.bf16.msrb.mxu1 %v7673_v54  ;;  %5247 = vmatpush.bf16.msra.mxu3 %v8053_v63  ;;  %v7192_v54 = vld [vmem:[#allocation17 + $0x10] sm:$0xf] }
 0x435   :  { %v7832_v57 = vld [vmem:[#allocation17 + $0x510] sm:$0xf]  ;;  %v7193_v18 = vor.u32 %v8620_v56, %v7192_v54  ;;  %v7930_v56 = vld [vmem:[#allocation17 + $0x5f0] sm:$0xf0] }
 0x436   :  { %5258 = vmatpush.bf16.msrb.mxu0 %v7353_v60  ;;  %5236 = vmatpush.bf16.msra.mxu2 %v7733_v4  ;;  %v8153_v60 = vor.u32 %v8860_v51, %v8152_v37  ;;  %v7480_v63 = vld [vmem:[#allocation17 + $0x250] sm:$0xf]  ;;  %v7833_v3 = vor.u32 %v8780_v58, %v7832_v57  ;;  %v7421_v4 = vor.u32 %v8672_v61, %v7418_v62  ;;  %v8640_v51 = vld [vmem:[#allocation17 + $0xd4] sm:$0xf] }
 0x437   :  { %v8692_v0 = vld [vmem:[#allocation17 + $0x26c] sm:$0xf0] }
 0x438   :  { %5270 = vmatpush.bf16.msrb.mxu1 %v7641_v2  ;;  %5248 = vmatpush.bf16.msra.mxu3 %v8021_v9  ;;  %v8120_v1 = vld [vmem:[#allocation17 + $0x750] sm:$0xf] }
 0x439   :  { %v8852_v2 = vld [vmem:[#allocation17 + $0x76c] sm:$0xf0] }
 0x43a   :  { %5259 = vmatpush.bf16.msrb.mxu0 %v7321_v19  ;;  %5237 = vmatpush.bf16.msra.mxu2 %v7701_v16  ;;  %v7800_v6 = vld [vmem:[#allocation17 + $0x4d0] sm:$0xf]  ;;  %v7481_v19 = vor.u32 %v8692_v0, %v7480_v63  ;;  %v8121_v26 = vor.u32 %v8852_v2, %v8120_v1  ;;  %v7389_v16 = vor.u32 %v8664_v20, %v7386_v40  ;;  %v8632_v0 = vld [vmem:[#allocation17 + $0x94] sm:$0xf] }
 0x43b   :  { %v8772_v7 = vld [vmem:[#allocation17 + $0x4ec] sm:$0xf0]  ;;  %v7258_v1 = vld [vmem:[#allocation17 + $0xb0] sm:$0xf0] }
 0x43c   :  { %5271 = vmatpush.bf16.msrb.mxu1 %v7609_v11  ;;  %5249 = vmatpush.bf16.msra.mxu3 %v7989_v28  ;;  %v7448_v9 = vld [vmem:[#allocation17 + $0x210] sm:$0xf]  ;;  %v8736_v11 = vld [vmem:[#allocation17 + $0x3d4] sm:$0xf]  ;;  %v7801_v46 = vor.u32 %v8772_v7, %v7800_v6 }
 0x43d   :  { %5238 = vmatmul.bf16.vlgmr.msra.gmra.mxu2 %v9445_v5  ;;  %v8684_v47 = vld [vmem:[#allocation17 + $0x22c] sm:$0xf0]  ;;  %v7677_v28 = vor.u32 %v8736_v11, %v7674_v12  ;;  %v8864_v20 = vld [vmem:[#allocation17 + $0x7d4] sm:$0xf] }
 0x43e   :  { %5260 = vmatpush.bf16.msrb.mxu0 %v7289_v23  ;;  %5282 = vmatpush.bf16.msrb.mxu2 %v7929_v25  ;;  %v8088_v22 = vld [vmem:[#allocation17 + $0x710] sm:$0xf]  ;;  %v7449_v17 = vor.u32 %v8684_v47, %v7448_v9  ;;  %v8186_v40 = vld [vmem:[#allocation17 + $0x7f0] sm:$0xf0]  ;;  %v7261_v9 = vor.u32 %v8632_v0, %v7258_v1  ;;  %v7360_v0 = vld [vmem:[#allocation17 + $0x158] sm:$0xf] }
 0x43f   :  { %v8844_v10 = vld [vmem:[#allocation17 + $0x72c] sm:$0xf0]  ;;  %v8624_v11 = vld [vmem:[#allocation17 + $0x54] sm:$0xf] }
 0x440   :  { %5272 = vmatpush.bf16.msrb.mxu1 %v7577_v13  ;;  %5250 = vmatpush.bf16.msra.mxu3 %v7957_v24  ;;  %v8089_v21 = vor.u32 %v8844_v10, %v8088_v22  ;;  %v7768_v23 = vld [vmem:[#allocation17 + $0x490] sm:$0xf]  ;;  %v8728_v13 = vld [vmem:[#allocation17 + $0x394] sm:$0xf] }
 0x441   :  { %v8764_v25 = vld [vmem:[#allocation17 + $0x4ac] sm:$0xf0]  ;;  %v7322_v24 = vld [vmem:[#allocation17 + $0x130] sm:$0xf0] }
 0x442   :  { %5261 = vmatpush.bf16.msrb.mxu0 %v7257_v39  ;;  %5283 = vmatpush.bf16.msrb.mxu2 %v7897_v32  ;;  %v8056_v30 = vld [vmem:[#allocation17 + $0x6d0] sm:$0xf]  ;;  %v7769_v15 = vor.u32 %v8764_v25, %v7768_v23  ;;  %v8648_v39 = vld [vmem:[#allocation17 + $0x114] sm:$0xf]  ;;  %v7645_v32 = vor.u32 %v8728_v13, %v7642_v14 }
 0x443   :  { %5251 = vmatmul.bf16.vlgmr.msra.gmra.mxu3 %v9449_v33  ;;  %v8836_v31 = vld [vmem:[#allocation17 + $0x6ec] sm:$0xf0]  ;;  %v7325_v49 = vor.u32 %v8648_v39, %v7322_v24  ;;  %v7226_v12 = vld [vmem:[#allocation17 + $0x70] sm:$0xf0] }
 0x444   :  { %5273 = vmatpush.bf16.msrb.mxu1 %v7545_v38  ;;  %5295 = vmatpush.bf16.msrb.mxu3 %v8185_v52  ;;  %v8057_v35 = vor.u32 %v8836_v31, %v8056_v30  ;;  %v8024_v43 = vld [vmem:[#allocation17 + $0x690] sm:$0xf]  ;;  %v8720_v38 = vld [vmem:[#allocation17 + $0x354] sm:$0xf] }
 0x445   :  { %v8828_v45 = vld [vmem:[#allocation17 + $0x6ac] sm:$0xf0]  ;;  %v7610_v52 = vld [vmem:[#allocation17 + $0x370] sm:$0xf0] }
 0x446   :  { %5262 = vmatpush.bf16.msrb.mxu0 %v7225_v53  ;;  %5284 = vmatpush.bf16.msrb.mxu2 %v7865_v55  ;;  %v7704_v48 = vld [vmem:[#allocation17 + $0x410] sm:$0xf]  ;;  %v8025_v50 = vor.u32 %v8828_v45, %v8024_v43  ;;  %v7290_v53 = vld [vmem:[#allocation17 + $0xf0] sm:$0xf0]  ;;  %v7613_v54 = vor.u32 %v8720_v38, %v7610_v52 }
 0x447   :  { %v8748_v37 = vld [vmem:[#allocation17 + $0x42c] sm:$0xf0]  ;;  %v8800_v55 = vld [vmem:[#allocation17 + $0x5d4] sm:$0xf]  ;;  %v7293_v62 = vor.u32 %v8640_v51, %v7290_v53 }
 0x448   :  { %5274 = vmatpush.bf16.msrb.mxu1 %v7513_v59  ;;  %5296 = vmatpush.bf16.msrb.mxu3 %v8153_v60  ;;  %v7992_v57 = vld [vmem:[#allocation17 + $0x650] sm:$0xf]  ;;  %v8712_v59 = vld [vmem:[#allocation17 + $0x314] sm:$0xf]  ;;  %v7705_v61 = vor.u32 %v8748_v37, %v7704_v48  ;;  %v7933_v63 = vor.u32 %v8800_v55, %v7930_v56  ;;  %v8669_v37 = vld [vmem:[#allocation17 + $0x1b4] sm:$0xf0] }
 0x449   :  { %v8820_v58 = vld [vmem:[#allocation17 + $0x66c] sm:$0xf0]  ;;  %v7578_v60 = vld [vmem:[#allocation17 + $0x330] sm:$0xf0]  ;;  %v7680_v56 = vld [vmem:[#allocation17 + $0x3d8] sm:$0xf] }
 0x44a   :  { %5263 = vmatpush.bf16.msrb.mxu0 %v7193_v18  ;;  %5285 = vmatpush.bf16.msrb.mxu2 %v7833_v3  ;;  %v7993_v2 = vor.u32 %v8820_v58, %v7992_v57  ;;  %v7581_v18 = vor.u32 %v8712_v59, %v7578_v60  ;;  %v8792_v3 = vld [vmem:[#allocation17 + $0x594] sm:$0xf]  ;;  %v7960_v6 = vld [vmem:[#allocation17 + $0x610] sm:$0xf]  ;;  %v8741_v57 = vld [vmem:[#allocation17 + $0x3f4] sm:$0xf0] }
 0x44b   :  { %v8812_v7 = vld [vmem:[#allocation17 + $0x62c] sm:$0xf0]  ;;  %v7514_v23 = vld [vmem:[#allocation17 + $0x2b0] sm:$0xf0]  ;;  %v7681_v1 = vor.u32 %v8741_v57, %v7680_v56 }
 0x44c   :  { %5275 = vmatpush.bf16.msrb.mxu1 %v7481_v19  ;;  %5297 = vmatpush.bf16.msrb.mxu3 %v8121_v26  ;;  %v8704_v19 = vld [vmem:[#allocation17 + $0x2d4] sm:$0xf]  ;;  %v7961_v22 = vor.u32 %v8812_v7, %v7960_v6  ;;  %v8733_v6 = vld [vmem:[#allocation17 + $0x3b4] sm:$0xf0] }
 0x44d   :  { %5264 = vmatmul.bf16.vlgmr.msrb.gmra.mxu0 %v9437_v29  ;;  %v7546_v26 = vld [vmem:[#allocation17 + $0x2f0] sm:$0xf0] }
 0x44e   :  { %5308 = vmatpush.bf16.msra.mxu0 %v7421_v4  ;;  %5286 = vmatpush.bf16.msrb.mxu2 %v7801_v46  ;;  %v7898_v4 = vld [vmem:[#allocation17 + $0x5b0] sm:$0xf0]  ;;  %v7549_v10 = vor.u32 %v8704_v19, %v7546_v26 }
 0x44f   :  { %v7901_v47 = vor.u32 %v8792_v3, %v7898_v4  ;;  %v8784_v46 = vld [vmem:[#allocation17 + $0x554] sm:$0xf]  ;;  %v7648_v4 = vld [vmem:[#allocation17 + $0x398] sm:$0xf] }
 0x450   :  { %5276 = vmatpush.bf16.msrb.mxu1 %v7449_v17  ;;  %5298 = vmatpush.bf16.msrb.mxu3 %v8089_v21  ;;  %v7866_v17 = vld [vmem:[#allocation17 + $0x570] sm:$0xf0] }
 0x451   :  { %v8696_v21 = vld [vmem:[#allocation17 + $0x294] sm:$0xf]  ;;  %v7869_v30 = vor.u32 %v8784_v46, %v7866_v17  ;;  %v7616_v46 = vld [vmem:[#allocation17 + $0x358] sm:$0xf] }
 0x452   :  { %5309 = vmatpush.bf16.msra.mxu0 %v7389_v16  ;;  %5287 = vmatpush.bf16.msrb.mxu2 %v7769_v15  ;;  %v8189_v16 = vor.u32 %v8864_v20, %v8186_v40  ;;  %v8856_v25 = vld [vmem:[#allocation17 + $0x794] sm:$0xf]  ;;  %v7517_v31 = vor.u32 %v8696_v21, %v7514_v23 }
 0x453   :  { %5277 = vmatmul.bf16.vlgmr.msrb.gmra.mxu1 %v9441_v44  ;;  %v7194_v13 = vld [vmem:[#allocation17 + $0x30] sm:$0xf0] }
 0x454   :  { %5321 = vmatpush.bf16.msra.mxu1 %v7677_v28  ;;  %5299 = vmatpush.bf16.msrb.mxu3 %v8057_v35  ;;  %v7229_v28 = vor.u32 %v8624_v11, %v7226_v12  ;;  %v8776_v14 = vld [vmem:[#allocation17 + $0x514] sm:$0xf]  ;;  %v7424_v35 = vld [vmem:[#allocation17 + $0x1d8] sm:$0xf]  ;;  %v7197_v43 = vor.u32 %v8616_v8, %v7194_v13 }
 0x455   :  { %v7834_v15 = vld [vmem:[#allocation17 + $0x530] sm:$0xf0]  ;;  %v7425_v38 = vor.u32 %v8677_v36, %v7424_v35  ;;  %v8645_v8 = vld [vmem:[#allocation17 + $0xf4] sm:$0xf0] }
 0x456   :  { %5310 = vmatpush.bf16.msra.mxu0 %v7357_v34  ;;  %5288 = vmatpush.bf16.msrb.mxu2 %v7737_v42  ;;  %v8157_v34 = vor.u32 %v8856_v25, %v8154_v27  ;;  %v7482_v39 = vld [vmem:[#allocation17 + $0x270] sm:$0xf0]  ;;  %v7837_v45 = vor.u32 %v8776_v14, %v7834_v15  ;;  %v8805_v13 = vld [vmem:[#allocation17 + $0x5f4] sm:$0xf0] }
 0x457   :  { %v8122_v24 = vld [vmem:[#allocation17 + $0x770] sm:$0xf0]  ;;  %v7485_v48 = vor.u32 %v8688_v41, %v7482_v39  ;;  %v8717_v35 = vld [vmem:[#allocation17 + $0x334] sm:$0xf0] }
 0x458   :  { %5322 = vmatpush.bf16.msra.mxu1 %v7645_v32  ;;  %5300 = vmatpush.bf16.msrb.mxu3 %v8025_v50  ;;  %v8848_v32 = vld [vmem:[#allocation17 + $0x754] sm:$0xf]  ;;  %v7392_v50 = vld [vmem:[#allocation17 + $0x198] sm:$0xf] }
 0x459   :  { %v8768_v52 = vld [vmem:[#allocation17 + $0x4d4] sm:$0xf]  ;;  %v7393_v59 = vor.u32 %v8669_v37, %v7392_v50  ;;  %v7552_v37 = vld [vmem:[#allocation17 + $0x2d8] sm:$0xf] }
 0x45a   :  { %5311 = vmatpush.bf16.msra.mxu0 %v7325_v49  ;;  %5289 = vmatpush.bf16.msrb.mxu2 %v7705_v61  ;;  %v7802_v42 = vld [vmem:[#allocation17 + $0x4f0] sm:$0xf0]  ;;  %v8125_v49 = vor.u32 %v8848_v32, %v8122_v24  ;;  %v7264_v24 = vld [vmem:[#allocation17 + $0x98] sm:$0xf] }
 0x45b   :  { %v8680_v51 = vld [vmem:[#allocation17 + $0x214] sm:$0xf]  ;;  %v7805_v58 = vor.u32 %v8768_v52, %v7802_v42  ;;  %v7904_v42 = vld [vmem:[#allocation17 + $0x598] sm:$0xf] }
 0x45c   :  { %5323 = vmatpush.bf16.msra.mxu1 %v7613_v54  ;;  %5301 = vmatpush.bf16.msrb.mxu3 %v7993_v2  ;;  %v7450_v53 = vld [vmem:[#allocation17 + $0x230] sm:$0xf0]  ;;  %v8661_v2 = vld [vmem:[#allocation17 + $0x174] sm:$0xf0] }
 0x45d   :  { %5290 = vmatmul.bf16.vlgmr.msrb.gmra.mxu2 %v9445_v5  ;;  %v8840_v54 = vld [vmem:[#allocation17 + $0x714] sm:$0xf]  ;;  %v7453_v60 = vor.u32 %v8680_v51, %v7450_v53  ;;  %v7361_v19 = vor.u32 %v8661_v2, %v7360_v0  ;;  %v8709_v51 = vld [vmem:[#allocation17 + $0x2f4] sm:$0xf0] }
 0x45e   :  { %5312 = vmatpush.bf16.msra.mxu0 %v7293_v62  ;;  %5334 = vmatpush.bf16.msra.mxu2 %v7933_v63  ;;  %v8090_v55 = vld [vmem:[#allocation17 + $0x730] sm:$0xf0]  ;;  %v8192_v53 = vld [vmem:[#allocation17 + $0x7d8] sm:$0xf] }
 0x45f   :  { %v8093_v61 = vor.u32 %v8840_v54, %v8090_v55  ;;  %v8760_v62 = vld [vmem:[#allocation17 + $0x494] sm:$0xf]  ;;  %v8869_v54 = vld [vmem:[#allocation17 + $0x7f4] sm:$0xf0] }
 0x460   :  { %5324 = vmatpush.bf16.msra.mxu1 %v7581_v18  ;;  %5302 = vmatpush.bf16.msrb.mxu3 %v7961_v22  ;;  %v7770_v63 = vld [vmem:[#allocation17 + $0x4b0] sm:$0xf0]  ;;  %v7649_v22 = vor.u32 %v8733_v6, %v7648_v4  ;;  %v7520_v0 = vld [vmem:[#allocation17 + $0x298] sm:$0xf] }
 0x461   :  { %v8832_v18 = vld [vmem:[#allocation17 + $0x6d4] sm:$0xf]  ;;  %v7773_v7 = vor.u32 %v8760_v62, %v7770_v63  ;;  %v8193_v62 = vor.u32 %v8869_v54, %v8192_v53  ;;  %v8789_v63 = vld [vmem:[#allocation17 + $0x574] sm:$0xf0]  ;;  %v8657_v53 = vld [vmem:[#allocation17 + $0x15c] sm:$0xf] }
 0x462   :  { %5313 = vmatpush.bf16.msra.mxu0 %v7261_v9  ;;  %5335 = vmatpush.bf16.msra.mxu2 %v7901_v47  ;;  %v8058_v3 = vld [vmem:[#allocation17 + $0x6f0] sm:$0xf0]  ;;  %v7328_v9 = vld [vmem:[#allocation17 + $0x118] sm:$0xf] }
 0x463   :  { %5303 = vmatmul.bf16.vlgmr.msrb.gmra.mxu3 %v9449_v33  ;;  %v8061_v26 = vor.u32 %v8832_v18, %v8058_v3  ;;  %v8752_v20 = vld [vmem:[#allocation17 + $0x454] sm:$0xf]  ;;  %v8160_v2 = vld [vmem:[#allocation17 + $0x798] sm:$0xf] }
 0x464   :  { %5325 = vmatpush.bf16.msra.mxu1 %v7549_v10  ;;  %5347 = vmatpush.bf16.msra.mxu3 %v8189_v16  ;;  %v7738_v40 = vld [vmem:[#allocation17 + $0x470] sm:$0xf0]  ;;  %v8653_v10 = vld [vmem:[#allocation17 + $0x134] sm:$0xf0] }
 0x465   :  { %v8824_v11 = vld [vmem:[#allocation17 + $0x694] sm:$0xf]  ;;  %v8725_v16 = vld [vmem:[#allocation17 + $0x374] sm:$0xf0]  ;;  %v7741_v17 = vor.u32 %v8752_v20, %v7738_v40  ;;  %v7329_v23 = vor.u32 %v8653_v10, %v7328_v9 }
 0x466   :  { %5314 = vmatpush.bf16.msra.mxu0 %v7229_v28  ;;  %5336 = vmatpush.bf16.msra.mxu2 %v7869_v30  ;;  %v8026_v12 = vld [vmem:[#allocation17 + $0x6b0] sm:$0xf0]  ;;  %v7296_v28 = vld [vmem:[#allocation17 + $0xd8] sm:$0xf]  ;;  %v7617_v30 = vor.u32 %v8725_v16, %v7616_v46 }
 0x467   :  { %v8744_v21 = vld [vmem:[#allocation17 + $0x414] sm:$0xf]  ;;  %v8029_v25 = vor.u32 %v8824_v11, %v8026_v12  ;;  %v7297_v39 = vor.u32 %v8645_v8, %v7296_v28  ;;  %v8861_v18 = vld [vmem:[#allocation17 + $0x7b4] sm:$0xf0]  ;;  %v8673_v11 = vld [vmem:[#allocation17 + $0x1dc] sm:$0xf] }
 0x468   :  { %5326 = vmatpush.bf16.msra.mxu1 %v7517_v31  ;;  %5348 = vmatpush.bf16.msra.mxu3 %v8157_v34  ;;  %v7706_v27 = vld [vmem:[#allocation17 + $0x430] sm:$0xf0]  ;;  %v7936_v31 = vld [vmem:[#allocation17 + $0x5d8] sm:$0xf]  ;;  %v8161_v10 = vor.u32 %v8861_v18, %v8160_v2  ;;  %v7426_v12 = vld [vmem:[#allocation17 + $0x1f8] sm:$0xf0] }
 0x469   :  { %v9468_v47 = vpop.f32.mrf.mxu0  ;;  %v8816_v14 = vld [vmem:[#allocation17 + $0x654] sm:$0xf]  ;;  %v7584_v34 = vld [vmem:[#allocation17 + $0x318] sm:$0xf]  ;;  %v7709_v36 = vor.u32 %v8744_v21, %v7706_v27  ;;  %v7937_v32 = vor.u32 %v8805_v13, %v7936_v31  ;;  %v7429_v28 = vor.u32 %v8673_v11, %v7426_v12 }
 0x46a   :  { %5315 = vmatpush.bf16.msra.mxu0 %v7197_v43  ;;  %5337 = vmatpush.bf16.msra.mxu2 %v7837_v45  ;;  %v7994_v15 = vld [vmem:[#allocation17 + $0x670] sm:$0xf0]  ;;  %v8637_v43 = vld [vmem:[#allocation17 + $0xb4] sm:$0xf0]  ;;  %v7585_v52 = vor.u32 %v8717_v35, %v7584_v34 }
 0x46b   :  { %v7962_v50 = vld [vmem:[#allocation17 + $0x630] sm:$0xf0]  ;;  %v7265_v55 = vor.u32 %v8637_v43, %v7264_v24  ;;  %v8621_v20 = vld [vmem:[#allocation17 + $0x34] sm:$0xf0]  ;;  %v8737_v43 = vld [vmem:[#allocation17 + $0x3dc] sm:$0xf] }
 0x46c   :  { %5327 = vmatpush.bf16.msra.mxu1 %v7485_v48  ;;  %5349 = vmatpush.bf16.msra.mxu3 %v8125_v49  ;;  %v8797_v48 = vld [vmem:[#allocation17 + $0x5b4] sm:$0xf0]  ;;  %v8808_v49 = vld [vmem:[#allocation17 + $0x614] sm:$0xf] }
 0x46d   :  { %5316 = vmatmul.bf16.vlgmr.msra.gmra.mxu0 %v9437_v29  ;;  %v7905_v56 = vor.u32 %v8797_v48, %v7904_v42  ;;  %v7965_v57 = vor.u32 %v8808_v49, %v7962_v50  ;;  %v9477_v3 = vld [vmem:[%s9528_s12] sm:$0xff]  ;;  %s9214_s12 = smov [#allocation20]  }
 0x46e   :  { %5360 = vmatpush.bf16.msrb.mxu0 %v7425_v38  ;;  %5338 = vmatpush.bf16.msra.mxu2 %v7805_v58  ;;  %v7997_v38 = vor.u32 %v8816_v14, %v7994_v15  ;;  %v7553_v58 = vor.u32 %v8709_v51, %v7552_v37  ;;  %v7840_v40 = vld [vmem:[#allocation17 + $0x518] sm:$0xf]  ;;  %v8665_v14 = vld [vmem:[#allocation17 + $0x19c] sm:$0xf]  ;;  %s5488_s30 = sshll.u32 %s9214_s12, 4  ;;  %s5489_s30 = int_to_ptr.vmem [resolvable:$true] %s5488_s30 }
 0x46f   :  { %v8781_v9 = vld [vmem:[#allocation17 + $0x534] sm:$0xf0]  ;;  %v7394_v15 = vld [vmem:[#allocation17 + $0x1b8] sm:$0xf0]  ;;  %5493 = dma.vmem_to_hbm [thread:$0]  %s5489_s30, 128, %s5491_s22, [#allocation21]  }
 0x470   :  { %5328 = vmatpush.bf16.msra.mxu1 %v7453_v60  ;;  %5350 = vmatpush.bf16.msra.mxu3 %v8093_v61  ;;  %v9471_v41 = vpop.f32.mrf.mxu1  ;;  %v8629_v60 = vld [vmem:[#allocation17 + $0x74] sm:$0xf0]  ;;  %v7841_v27 = vor.u32 %v8781_v9, %v7840_v40  ;;  %v7397_v42 = vor.u32 %v8665_v14, %v7394_v15  ;;  %v8721_v40 = vld [vmem:[#allocation17 + $0x35c] sm:$0xf]  ;;  %v3753_v14 = vperm.slane %v9477_v3, 1 }
 0x471   :  { %v5059_v45 = vpop.f32.mrf.mxu0  ;;  %v7872_v61 = vld [vmem:[#allocation17 + $0x558] sm:$0xf]  ;;  %v7618_v9 = vld [vmem:[#allocation17 + $0x378] sm:$0xf0] }
 0x472   :  { %5361 = vmatpush.bf16.msrb.mxu0 %v7393_v59  ;;  %5339 = vmatpush.bf16.msra.mxu2 %v7773_v7  ;;  %v7232_v59 = vld [vmem:[#allocation17 + $0x58] sm:$0xf]  ;;  %v7682_v45 = vld [vmem:[#allocation17 + $0x3f8] sm:$0xf0] }
 0x473   :  { %5329 = vmatmul.bf16.vlgmr.msra.gmra.mxu1 %v9441_v44  ;;  %v7233_v6 = vor.u32 %v8629_v60, %v7232_v59  ;;  %v7200_v7 = vld [vmem:[#allocation17 + $0x18] sm:$0xf]  ;;  %v7650_v59 = vld [vmem:[#allocation17 + $0x3b8] sm:$0xf0] }
 0x474   :  { %5373 = vmatpush.bf16.msrb.mxu1 %v7681_v1  ;;  %5351 = vmatpush.bf16.msra.mxu3 %v8061_v26  ;;  %v8701_v1 = vld [vmem:[#allocation17 + $0x2b4] sm:$0xf0] }
 0x475   :  { %v7521_v26 = vor.u32 %v8701_v1, %v7520_v0  ;;  %v7488_v46 = vld [vmem:[#allocation17 + $0x258] sm:$0xf] }
 0x476   :  { %5362 = vmatpush.bf16.msrb.mxu0 %v7361_v19  ;;  %5340 = vmatpush.bf16.msra.mxu2 %v7741_v17  ;;  %v7873_v19 = vor.u32 %v8789_v63, %v7872_v61  ;;  %v8693_v16 = vld [vmem:[#allocation17 + $0x274] sm:$0xf0] }
 0x477   :  { %v8128_v17 = vld [vmem:[#allocation17 + $0x758] sm:$0xf]  ;;  %v7489_v31 = vor.u32 %v8693_v16, %v7488_v46 }
 0x478   :  { %5374 = vmatpush.bf16.msrb.mxu1 %v7649_v22  ;;  %5352 = vmatpush.bf16.msra.mxu3 %v8029_v25  ;;  %v5072_v4 = vpop.f32.mrf.mxu1  ;;  %v8853_v21 = vld [vmem:[#allocation17 + $0x774] sm:$0xf0]  ;;  %v3752_v25 = vperm.slane %v9477_v3, 0 }
 0x479   :  { %v7808_v8 = vld [vmem:[#allocation17 + $0x4d8] sm:$0xf]  ;;  %v8129_v13 = vor.u32 %v8853_v21, %v8128_v17  ;;  %v8641_v21 = vld [vmem:[#allocation17 + $0xdc] sm:$0xf] }
 0x47a   :  { %5363 = vmatpush.bf16.msrb.mxu0 %v7329_v23  ;;  %5341 = vmatpush.bf16.msra.mxu2 %v7709_v36  ;;  %v9479_v22 = vpop.f32.mrf.mxu0  ;;  %v7201_v23 = vor.u32 %v8621_v20, %v7200_v7  ;;  %v7456_v34 = vld [vmem:[#allocation17 + $0x218] sm:$0xf]  ;;  %v7330_v7 = vld [vmem:[#allocation17 + $0x138] sm:$0xf0] }
 0x47b   :  { %v8685_v36 = vld [vmem:[#allocation17 + $0x234] sm:$0xf0] }
 0x47c   :  { %5375 = vmatpush.bf16.msrb.mxu1 %v7617_v30  ;;  %5353 = vmatpush.bf16.msra.mxu3 %v7997_v38  ;;  %v8773_v30 = vld [vmem:[#allocation17 + $0x4f4] sm:$0xf0]  ;;  %v5058_v38 = vadd.f32 %v9468_v47, %v3752_v25  ;;  %v7457_v49 = vor.u32 %v8685_v36, %v7456_v34  ;;  %v7621_v25 = vor.u32 %v8721_v40, %v7618_v9  ;;  %v7202_v40 = vld [vmem:[#allocation17 + $0x38] sm:$0xf0] }
 0x47d   :  { %5342 = vmatmul.bf16.vlgmr.msra.gmra.mxu2 %v9445_v5  ;;  %v7776_v37 = vld [vmem:[#allocation17 + $0x498] sm:$0xf]  ;;  %v8777_v9 = vld [vmem:[#allocation17 + $0x51c] sm:$0xf] }
 0x47e   :  { %5364 = vmatpush.bf16.msrb.mxu0 %v7297_v39  ;;  %5386 = vmatpush.bf16.msrb.mxu2 %v7937_v32  ;;  %v8096_v39 = vld [vmem:[#allocation17 + $0x718] sm:$0xf]  ;;  %v5071_v54 = vadd.f32 %v9471_v41, %v5058_v38  ;;  %v8649_v41 = vld [vmem:[#allocation17 + $0x11c] sm:$0xf] }
 0x47f   :  { %v5083_v35 = vpop.f32.mrf.mxu2  ;;  %v8845_v32 = vld [vmem:[#allocation17 + $0x734] sm:$0xf0]  ;;  %v7333_v46 = vor.u32 %v8649_v41, %v7330_v7  ;;  %v8793_v38 = vld [vmem:[#allocation17 + $0x59c] sm:$0xf] }
 0x480   :  { %5376 = vmatpush.bf16.msrb.mxu1 %v7585_v52  ;;  %5354 = vmatpush.bf16.msra.mxu3 %v7965_v57  ;;  %v9483_v24 = vpop.f32.mrf.mxu1  ;;  %v7809_v52 = vor.u32 %v8773_v30, %v7808_v8  ;;  %v8097_v50 = vor.u32 %v8845_v32, %v8096_v39  ;;  %v8765_v51 = vld [vmem:[#allocation17 + $0x4b4] sm:$0xf0]  ;;  %v5084_v60 = vadd.f32 %v5083_v35, %v5071_v54  ;;  %v8633_v39 = vld [vmem:[#allocation17 + $0x9c] sm:$0xf] }
 0x481   :  { %v8064_v57 = vld [vmem:[#allocation17 + $0x6d8] sm:$0xf]  ;;  %v7777_v61 = vor.u32 %v8765_v51, %v7776_v37  ;;  %v7266_v32 = vld [vmem:[#allocation17 + $0xb8] sm:$0xf0]  ;;  %v5110_v51 = vadd.f32 %v9479_v22, %v3753_v14 }
 0x482   :  { %5365 = vmatpush.bf16.msrb.mxu0 %v7265_v55  ;;  %5387 = vmatpush.bf16.msrb.mxu2 %v7905_v56  ;;  %v5111_v48 = vpop.f32.mrf.mxu0  ;;  %v7685_v55 = vor.u32 %v8737_v43, %v7682_v45  ;;  %v7362_v56 = vld [vmem:[#allocation17 + $0x178] sm:$0xf0]  ;;  %v8837_v47 = vld [vmem:[#allocation17 + $0x6f4] sm:$0xf0] }
 0x483   :  { %5355 = vmatmul.bf16.vlgmr.msra.gmra.mxu3 %v9449_v33  ;;  %v7365_v63 = vor.u32 %v8657_v53, %v7362_v56  ;;  %v8065_v0 = vor.u32 %v8837_v47, %v8064_v57  ;;  %v7744_v1 = vld [vmem:[#allocation17 + $0x458] sm:$0xf]  ;;  %v7554_v37 = vld [vmem:[#allocation17 + $0x2f8] sm:$0xf0]  ;;  %v7269_v57 = vor.u32 %v8633_v39, %v7266_v32 }
 0x484   :  { %5377 = vmatpush.bf16.msrb.mxu1 %v7553_v58  ;;  %5399 = vmatpush.bf16.msrb.mxu3 %v8193_v62  ;;  %v8729_v58 = vld [vmem:[#allocation17 + $0x39c] sm:$0xf]  ;;  %v8757_v2 = vld [vmem:[#allocation17 + $0x474] sm:$0xf0] }
 0x485   :  { %v7712_v11 = vld [vmem:[#allocation17 + $0x418] sm:$0xf]  ;;  %v8865_v54 = vld [vmem:[#allocation17 + $0x7dc] sm:$0xf] }
 0x486   :  { %5366 = vmatpush.bf16.msrb.mxu0 %v7233_v6  ;;  %5388 = vmatpush.bf16.msrb.mxu2 %v7873_v19  ;;  %v5096_v62 = vpop.f32.mrf.mxu3  ;;  %v7653_v6 = vor.u32 %v8729_v58, %v7650_v59  ;;  %v8032_v19 = vld [vmem:[#allocation17 + $0x698] sm:$0xf]  ;;  %v5123_v58 = vadd.f32 %v9483_v24, %v5110_v51  ;;  %v8681_v14 = vld [vmem:[#allocation17 + $0x21c] sm:$0xf] }
 0x487   :  { %v5097_v18 = vadd.f32 %v5096_v62, %v5084_v60  ;;  %v5085_v4 = vpop.f32.mrf.mxu2  ;;  %v8749_v17 = vld [vmem:[#allocation17 + $0x434] sm:$0xf0]  ;;  %v7234_v62 = vld [vmem:[#allocation17 + $0x78] sm:$0xf0] }
 0x488   :  { %5378 = vmatpush.bf16.msrb.mxu1 %v7521_v26  ;;  %5400 = vmatpush.bf16.msrb.mxu3 %v8161_v10  ;;  %v8829_v26 = vld [vmem:[#allocation17 + $0x6b4] sm:$0xf0]  ;;  %v5124_v20 = vpop.f32.mrf.mxu1  ;;  %v7745_v10 = vor.u32 %v8757_v2, %v7744_v1  ;;  %v7713_v15 = vor.u32 %v8749_v17, %v7712_v11  ;;  %v8697_v1 = vld [vmem:[#allocation17 + $0x29c] sm:$0xf] }
 0x489   :  { %5464 = vst [vmem:[#allocation19] sm:$0xff] %v5097_v18  ;;  %v8033_v16 = vor.u32 %v8829_v26, %v8032_v19  ;;  %v8000_v8 = vld [vmem:[#allocation17 + $0x658] sm:$0xf]  ;;  %v7522_v2 = vld [vmem:[#allocation17 + $0x2b8] sm:$0xf0] }
 0x48a   :  { %5367 = vmatpush.bf16.msrb.mxu0 %v7201_v23  ;;  %5389 = vmatpush.bf16.msrb.mxu2 %v7841_v27  ;;  %v9489_v12 = vpop.f32.mrf.mxu0  ;;  %v7298_v23 = vld [vmem:[#allocation17 + $0xf8] sm:$0xf0]  ;;  %v8821_v30 = vld [vmem:[#allocation17 + $0x674] sm:$0xf0]  ;;  %v7525_v26 = vor.u32 %v8697_v1, %v7522_v2 }
 0x48b   :  { %v8801_v27 = vld [vmem:[#allocation17 + $0x5dc] sm:$0xf]  ;;  %v7301_v35 = vor.u32 %v8641_v21, %v7298_v23  ;;  %v8001_v43 = vor.u32 %v8821_v30, %v8000_v8 }
 0x48c   :  { %5379 = vmatpush.bf16.msrb.mxu1 %v7489_v31  ;;  %5401 = vmatpush.bf16.msrb.mxu3 %v8129_v13  ;;  %v8713_v31 = vld [vmem:[#allocation17 + $0x31c] sm:$0xf] }
 0x48d   :  { %5368 = vmatmul.bf16.vlgmr.msrb.gmra.mxu0 %v9437_v29  ;;  %v7586_v13 = vld [vmem:[#allocation17 + $0x338] sm:$0xf0] }
 0x48e   :  { %5412 = vmatpush.bf16.msra.mxu0 %v7429_v28  ;;  %5390 = vmatpush.bf16.msrb.mxu2 %v7809_v52  ;;  %v7938_v28 = vld [vmem:[#allocation17 + $0x5f8] sm:$0xf0]  ;;  %v5098_v34 = vpop.f32.mrf.mxu3  ;;  %v7589_v45 = vor.u32 %v8713_v31, %v7586_v13 }
 0x48f   :  { %v7941_v36 = vor.u32 %v8801_v27, %v7938_v28  ;;  %v7906_v52 = vld [vmem:[#allocation17 + $0x5b8] sm:$0xf0] }
 0x490   :  { %5380 = vmatpush.bf16.msrb.mxu1 %v7457_v49  ;;  %5402 = vmatpush.bf16.msrb.mxu3 %v8097_v50  ;;  %v5135_v48 = vpop.f32.mrf.mxu2  ;;  %v8813_v49 = vld [vmem:[#allocation17 + $0x634] sm:$0xf0]  ;;  %v8705_v50 = vld [vmem:[#allocation17 + $0x2dc] sm:$0xf]  ;;  %v9493_v53 = vpop.f32.mrf.mxu1  ;;  %v7909_v47 = vor.u32 %v8793_v38, %v7906_v52 }
 0x491   :  { %v7557_v60 = vor.u32 %v8705_v50, %v7554_v37  ;;  %v5136_v41 = vadd.f32 %v5135_v48, %v5123_v58  ;;  %v8857_v18 = vld [vmem:[#allocation17 + $0x79c] sm:$0xf] }
 0x492   :  { %5413 = vmatpush.bf16.msra.mxu0 %v7397_v42  ;;  %5391 = vmatpush.bf16.msrb.mxu2 %v7777_v61  ;;  %v7968_v42 = vld [vmem:[#allocation17 + $0x618] sm:$0xf]  ;;  %v5163_v56 = vpop.f32.mrf.mxu0  ;;  %v8625_v61 = vld [vmem:[#allocation17 + $0x5c] sm:$0xf] }
 0x493   :  { %5381 = vmatmul.bf16.vlgmr.msrb.gmra.mxu1 %v9441_v44  ;;  %v7969_v59 = vor.u32 %v8813_v49, %v7968_v42  ;;  %v8162_v4 = vld [vmem:[#allocation17 + $0x7b8] sm:$0xf0]  ;;  %v7237_v24 = vor.u32 %v8625_v61, %v7234_v62 }
 0x494   :  { %5425 = vmatpush.bf16.msra.mxu1 %v7685_v55  ;;  %5403 = vmatpush.bf16.msrb.mxu3 %v8065_v0  ;;  %v8194_v55 = vld [vmem:[#allocation17 + $0x7f8] sm:$0xf0]  ;;  %v8165_v11 = vor.u32 %v8857_v18, %v8162_v4 }
 0x495   :  { %v8197_v22 = vor.u32 %v8865_v54, %v8194_v55  ;;  %v7874_v0 = vld [vmem:[#allocation17 + $0x578] sm:$0xf0] }
 0x496   :  { %5414 = vmatpush.bf16.msra.mxu0 %v7365_v63  ;;  %5392 = vmatpush.bf16.msrb.mxu2 %v7745_v10  ;;  %v8785_v63 = vld [vmem:[#allocation17 + $0x55c] sm:$0xf] }
 0x497   :  { %v7877_v19 = vor.u32 %v8785_v63, %v7874_v0  ;;  %v8617_v20 = vld [vmem:[#allocation17 + $0x1c] sm:$0xf] }
 0x498   :  { %5426 = vmatpush.bf16.msra.mxu1 %v7653_v6  ;;  %5404 = vmatpush.bf16.msrb.mxu3 %v8033_v16  ;;  %v5148_v6 = vpop.f32.mrf.mxu3  ;;  %v5137_v10 = vpop.f32.mrf.mxu2  ;;  %v8689_v16 = vld [vmem:[#allocation17 + $0x25c] sm:$0xf]  ;;  %v7205_v27 = vor.u32 %v8617_v20, %v7202_v40 }
 0x499   :  { %v5149_v7 = vadd.f32 %v5148_v6, %v5136_v41  ;;  %v7490_v17 = vld [vmem:[#allocation17 + $0x278] sm:$0xf0]  ;;  %v5176_v21 = vpop.f32.mrf.mxu1 }
 0x49a   :  { %5415 = vmatpush.bf16.msra.mxu0 %v7333_v46  ;;  %5393 = vmatpush.bf16.msrb.mxu2 %v7713_v15  ;;  %v7842_v46 = vld [vmem:[#allocation17 + $0x538] sm:$0xf0]  ;;  %v7493_v8 = vor.u32 %v8689_v16, %v7490_v17 }
 0x49b   :  { %5465 = vst [vmem:[#allocation19 + $0x8] sm:$0xff] %v5149_v7  ;;  %v8849_v23 = vld [vmem:[#allocation17 + $0x75c] sm:$0xf]  ;;  %v7845_v28 = vor.u32 %v8777_v9, %v7842_v46 }
 0x49c   :  { %5427 = vmatpush.bf16.msra.mxu1 %v7621_v25  ;;  %5405 = vmatpush.bf16.msrb.mxu3 %v8001_v43  ;;  %v8130_v25 = vld [vmem:[#allocation17 + $0x778] sm:$0xf0] }
 0x49d   :  { %5394 = vmatmul.bf16.vlgmr.msrb.gmra.mxu2 %v9445_v5  ;;  %v8769_v30 = vld [vmem:[#allocation17 + $0x4dc] sm:$0xf]  ;;  %v8133_v31 = vor.u32 %v8849_v23, %v8130_v25  ;;  %v3756_v23 = vperm.slane %v9477_v3, 4 }
 0x49e   :  { %5416 = vmatpush.bf16.msra.mxu0 %v7301_v35  ;;  %5438 = vmatpush.bf16.msra.mxu2 %v7941_v36  ;;  %v7810_v13 = vld [vmem:[#allocation17 + $0x4f8] sm:$0xf0]  ;;  %v3754_v36 = vperm.slane %v9477_v3, 2 }
 0x49f   :  { %v7458_v15 = vld [vmem:[#allocation17 + $0x238] sm:$0xf0]  ;;  %v7813_v32 = vor.u32 %v8769_v30, %v7810_v13 }
 0x4a0   :  { %5428 = vmatpush.bf16.msra.mxu1 %v7589_v45  ;;  %5406 = vmatpush.bf16.msrb.mxu3 %v7969_v59  ;;  %v8841_v34 = vld [vmem:[#allocation17 + $0x71c] sm:$0xf]  ;;  %v5150_v39 = vpop.f32.mrf.mxu3  ;;  %v7461_v43 = vor.u32 %v8681_v14, %v7458_v15  ;;  %v5187_v45 = vpop.f32.mrf.mxu2  ;;  %v5162_v50 = vadd.f32 %v9489_v12, %v3754_v36 }
 0x4a1   :  { %v8098_v35 = vld [vmem:[#allocation17 + $0x738] sm:$0xf0]  ;;  %v3757_v39 = vperm.slane %v9477_v3, 5 }
 0x4a2   :  { %5417 = vmatpush.bf16.msra.mxu0 %v7269_v57  ;;  %5439 = vmatpush.bf16.msra.mxu2 %v7909_v47  ;;  %v8101_v38 = vor.u32 %v8841_v34, %v8098_v35  ;;  %v8761_v52 = vld [vmem:[#allocation17 + $0x49c] sm:$0xf]  ;;  %v5175_v51 = vadd.f32 %v9493_v53, %v5162_v50 }
 0x4a3   :  { %5407 = vmatmul.bf16.vlgmr.msrb.gmra.mxu3 %v9449_v33  ;;  %v7778_v42 = vld [vmem:[#allocation17 + $0x4b8] sm:$0xf0] }
 0x4a4   :  { %5429 = vmatpush.bf16.msra.mxu1 %v7557_v60  ;;  %5451 = vmatpush.bf16.msra.mxu3 %v8197_v22  ;;  %v8833_v48 = vld [vmem:[#allocation17 + $0x6dc] sm:$0xf]  ;;  %v7781_v37 = vor.u32 %v8761_v52, %v7778_v42  ;;  %v5188_v58 = vadd.f32 %v5187_v45, %v5175_v51 }
 0x4a5   :  { %v8066_v49 = vld [vmem:[#allocation17 + $0x6f8] sm:$0xf0] }
 0x4a6   :  { %5418 = vmatpush.bf16.msra.mxu0 %v7237_v24  ;;  %5440 = vmatpush.bf16.msra.mxu2 %v7877_v19  ;;  %v8069_v54 = vor.u32 %v8833_v48, %v8066_v49  ;;  %v8753_v55 = vld [vmem:[#allocation17 + $0x45c] sm:$0xf]  ;;  %v3755_v19 = vperm.slane %v9477_v3, 3 }
 0x4a7   :  { %v7746_v56 = vld [vmem:[#allocation17 + $0x478] sm:$0xf0] }
 0x4a8   :  { %5430 = vmatpush.bf16.msra.mxu1 %v7525_v26  ;;  %5452 = vmatpush.bf16.msra.mxu3 %v8165_v11  ;;  %v8825_v57 = vld [vmem:[#allocation17 + $0x69c] sm:$0xf]  ;;  %v7749_v60 = vor.u32 %v8753_v55, %v7746_v56  ;;  %v5189_v61 = vpop.f32.mrf.mxu2  ;;  %v3758_v55 = vperm.slane %v9477_v3, 6 }
 0x4a9   :  { %v8034_v47 = vld [vmem:[#allocation17 + $0x6b8] sm:$0xf0] }
 0x4aa   :  { %5419 = vmatpush.bf16.msra.mxu0 %v7205_v27  ;;  %5441 = vmatpush.bf16.msra.mxu2 %v7845_v28  ;;  %v5213_v59 = vpop.f32.mrf.mxu0  ;;  %v8037_v62 = vor.u32 %v8825_v57, %v8034_v47  ;;  %v8745_v63 = vld [vmem:[#allocation17 + $0x41c] sm:$0xf] }
 0x4ab   :  { %v7714_v22 = vld [vmem:[#allocation17 + $0x438] sm:$0xf0]  ;;  %v5214_v20 = vadd.f32 %v5213_v59, %v3755_v19 }
 0x4ac   :  { %5431 = vmatpush.bf16.msra.mxu1 %v7493_v8  ;;  %5453 = vmatpush.bf16.msra.mxu3 %v8133_v31  ;;  %v8817_v53 = vld [vmem:[#allocation17 + $0x65c] sm:$0xf]  ;;  %v7717_v1 = vor.u32 %v8745_v63, %v7714_v22 }
 0x4ad   :  { %5420 = vmatmul.bf16.vlgmr.msra.gmra.mxu0 %v9437_v29  ;;  %v5200_v29 = vpop.f32.mrf.mxu3  ;;  %v8002_v0 = vld [vmem:[#allocation17 + $0x678] sm:$0xf0] }
 0x4ae   :  { %5442 = vmatpush.bf16.msra.mxu2 %v7813_v32  ;;  %v5201_v12 = vadd.f32 %v5200_v29, %v5188_v58  ;;  %v8005_v2 = vor.u32 %v8817_v53, %v8002_v0  ;;  %v8809_v18 = vld [vmem:[#allocation17 + $0x61c] sm:$0xf]  ;;  %v3759_v53 = vperm.slane %v9477_v3, 7 }
 0x4b0   :  { %5432 = vmatpush.bf16.msra.mxu1 %v7461_v43  ;;  %5454 = vmatpush.bf16.msra.mxu3 %v8101_v38  ;;  %5466 = vst [vmem:[#allocation19 + $0x10] sm:$0xff] %v5201_v12  ;;  %v5226_v41 = vpop.f32.mrf.mxu1 }
 0x4b1   :  { %v5227_v40 = vadd.f32 %v5226_v41, %v5214_v20 }
 0x4b2   :  { %5443 = vmatpush.bf16.msra.mxu2 %v7781_v37  ;;  %v5215_v6 = vpop.f32.mrf.mxu0 }
 0x4b3   :  { %5433 = vmatmul.bf16.vlgmr.msra.gmra.mxu1 %v9441_v44  ;;  %v7970_v44 = vld [vmem:[#allocation17 + $0x638] sm:$0xf0] }
 0x4b4   :  { %5455 = vmatpush.bf16.msra.mxu3 %v8069_v54  ;;  %v7973_v24 = vor.u32 %v8809_v18, %v7970_v44 }
 0x4b5   :  { %v5202_v4 = vpop.f32.mrf.mxu3 }
 0x4b6   :  { %5444 = vmatpush.bf16.msra.mxu2 %v7749_v60 }
 0x4b8   :  { %5456 = vmatpush.bf16.msra.mxu3 %v8037_v62  ;;  %v5228_v7 = vpop.f32.mrf.mxu1 }
 0x4ba   :  { %5445 = vmatpush.bf16.msra.mxu2 %v7717_v1 }
 0x4bc   :  { %5457 = vmatpush.bf16.msra.mxu3 %v8005_v2 }
 0x4bd   :  { %5446 = vmatmul.bf16.vlgmr.msra.gmra.mxu2 %v9445_v5 }
 0x4c0   :  { %5458 = vmatpush.bf16.msra.mxu3 %v7973_v24  ;;  %v5239_v26 = vpop.f32.mrf.mxu2 }
 0x4c1   :  { %v5240_v9 = vadd.f32 %v5239_v26, %v5227_v40 }
 0x4c3   :  { %5459 = vmatmul.bf16.vlgmr.msra.gmra.mxu3 %v9449_v33 }
 0x4c6   :  { %v5252_v10 = vpop.f32.mrf.mxu3 }
 0x4c7   :  { %v5253_v11 = vadd.f32 %v5252_v10, %v5240_v9 }
 0x4c8   :  { %v5241_v5 = vpop.f32.mrf.mxu2 }
 0x4c9   :  { %5467 = vst [vmem:[#allocation19 + $0x18] sm:$0xff] %v5253_v11 }
 0x4ca   :  { %v5265_v46 = vpop.f32.mrf.mxu0 }
 0x4cb   :  { %v5266_v27 = vadd.f32 %v5265_v46, %v3756_v23 }
 0x4ce   :  { %v5254_v16 = vpop.f32.mrf.mxu3 }
 0x4d0   :  { %v5278_v33 = vpop.f32.mrf.mxu1 }
 0x4d1   :  { %v5279_v28 = vadd.f32 %v5278_v33, %v5266_v27 }
 0x4d2   :  { %v5267_v17 = vpop.f32.mrf.mxu0 }
 0x4d8   :  { %v5280_v21 = vpop.f32.mrf.mxu1 }
 0x4e0   :  { %v5291_v25 = vpop.f32.mrf.mxu2 }
 0x4e1   :  { %v5292_v8 = vadd.f32 %v5291_v25, %v5279_v28 }
 0x4e6   :  { %v5304_v30 = vpop.f32.mrf.mxu3 }
 0x4e7   :  { %v5305_v31 = vadd.f32 %v5304_v30, %v5292_v8 }
 0x4e8   :  { %v5293_v14 = vpop.f32.mrf.mxu2 }
 0x4e9   :  { %5468 = vst [vmem:[#allocation19 + $0x20] sm:$0xff] %v5305_v31 }
 0x4ea   :  { %v5317_v13 = vpop.f32.mrf.mxu0 }
 0x4eb   :  { %v5318_v43 = vadd.f32 %v5317_v13, %v3757_v39 }
 0x4ee   :  { %v5306_v34 = vpop.f32.mrf.mxu3 }
 0x4f0   :  { %v5330_v15 = vpop.f32.mrf.mxu1 }
 0x4f1   :  { %v5331_v45 = vadd.f32 %v5330_v15, %v5318_v43 }
 0x4f2   :  { %v5319_v35 = vpop.f32.mrf.mxu0 }
 0x4f8   :  { %v5332_v36 = vpop.f32.mrf.mxu1 }
 0x500   :  { %v5343_v32 = vpop.f32.mrf.mxu2 }
 0x501   :  { %v5344_v38 = vadd.f32 %v5343_v32, %v5331_v45 }
 0x506   :  { %v5356_v52 = vpop.f32.mrf.mxu3 }
 0x507   :  { %v5357_v42 = vadd.f32 %v5356_v52, %v5344_v38 }
 0x508   :  { %v5345_v49 = vpop.f32.mrf.mxu2 }
 0x509   :  { %5469 = vst [vmem:[#allocation19 + $0x28] sm:$0xff] %v5357_v42 }
 0x50a   :  { %v5369_v48 = vpop.f32.mrf.mxu0 }
 0x50b   :  { %v5370_v57 = vadd.f32 %v5369_v48, %v3758_v55 }
 0x50e   :  { %v5358_v37 = vpop.f32.mrf.mxu3 }
 0x510   :  { %v5382_v50 = vpop.f32.mrf.mxu1 }
 0x511   :  { %v5383_v47 = vadd.f32 %v5382_v50, %v5370_v57 }
 0x512   :  { %v5371_v51 = vpop.f32.mrf.mxu0 }
 0x518   :  { %v5384_v54 = vpop.f32.mrf.mxu1 }
 0x520   :  { %v5395_v56 = vpop.f32.mrf.mxu2 }
 0x521   :  { %v5396_v58 = vadd.f32 %v5395_v56, %v5383_v47 }
 0x526   :  { %v5408_v29 = vpop.f32.mrf.mxu3 }
 0x527   :  { %v5409_v59 = vadd.f32 %v5408_v29, %v5396_v58 }
 0x528   :  { %v5397_v12 = vpop.f32.mrf.mxu2 }
 0x529   :  { %5470 = vst [vmem:[#allocation19 + $0x30] sm:$0xff] %v5409_v59 }
 0x52a   :  { %v5421_v60 = vpop.f32.mrf.mxu0 }
 0x52b   :  { %v5422_v0 = vadd.f32 %v5421_v60, %v3759_v53 }
 0x52e   :  { %v5410_v62 = vpop.f32.mrf.mxu3 }
 0x530   :  { %v5434_v61 = vpop.f32.mrf.mxu1 }
 0x531   :  { %v5435_v2 = vadd.f32 %v5434_v61, %v5422_v0 }
 0x532   :  { %v5423_v63 = vpop.f32.mrf.mxu0 }
 0x538   :  { %v5436_v22 = vpop.f32.mrf.mxu1 }
 0x540   :  { %v5447_v1 = vpop.f32.mrf.mxu2 }
 0x541   :  { %v5448_v41 = vadd.f32 %v5447_v1, %v5435_v2 }
 0x546   :  { %v5460_v18 = vpop.f32.mrf.mxu3 }
 0x547   :  { %v5461_v44 = vadd.f32 %v5460_v18, %v5448_v41 }
 0x548   :  { %v5449_v4 = vpop.f32.mrf.mxu2 }
 0x549   :  { %5471 = vst [vmem:[#allocation19 + $0x38] sm:$0xff] %v5461_v44 }
 0x54a   :  { %5482 = dma.vmem_to_hbm [thread:$0]  %s5478_s16, 1024, %s5480_s18, [#allocation4]  }
 0x54e   :  { %v5462_v6 = vpop.f32.mrf.mxu3 }
 0x54f   :  { %9192 = dma.done.wait [#allocation4], 1024  }
 0x550   :  { %9193 = vsyncadd [#allocation4], 4294966272 }
 0x551   :  { %9194 = dma.done.wait [#allocation21], 128  }
 0x552   :  { %9195 = vsyncadd [#allocation21], 4294967168 }
 0x553   :  { %5502 = vsyncpa [#allocation3], 1 }
 0x554   :  { %5503 = vsyncpa [#allocation6], 1 }
 0x555   :  { %5504 = vsyncpa [#allocation9], 1 }
 0x556   :  { %5505 = vsyncpa [#allocation12], 1 }
 0x557   :  { %5506 = vsyncpa [#allocation15], 1 }
 0x558   :  { %5507 = vsyncpa [#allocation18], 1 }
 0x559   :  { %5508 = vsyncpa [#allocation4], 1 }
 0x55a   :  { %5509 = vsyncpa [#allocation21], 1 }

</bundles_post_ra>
